<compile_context>
chip_gen: v7x
topology: tpu7x:2x2x1
jax: 0.10.0
libtpu: 0.0.40
codegen_flags: <defaults>
</compile_context>

<pallas_src>
import jax
import jax.numpy as jnp
from jax.experimental import pallas as pl
from jax.experimental.pallas import tpu as pltpu

# ----------------------------- configuration ------------------------------
N      = 2            # batch
IMG_H  = 16           # featmap height (stride-1 convs keep spatial size)
IMG_W  = 16
C_IN   = 3            # RGB input image
C_HID  = 16           # encoder hidden channels
C_FEAT = 8            # encoder output channels (pixel-aligned feature dim)
P      = 64           # query points per batch element
C_SP   = 8            # spatial_feat channels
MLP_H  = 32
DIST   = 1.0          # distance=1 in forward()
HW     = IMG_H * IMG_W          # 256
NHW    = N * HW                 # 512  (flat pixel axis, lane-dense)
NP     = N * P                  # 128  (flat point axis, lane-dense)
TAPS   = tuple((di, dj) for di in (-1, 0, 1) for dj in (-1, 0, 1))


# ------------------------------ fused kernel -------------------------------
def _conv3x3_cf(x, w_ref, b_ref, mask_ref):
    """Channels-first 3x3 conv (stride 1, zero pad 1) + ReLU.

    x: (Cin, NHW) value; w_ref: (9, Cout, Cin); b_ref: (Cout, 1);
    mask_ref: (9, NHW) tap-validity masks (zero padding + no cross-image leak).
    For tap (di, dj) the neighbour x[c, n, i+di, j+dj] lives at flat lane
    q + di*W + dj; pltpu.roll (== jnp.roll semantics) brings it to lane q.
    """
    acc = None
    for tap, (di, dj) in enumerate(TAPS):
        off = di * IMG_W + dj
        xs = x if off == 0 else pltpu.roll(x, shift=(-off) % NHW, axis=1)
        xm = xs * mask_ref[tap:tap + 1, :]                              # (Cin, NHW)
        y = jnp.dot(w_ref[tap], xm, preferred_element_type=jnp.float32)  # (Cout, NHW)
        acc = y if acc is None else acc + y
    return jnp.maximum(acc + b_ref[...], 0.0)                           # (Cout, NHW)


def _occnet_kernel(x_ref, cmask_ref,
                   cw1_ref, cb1_ref, cw2_ref, cb2_ref,
                   iic_ref, jjc_ref, bbc_ref,
                   pts_ref, trig_ref, bbp_ref, spat_ref,
                   w1f_ref, w1s_ref, b1_ref, w2_ref, b2_ref, w3_ref, b3_ref,
                   occ_ref, samp_ref):
    # --- encoder: two conv3x3+ReLU layers, fully VMEM resident ---
    h = _conv3x3_cf(x_ref[...], cw1_ref, cb1_ref, cmask_ref)     # (C_HID, NHW)
    feat = _conv3x3_cf(h, cw2_ref, cb2_ref, cmask_ref)           # (C_FEAT, NHW)

    # --- project_points(points, azimuth, elevation=0, distance=1) ---
    px = pts_ref[0:1, :]                                         # (1, NP)
    py = pts_ref[1:2, :]
    pz = pts_ref[2:3, :]
    ca = trig_ref[0:1, :]                                        # cos(az) per point
    sa = trig_ref[1:2, :]                                        # sin(az) per point
    xc = ca * px + sa * pz
    yc = py
    zc = jnp.maximum(-sa * px + ca * pz + DIST, 1e-6)            # clamp behind-camera pts
    ix = (xc / zc + 1.0) * 0.5 * (IMG_W - 1)                     # (1, NP) pixel coords
    iy = (yc / zc + 1.0) * 0.5 * (IMG_H - 1)

    # --- map_points_to_plane: bilinear sampling as one dense tent-weight matmul ---
    ii = iic_ref[...]                                            # (NHW, 1) row index
    jj = jjc_ref[...]                                            # (NHW, 1) col index
    bb = bbc_ref[...]                                            # (NHW, 1) image index
    wgt_t = (jnp.maximum(0.0, 1.0 - jnp.abs(iy - ii)) *
             jnp.maximum(0.0, 1.0 - jnp.abs(ix - jj)))           # (NHW, NP)
    wgt_t = jnp.where(bb == bbp_ref[...], wgt_t, 0.0)            # batch-block-diagonal
    sampled = jnp.dot(feat, wgt_t,
                      preferred_element_type=jnp.float32)        # (C_FEAT, NP)

    # --- regressor: [pixel-aligned ; spatial] -> MLP -> sigmoid (split-W, no concat) ---
    h1 = jnp.maximum(
        jnp.dot(w1f_ref[...], sampled, preferred_element_type=jnp.float32)
        + jnp.dot(w1s_ref[...], spat_ref[...], preferred_element_type=jnp.float32)
        + b1_ref[...], 0.0)                                      # (MLP_H, NP)
    h2 = jnp.maximum(
        jnp.dot(w2_ref[...], h1, preferred_element_type=jnp.float32) + b2_ref[...],
        0.0)                                                     # (MLP_H, NP)
    o = jnp.dot(w3_ref[...], h2, preferred_element_type=jnp.float32) + b3_ref[...]

    occ_ref[...] = jax.nn.sigmoid(o)                             # (1, NP)       lane-dense
    samp_ref[...] = sampled                                      # (C_FEAT, NP)  lane-dense


# ----------------------------- wrapper (glue) ------------------------------
def _static_metadata():
    # Constant (data-independent) per-pixel indices and conv tap masks; XLA folds these.
    q = jnp.arange(NHW, dtype=jnp.int32)
    ii = ((q % HW) // IMG_W).astype(jnp.float32)
    jj = (q % IMG_W).astype(jnp.float32)
    bb = (q // HW).astype(jnp.float32)
    masks = []
    for di, dj in TAPS:
        m = ((ii + di >= 0) & (ii + di <= IMG_H - 1) &
             (jj + dj >= 0) & (jj + dj <= IMG_W - 1))
        masks.append(m.astype(jnp.float32))
    conv_mask = jnp.stack(masks, axis=0)                         # (9, NHW)
    return conv_mask, ii.reshape(NHW, 1), jj.reshape(NHW, 1), bb.reshape(NHW, 1)


def occnet_forward(params, input_image, spatial_feat, points, azimuth):
    f32 = jnp.float32
    # Tiny layout plumbing around ONE fused VMEM-resident kernel.
    x_cf = jnp.transpose(input_image.astype(f32), (1, 0, 2, 3)).reshape(C_IN, NHW)
    spat_t = jnp.transpose(spatial_feat.astype(f32), (1, 0, 2)).reshape(C_SP, NP)
    pts_t = jnp.transpose(points.astype(f32), (2, 0, 1)).reshape(3, NP)
    az = azimuth.astype(f32)
    trig = jnp.stack([jnp.repeat(jnp.cos(az), P),
                      jnp.repeat(jnp.sin(az), P)], axis=0)       # (2, NP)
    bb_p = jnp.repeat(jnp.arange(N, dtype=f32), P).reshape(1, NP)
    conv_mask, ii_c, jj_c, bb_c = _static_metadata()

    occ_t, samp_t = pl.pallas_call(
        _occnet_kernel,
        out_shape=(jax.ShapeDtypeStruct((1, NP), f32),
                   jax.ShapeDtypeStruct((C_FEAT, NP), f32)),
    )(x_cf, conv_mask,
      params['cw1'], params['cb1'], params['cw2'], params['cb2'],
      ii_c, jj_c, bb_c,
      pts_t, trig, bb_p, spat_t,
      params['w1f'], params['w1s'], params['b1'],
      params['w2'], params['b2'], params['w3'], params['b3'])

    occ_pred = jnp.transpose(occ_t.reshape(1, N, P), (1, 0, 2))                  # (N, 1, P)
    pixel_aligned_feats = jnp.transpose(samp_t.reshape(C_FEAT, N, P), (1, 0, 2))  # (N, C_FEAT, P)
    return occ_pred, pixel_aligned_feats


# --------------------- independent pure-JAX reference ----------------------
def _conv3x3_ref(x_nchw, w_taps, b):
    n, cin, h, w = x_nchw.shape
    xp = jnp.pad(x_nchw, ((0, 0), (0, 0), (1, 1), (1, 1)))
    out = None
    for tap, (di, dj) in enumerate(TAPS):
        patch = xp[:, :, 1 + di:1 + di + h, 1 + dj:1 + dj + w]
        y = jnp.einsum('oc,nchw->nohw', w_taps[tap], patch,
                       precision=jax.lax.Precision.HIGHEST)
        out = y if out is None else out + y
    return jax.nn.relu(out + b.reshape(1, -1, 1, 1))


def occnet_reference(params, input_image, spatial_feat, points, azimuth):
    hp = jax.lax.Precision.HIGHEST
    f32 = jnp.float32
    h = _conv3x3_ref(input_image.astype(f32), params['cw1'], params['cb1'])
    feat = _conv3x3_ref(h, params['cw2'], params['cb2'])           # (N, C_FEAT, H, W)
    featf = feat.reshape(N, C_FEAT, HW)

    az = azimuth.astype(f32)
    ca = jnp.cos(az)[:, None]
    sa = jnp.sin(az)[:, None]
    x = points[..., 0].astype(f32)
    y = points[..., 1].astype(f32)
    z = points[..., 2].astype(f32)
    xc = ca * x + sa * z
    yc = y
    zc = jnp.maximum(-sa * x + ca * z + DIST, 1e-6)
    ix = (xc / zc + 1.0) * 0.5 * (IMG_W - 1)                       # (N, P)
    iy = (yc / zc + 1.0) * 0.5 * (IMG_H - 1)

    ii = (jnp.arange(HW) // IMG_W).astype(f32)
    jj = (jnp.arange(HW) % IMG_W).astype(f32)
    wgt = (jnp.maximum(0.0, 1.0 - jnp.abs(iy[..., None] - ii)) *
           jnp.maximum(0.0, 1.0 - jnp.abs(ix[..., None] - jj)))    # (N, P, HW)
    sampled = jnp.einsum('nph,nch->ncp', wgt, featf, precision=hp)  # (N, C_FEAT, P)

    spat = spatial_feat.astype(f32)
    h1 = jax.nn.relu(jnp.einsum('oc,ncp->nop', params['w1f'], sampled, precision=hp)
                     + jnp.einsum('oc,ncp->nop', params['w1s'], spat, precision=hp)
                     + params['b1'][None, :, :])
    h2 = jax.nn.relu(jnp.einsum('oc,ncp->nop', params['w2'], h1, precision=hp)
                     + params['b2'][None, :, :])
    o = jnp.einsum('oc,ncp->nop', params['w3'], h2, precision=hp) + params['b3'][None, :, :]
    return jax.nn.sigmoid(o), sampled


# ------------------------- deterministic parameters ------------------------
def init_params(key):
    ks = jax.random.split(key, 6)

    def w(k, shape, scale=0.1):
        return (scale * jax.random.normal(k, shape)).astype(jnp.float32)

    return dict(
        cw1=w(ks[0], (9, C_HID, C_IN)),        # conv1 taps (tap, Cout, Cin)
        cb1=jnp.zeros((C_HID, 1), jnp.float32),
        cw2=w(ks[1], (9, C_FEAT, C_HID)),      # conv2 taps
        cb2=jnp.zeros((C_FEAT, 1), jnp.float32),
        w1f=w(ks[2], (MLP_H, C_FEAT)),         # MLP layer 1, pixel-aligned half
        w1s=w(ks[3], (MLP_H, C_SP)),           # MLP layer 1, spatial half
        b1=jnp.zeros((MLP_H, 1), jnp.float32),
        w2=w(ks[4], (MLP_H, MLP_H)),
        b2=jnp.zeros((MLP_H, 1), jnp.float32),
        w3=w(ks[5], (1, MLP_H)),
        b3=jnp.zeros((1, 1), jnp.float32),
    )


if __name__ == "__main__":
    key = jax.random.PRNGKey(0)
    k_img, k_sp, k_pts, k_az = jax.random.split(key, 4)

    input_image  = jax.random.normal(k_img, (N, C_IN, IMG_H, IMG_W), jnp.float32)
    spatial_feat = jax.random.normal(k_sp, (N, C_SP, P), jnp.float32)
    points       = 0.5 * jax.random.uniform(k_pts, (N, P, 3), jnp.float32,
                                            minval=-1.0, maxval=1.0)
    azimuth      = jax.random.uniform(k_az, (N,), jnp.float32,
                                      minval=0.0, maxval=2.0 * jnp.pi)
    params = init_params(jax.random.PRNGKey(42))

    fwd = jax.jit(occnet_forward)
    occ_pred, pixel_aligned_feats = fwd(params, input_image, spatial_feat, points, azimuth)
    jax.block_until_ready((occ_pred, pixel_aligned_feats))

    assert occ_pred.shape == (N, 1, P)
    assert pixel_aligned_feats.shape == (N, C_FEAT, P)
    assert bool(jnp.all(jnp.isfinite(occ_pred)))

    # Correctness against an independent pure-JAX reference (loose tol: MXU f32 passes).
    occ_ref, samp_ref = occnet_reference(params, input_image, spatial_feat, points, azimuth)
    assert bool(jnp.allclose(occ_pred, occ_ref, atol=5e-2, rtol=5e-2)), \
        f"max|d_occ|={float(jnp.max(jnp.abs(occ_pred - occ_ref)))}"
    assert bool(jnp.allclose(pixel_aligned_feats, samp_ref, atol=5e-2, rtol=5e-2)), \
        f"max|d_feat|={float(jnp.max(jnp.abs(pixel_aligned_feats - samp_ref)))}"

    print("KERNEL_OK")
</pallas_src>

<mosaic_0001>
module attributes {stable_mosaic.version = 11 : i64} {
  func.func @_occnet_kernel(%arg0: memref<3x512xf32, #tpu.memory_space<vmem>>, %arg1: memref<9x512xf32, #tpu.memory_space<vmem>>, %arg2: memref<9x16x3xf32, #tpu.memory_space<vmem>>, %arg3: memref<16x1xf32, #tpu.memory_space<vmem>>, %arg4: memref<9x8x16xf32, #tpu.memory_space<vmem>>, %arg5: memref<8x1xf32, #tpu.memory_space<vmem>>, %arg6: memref<512x1xf32, #tpu.memory_space<vmem>>, %arg7: memref<512x1xf32, #tpu.memory_space<vmem>>, %arg8: memref<512x1xf32, #tpu.memory_space<vmem>>, %arg9: memref<3x128xf32, #tpu.memory_space<vmem>>, %arg10: memref<2x128xf32, #tpu.memory_space<vmem>>, %arg11: memref<1x128xf32, #tpu.memory_space<vmem>>, %arg12: memref<8x128xf32, #tpu.memory_space<vmem>>, %arg13: memref<32x8xf32, #tpu.memory_space<vmem>>, %arg14: memref<32x8xf32, #tpu.memory_space<vmem>>, %arg15: memref<32x1xf32, #tpu.memory_space<vmem>>, %arg16: memref<32x32xf32, #tpu.memory_space<vmem>>, %arg17: memref<32x1xf32, #tpu.memory_space<vmem>>, %arg18: memref<1x32xf32, #tpu.memory_space<vmem>>, %arg19: memref<1x1xf32, #tpu.memory_space<vmem>>, %arg20: memref<1x128xf32, #tpu.memory_space<vmem>>, %arg21: memref<8x128xf32, #tpu.memory_space<vmem>>) attributes {dimension_semantics = [], scalar_prefetch = 0 : i64, scratch_operands = 0 : i64, tpu.core_type = #tpu.core_type<tc>} {
    %c0 = arith.constant 0 : index
    %c0_0 = arith.constant 0 : index
    %0 = vector.load %arg0[%c0, %c0_0] : memref<3x512xf32, #tpu.memory_space<vmem>>, vector<3x512xf32>
    %c17_i32 = arith.constant 17 : i32
    %1 = tpu.dynamic_rotate %0 by %c17_i32 dim 1 : vector<3x512xf32>, i32 -> vector<3x512xf32>
    %c0_1 = arith.constant 0 : index
    %c0_2 = arith.constant 0 : index
    %2 = vector.load %arg1[%c0_1, %c0_2] : memref<9x512xf32, #tpu.memory_space<vmem>>, vector<1x512xf32>
    %3 = vector.broadcast %2 : vector<1x512xf32> to vector<3x512xf32>
    %4 = arith.mulf %1, %3 : vector<3x512xf32>
    %c0_3 = arith.constant 0 : index
    %c0_4 = arith.constant 0 : index
    %c0_5 = arith.constant 0 : index
    %5 = vector.load %arg2[%c0_3, %c0_4, %c0_5] : memref<9x16x3xf32, #tpu.memory_space<vmem>>, vector<1x16x3xf32>
    %6 = vector.shape_cast %5 : vector<1x16x3xf32> to vector<16x3xf32>
    %cst = arith.constant dense<0.000000e+00> : vector<16x512xf32>
    %7 = tpu.matmul %6, %4, %cst {dimension_numbers = #tpu.dot_dimension_numbers<[1], [0], [0], [1], [0, 0, 1, 1], [], []>} : vector<16x3xf32>, vector<3x512xf32>, vector<16x512xf32> -> vector<16x512xf32>
    %c16_i32 = arith.constant 16 : i32
    %8 = tpu.dynamic_rotate %0 by %c16_i32 dim 1 : vector<3x512xf32>, i32 -> vector<3x512xf32>
    %c1 = arith.constant 1 : index
    %c0_6 = arith.constant 0 : index
    %9 = vector.load %arg1[%c1, %c0_6] : memref<9x512xf32, #tpu.memory_space<vmem>>, vector<1x512xf32>
    %10 = vector.broadcast %9 : vector<1x512xf32> to vector<3x512xf32>
    %11 = arith.mulf %8, %10 : vector<3x512xf32>
    %c1_7 = arith.constant 1 : index
    %c0_8 = arith.constant 0 : index
    %c0_9 = arith.constant 0 : index
    %12 = vector.load %arg2[%c1_7, %c0_8, %c0_9] : memref<9x16x3xf32, #tpu.memory_space<vmem>>, vector<1x16x3xf32>
    %13 = vector.shape_cast %12 : vector<1x16x3xf32> to vector<16x3xf32>
    %cst_10 = arith.constant dense<0.000000e+00> : vector<16x512xf32>
    %14 = tpu.matmul %13, %11, %cst_10 {dimension_numbers = #tpu.dot_dimension_numbers<[1], [0], [0], [1], [0, 0, 1, 1], [], []>} : vector<16x3xf32>, vector<3x512xf32>, vector<16x512xf32> -> vector<16x512xf32>
    %15 = arith.addf %7, %14 : vector<16x512xf32>
    %c15_i32 = arith.constant 15 : i32
    %16 = tpu.dynamic_rotate %0 by %c15_i32 dim 1 : vector<3x512xf32>, i32 -> vector<3x512xf32>
    %c2 = arith.constant 2 : index
    %c0_11 = arith.constant 0 : index
    %17 = vector.load %arg1[%c2, %c0_11] : memref<9x512xf32, #tpu.memory_space<vmem>>, vector<1x512xf32>
    %18 = vector.broadcast %17 : vector<1x512xf32> to vector<3x512xf32>
    %19 = arith.mulf %16, %18 : vector<3x512xf32>
    %c2_12 = arith.constant 2 : index
    %c0_13 = arith.constant 0 : index
    %c0_14 = arith.constant 0 : index
    %20 = vector.load %arg2[%c2_12, %c0_13, %c0_14] : memref<9x16x3xf32, #tpu.memory_space<vmem>>, vector<1x16x3xf32>
    %21 = vector.shape_cast %20 : vector<1x16x3xf32> to vector<16x3xf32>
    %cst_15 = arith.constant dense<0.000000e+00> : vector<16x512xf32>
    %22 = tpu.matmul %21, %19, %cst_15 {dimension_numbers = #tpu.dot_dimension_numbers<[1], [0], [0], [1], [0, 0, 1, 1], [], []>} : vector<16x3xf32>, vector<3x512xf32>, vector<16x512xf32> -> vector<16x512xf32>
    %23 = arith.addf %15, %22 : vector<16x512xf32>
    %c1_i32 = arith.constant 1 : i32
    %24 = tpu.dynamic_rotate %0 by %c1_i32 dim 1 : vector<3x512xf32>, i32 -> vector<3x512xf32>
    %c3 = arith.constant 3 : index
    %c0_16 = arith.constant 0 : index
    %25 = vector.load %arg1[%c3, %c0_16] : memref<9x512xf32, #tpu.memory_space<vmem>>, vector<1x512xf32>
    %26 = vector.broadcast %25 : vector<1x512xf32> to vector<3x512xf32>
    %27 = arith.mulf %24, %26 : vector<3x512xf32>
    %c3_17 = arith.constant 3 : index
    %c0_18 = arith.constant 0 : index
    %c0_19 = arith.constant 0 : index
    %28 = vector.load %arg2[%c3_17, %c0_18, %c0_19] : memref<9x16x3xf32, #tpu.memory_space<vmem>>, vector<1x16x3xf32>
    %29 = vector.shape_cast %28 : vector<1x16x3xf32> to vector<16x3xf32>
    %cst_20 = arith.constant dense<0.000000e+00> : vector<16x512xf32>
    %30 = tpu.matmul %29, %27, %cst_20 {dimension_numbers = #tpu.dot_dimension_numbers<[1], [0], [0], [1], [0, 0, 1, 1], [], []>} : vector<16x3xf32>, vector<3x512xf32>, vector<16x512xf32> -> vector<16x512xf32>
    %31 = arith.addf %23, %30 : vector<16x512xf32>
    %c4 = arith.constant 4 : index
    %c0_21 = arith.constant 0 : index
    %32 = vector.load %arg1[%c4, %c0_21] : memref<9x512xf32, #tpu.memory_space<vmem>>, vector<1x512xf32>
    %33 = vector.broadcast %32 : vector<1x512xf32> to vector<3x512xf32>
    %34 = arith.mulf %0, %33 : vector<3x512xf32>
    %c4_22 = arith.constant 4 : index
    %c0_23 = arith.constant 0 : index
    %c0_24 = arith.constant 0 : index
    %35 = vector.load %arg2[%c4_22, %c0_23, %c0_24] : memref<9x16x3xf32, #tpu.memory_space<vmem>>, vector<1x16x3xf32>
    %36 = vector.shape_cast %35 : vector<1x16x3xf32> to vector<16x3xf32>
    %cst_25 = arith.constant dense<0.000000e+00> : vector<16x512xf32>
    %37 = tpu.matmul %36, %34, %cst_25 {dimension_numbers = #tpu.dot_dimension_numbers<[1], [0], [0], [1], [0, 0, 1, 1], [], []>} : vector<16x3xf32>, vector<3x512xf32>, vector<16x512xf32> -> vector<16x512xf32>
    %38 = arith.addf %31, %37 : vector<16x512xf32>
    %c511_i32 = arith.constant 511 : i32
    %39 = tpu.dynamic_rotate %0 by %c511_i32 dim 1 : vector<3x512xf32>, i32 -> vector<3x512xf32>
    %c5 = arith.constant 5 : index
    %c0_26 = arith.constant 0 : index
    %40 = vector.load %arg1[%c5, %c0_26] : memref<9x512xf32, #tpu.memory_space<vmem>>, vector<1x512xf32>
    %41 = vector.broadcast %40 : vector<1x512xf32> to vector<3x512xf32>
    %42 = arith.mulf %39, %41 : vector<3x512xf32>
    %c5_27 = arith.constant 5 : index
    %c0_28 = arith.constant 0 : index
    %c0_29 = arith.constant 0 : index
    %43 = vector.load %arg2[%c5_27, %c0_28, %c0_29] : memref<9x16x3xf32, #tpu.memory_space<vmem>>, vector<1x16x3xf32>
    %44 = vector.shape_cast %43 : vector<1x16x3xf32> to vector<16x3xf32>
    %cst_30 = arith.constant dense<0.000000e+00> : vector<16x512xf32>
    %45 = tpu.matmul %44, %42, %cst_30 {dimension_numbers = #tpu.dot_dimension_numbers<[1], [0], [0], [1], [0, 0, 1, 1], [], []>} : vector<16x3xf32>, vector<3x512xf32>, vector<16x512xf32> -> vector<16x512xf32>
    %46 = arith.addf %38, %45 : vector<16x512xf32>
    %c497_i32 = arith.constant 497 : i32
    %47 = tpu.dynamic_rotate %0 by %c497_i32 dim 1 : vector<3x512xf32>, i32 -> vector<3x512xf32>
    %c6 = arith.constant 6 : index
    %c0_31 = arith.constant 0 : index
    %48 = vector.load %arg1[%c6, %c0_31] : memref<9x512xf32, #tpu.memory_space<vmem>>, vector<1x512xf32>
    %49 = vector.broadcast %48 : vector<1x512xf32> to vector<3x512xf32>
    %50 = arith.mulf %47, %49 : vector<3x512xf32>
    %c6_32 = arith.constant 6 : index
    %c0_33 = arith.constant 0 : index
    %c0_34 = arith.constant 0 : index
    %51 = vector.load %arg2[%c6_32, %c0_33, %c0_34] : memref<9x16x3xf32, #tpu.memory_space<vmem>>, vector<1x16x3xf32>
    %52 = vector.shape_cast %51 : vector<1x16x3xf32> to vector<16x3xf32>
    %cst_35 = arith.constant dense<0.000000e+00> : vector<16x512xf32>
    %53 = tpu.matmul %52, %50, %cst_35 {dimension_numbers = #tpu.dot_dimension_numbers<[1], [0], [0], [1], [0, 0, 1, 1], [], []>} : vector<16x3xf32>, vector<3x512xf32>, vector<16x512xf32> -> vector<16x512xf32>
    %54 = arith.addf %46, %53 : vector<16x512xf32>
    %c496_i32 = arith.constant 496 : i32
    %55 = tpu.dynamic_rotate %0 by %c496_i32 dim 1 : vector<3x512xf32>, i32 -> vector<3x512xf32>
    %c7 = arith.constant 7 : index
    %c0_36 = arith.constant 0 : index
    %56 = vector.load %arg1[%c7, %c0_36] : memref<9x512xf32, #tpu.memory_space<vmem>>, vector<1x512xf32>
    %57 = vector.broadcast %56 : vector<1x512xf32> to vector<3x512xf32>
    %58 = arith.mulf %55, %57 : vector<3x512xf32>
    %c7_37 = arith.constant 7 : index
    %c0_38 = arith.constant 0 : index
    %c0_39 = arith.constant 0 : index
    %59 = vector.load %arg2[%c7_37, %c0_38, %c0_39] : memref<9x16x3xf32, #tpu.memory_space<vmem>>, vector<1x16x3xf32>
    %60 = vector.shape_cast %59 : vector<1x16x3xf32> to vector<16x3xf32>
    %cst_40 = arith.constant dense<0.000000e+00> : vector<16x512xf32>
    %61 = tpu.matmul %60, %58, %cst_40 {dimension_numbers = #tpu.dot_dimension_numbers<[1], [0], [0], [1], [0, 0, 1, 1], [], []>} : vector<16x3xf32>, vector<3x512xf32>, vector<16x512xf32> -> vector<16x512xf32>
    %62 = arith.addf %54, %61 : vector<16x512xf32>
    %c495_i32 = arith.constant 495 : i32
    %63 = tpu.dynamic_rotate %0 by %c495_i32 dim 1 : vector<3x512xf32>, i32 -> vector<3x512xf32>
    %c8 = arith.constant 8 : index
    %c0_41 = arith.constant 0 : index
    %64 = vector.load %arg1[%c8, %c0_41] : memref<9x512xf32, #tpu.memory_space<vmem>>, vector<1x512xf32>
    %65 = vector.broadcast %64 : vector<1x512xf32> to vector<3x512xf32>
    %66 = arith.mulf %63, %65 : vector<3x512xf32>
    %c8_42 = arith.constant 8 : index
    %c0_43 = arith.constant 0 : index
    %c0_44 = arith.constant 0 : index
    %67 = vector.load %arg2[%c8_42, %c0_43, %c0_44] : memref<9x16x3xf32, #tpu.memory_space<vmem>>, vector<1x16x3xf32>
    %68 = vector.shape_cast %67 : vector<1x16x3xf32> to vector<16x3xf32>
    %cst_45 = arith.constant dense<0.000000e+00> : vector<16x512xf32>
    %69 = tpu.matmul %68, %66, %cst_45 {dimension_numbers = #tpu.dot_dimension_numbers<[1], [0], [0], [1], [0, 0, 1, 1], [], []>} : vector<16x3xf32>, vector<3x512xf32>, vector<16x512xf32> -> vector<16x512xf32>
    %70 = arith.addf %62, %69 : vector<16x512xf32>
    %c0_46 = arith.constant 0 : index
    %c0_47 = arith.constant 0 : index
    %71 = vector.load %arg3[%c0_46, %c0_47] : memref<16x1xf32, #tpu.memory_space<vmem>>, vector<16x1xf32>
    %72 = vector.broadcast %71 : vector<16x1xf32> to vector<16x512xf32>
    %73 = arith.addf %70, %72 : vector<16x512xf32>
    %cst_48 = arith.constant 0.000000e+00 : f32
    %74 = vector.broadcast %cst_48 : f32 to vector<16x512xf32>
    %75 = arith.maximumf %73, %74 : vector<16x512xf32>
    %c17_i32_49 = arith.constant 17 : i32
    %76 = tpu.dynamic_rotate %75 by %c17_i32_49 dim 1 : vector<16x512xf32>, i32 -> vector<16x512xf32>
    %c0_50 = arith.constant 0 : index
    %c0_51 = arith.constant 0 : index
    %77 = vector.load %arg1[%c0_50, %c0_51] : memref<9x512xf32, #tpu.memory_space<vmem>>, vector<1x512xf32>
    %78 = vector.broadcast %77 : vector<1x512xf32> to vector<16x512xf32>
    %79 = arith.mulf %76, %78 : vector<16x512xf32>
    %c0_52 = arith.constant 0 : index
    %c0_53 = arith.constant 0 : index
    %c0_54 = arith.constant 0 : index
    %80 = vector.load %arg4[%c0_52, %c0_53, %c0_54] : memref<9x8x16xf32, #tpu.memory_space<vmem>>, vector<1x8x16xf32>
    %81 = vector.shape_cast %80 : vector<1x8x16xf32> to vector<8x16xf32>
    %cst_55 = arith.constant dense<0.000000e+00> : vector<8x512xf32>
    %82 = tpu.matmul %81, %79, %cst_55 {dimension_numbers = #tpu.dot_dimension_numbers<[1], [0], [0], [1], [0, 0, 1, 1], [], []>} : vector<8x16xf32>, vector<16x512xf32>, vector<8x512xf32> -> vector<8x512xf32>
    %c16_i32_56 = arith.constant 16 : i32
    %83 = tpu.dynamic_rotate %75 by %c16_i32_56 dim 1 : vector<16x512xf32>, i32 -> vector<16x512xf32>
    %c1_57 = arith.constant 1 : index
    %c0_58 = arith.constant 0 : index
    %84 = vector.load %arg1[%c1_57, %c0_58] : memref<9x512xf32, #tpu.memory_space<vmem>>, vector<1x512xf32>
    %85 = vector.broadcast %84 : vector<1x512xf32> to vector<16x512xf32>
    %86 = arith.mulf %83, %85 : vector<16x512xf32>
    %c1_59 = arith.constant 1 : index
    %c0_60 = arith.constant 0 : index
    %c0_61 = arith.constant 0 : index
    %87 = vector.load %arg4[%c1_59, %c0_60, %c0_61] : memref<9x8x16xf32, #tpu.memory_space<vmem>>, vector<1x8x16xf32>
    %88 = vector.shape_cast %87 : vector<1x8x16xf32> to vector<8x16xf32>
    %cst_62 = arith.constant dense<0.000000e+00> : vector<8x512xf32>
    %89 = tpu.matmul %88, %86, %cst_62 {dimension_numbers = #tpu.dot_dimension_numbers<[1], [0], [0], [1], [0, 0, 1, 1], [], []>} : vector<8x16xf32>, vector<16x512xf32>, vector<8x512xf32> -> vector<8x512xf32>
    %90 = arith.addf %82, %89 : vector<8x512xf32>
    %c15_i32_63 = arith.constant 15 : i32
    %91 = tpu.dynamic_rotate %75 by %c15_i32_63 dim 1 : vector<16x512xf32>, i32 -> vector<16x512xf32>
    %c2_64 = arith.constant 2 : index
    %c0_65 = arith.constant 0 : index
    %92 = vector.load %arg1[%c2_64, %c0_65] : memref<9x512xf32, #tpu.memory_space<vmem>>, vector<1x512xf32>
    %93 = vector.broadcast %92 : vector<1x512xf32> to vector<16x512xf32>
    %94 = arith.mulf %91, %93 : vector<16x512xf32>
    %c2_66 = arith.constant 2 : index
    %c0_67 = arith.constant 0 : index
    %c0_68 = arith.constant 0 : index
    %95 = vector.load %arg4[%c2_66, %c0_67, %c0_68] : memref<9x8x16xf32, #tpu.memory_space<vmem>>, vector<1x8x16xf32>
    %96 = vector.shape_cast %95 : vector<1x8x16xf32> to vector<8x16xf32>
    %cst_69 = arith.constant dense<0.000000e+00> : vector<8x512xf32>
    %97 = tpu.matmul %96, %94, %cst_69 {dimension_numbers = #tpu.dot_dimension_numbers<[1], [0], [0], [1], [0, 0, 1, 1], [], []>} : vector<8x16xf32>, vector<16x512xf32>, vector<8x512xf32> -> vector<8x512xf32>
    %98 = arith.addf %90, %97 : vector<8x512xf32>
    %c1_i32_70 = arith.constant 1 : i32
    %99 = tpu.dynamic_rotate %75 by %c1_i32_70 dim 1 : vector<16x512xf32>, i32 -> vector<16x512xf32>
    %c3_71 = arith.constant 3 : index
    %c0_72 = arith.constant 0 : index
    %100 = vector.load %arg1[%c3_71, %c0_72] : memref<9x512xf32, #tpu.memory_space<vmem>>, vector<1x512xf32>
    %101 = vector.broadcast %100 : vector<1x512xf32> to vector<16x512xf32>
    %102 = arith.mulf %99, %101 : vector<16x512xf32>
    %c3_73 = arith.constant 3 : index
    %c0_74 = arith.constant 0 : index
    %c0_75 = arith.constant 0 : index
    %103 = vector.load %arg4[%c3_73, %c0_74, %c0_75] : memref<9x8x16xf32, #tpu.memory_space<vmem>>, vector<1x8x16xf32>
    %104 = vector.shape_cast %103 : vector<1x8x16xf32> to vector<8x16xf32>
    %cst_76 = arith.constant dense<0.000000e+00> : vector<8x512xf32>
    %105 = tpu.matmul %104, %102, %cst_76 {dimension_numbers = #tpu.dot_dimension_numbers<[1], [0], [0], [1], [0, 0, 1, 1], [], []>} : vector<8x16xf32>, vector<16x512xf32>, vector<8x512xf32> -> vector<8x512xf32>
    %106 = arith.addf %98, %105 : vector<8x512xf32>
    %c4_77 = arith.constant 4 : index
    %c0_78 = arith.constant 0 : index
    %107 = vector.load %arg1[%c4_77, %c0_78] : memref<9x512xf32, #tpu.memory_space<vmem>>, vector<1x512xf32>
    %108 = vector.broadcast %107 : vector<1x512xf32> to vector<16x512xf32>
    %109 = arith.mulf %75, %108 : vector<16x512xf32>
    %c4_79 = arith.constant 4 : index
    %c0_80 = arith.constant 0 : index
    %c0_81 = arith.constant 0 : index
    %110 = vector.load %arg4[%c4_79, %c0_80, %c0_81] : memref<9x8x16xf32, #tpu.memory_space<vmem>>, vector<1x8x16xf32>
    %111 = vector.shape_cast %110 : vector<1x8x16xf32> to vector<8x16xf32>
    %cst_82 = arith.constant dense<0.000000e+00> : vector<8x512xf32>
    %112 = tpu.matmul %111, %109, %cst_82 {dimension_numbers = #tpu.dot_dimension_numbers<[1], [0], [0], [1], [0, 0, 1, 1], [], []>} : vector<8x16xf32>, vector<16x512xf32>, vector<8x512xf32> -> vector<8x512xf32>
    %113 = arith.addf %106, %112 : vector<8x512xf32>
    %c511_i32_83 = arith.constant 511 : i32
    %114 = tpu.dynamic_rotate %75 by %c511_i32_83 dim 1 : vector<16x512xf32>, i32 -> vector<16x512xf32>
    %c5_84 = arith.constant 5 : index
    %c0_85 = arith.constant 0 : index
    %115 = vector.load %arg1[%c5_84, %c0_85] : memref<9x512xf32, #tpu.memory_space<vmem>>, vector<1x512xf32>
    %116 = vector.broadcast %115 : vector<1x512xf32> to vector<16x512xf32>
    %117 = arith.mulf %114, %116 : vector<16x512xf32>
    %c5_86 = arith.constant 5 : index
    %c0_87 = arith.constant 0 : index
    %c0_88 = arith.constant 0 : index
    %118 = vector.load %arg4[%c5_86, %c0_87, %c0_88] : memref<9x8x16xf32, #tpu.memory_space<vmem>>, vector<1x8x16xf32>
    %119 = vector.shape_cast %118 : vector<1x8x16xf32> to vector<8x16xf32>
    %cst_89 = arith.constant dense<0.000000e+00> : vector<8x512xf32>
    %120 = tpu.matmul %119, %117, %cst_89 {dimension_numbers = #tpu.dot_dimension_numbers<[1], [0], [0], [1], [0, 0, 1, 1], [], []>} : vector<8x16xf32>, vector<16x512xf32>, vector<8x512xf32> -> vector<8x512xf32>
    %121 = arith.addf %113, %120 : vector<8x512xf32>
    %c497_i32_90 = arith.constant 497 : i32
    %122 = tpu.dynamic_rotate %75 by %c497_i32_90 dim 1 : vector<16x512xf32>, i32 -> vector<16x512xf32>
    %c6_91 = arith.constant 6 : index
    %c0_92 = arith.constant 0 : index
    %123 = vector.load %arg1[%c6_91, %c0_92] : memref<9x512xf32, #tpu.memory_space<vmem>>, vector<1x512xf32>
    %124 = vector.broadcast %123 : vector<1x512xf32> to vector<16x512xf32>
    %125 = arith.mulf %122, %124 : vector<16x512xf32>
    %c6_93 = arith.constant 6 : index
    %c0_94 = arith.constant 0 : index
    %c0_95 = arith.constant 0 : index
    %126 = vector.load %arg4[%c6_93, %c0_94, %c0_95] : memref<9x8x16xf32, #tpu.memory_space<vmem>>, vector<1x8x16xf32>
    %127 = vector.shape_cast %126 : vector<1x8x16xf32> to vector<8x16xf32>
    %cst_96 = arith.constant dense<0.000000e+00> : vector<8x512xf32>
    %128 = tpu.matmul %127, %125, %cst_96 {dimension_numbers = #tpu.dot_dimension_numbers<[1], [0], [0], [1], [0, 0, 1, 1], [], []>} : vector<8x16xf32>, vector<16x512xf32>, vector<8x512xf32> -> vector<8x512xf32>
    %129 = arith.addf %121, %128 : vector<8x512xf32>
    %c496_i32_97 = arith.constant 496 : i32
    %130 = tpu.dynamic_rotate %75 by %c496_i32_97 dim 1 : vector<16x512xf32>, i32 -> vector<16x512xf32>
    %c7_98 = arith.constant 7 : index
    %c0_99 = arith.constant 0 : index
    %131 = vector.load %arg1[%c7_98, %c0_99] : memref<9x512xf32, #tpu.memory_space<vmem>>, vector<1x512xf32>
    %132 = vector.broadcast %131 : vector<1x512xf32> to vector<16x512xf32>
    %133 = arith.mulf %130, %132 : vector<16x512xf32>
    %c7_100 = arith.constant 7 : index
    %c0_101 = arith.constant 0 : index
    %c0_102 = arith.constant 0 : index
    %134 = vector.load %arg4[%c7_100, %c0_101, %c0_102] : memref<9x8x16xf32, #tpu.memory_space<vmem>>, vector<1x8x16xf32>
    %135 = vector.shape_cast %134 : vector<1x8x16xf32> to vector<8x16xf32>
    %cst_103 = arith.constant dense<0.000000e+00> : vector<8x512xf32>
    %136 = tpu.matmul %135, %133, %cst_103 {dimension_numbers = #tpu.dot_dimension_numbers<[1], [0], [0], [1], [0, 0, 1, 1], [], []>} : vector<8x16xf32>, vector<16x512xf32>, vector<8x512xf32> -> vector<8x512xf32>
    %137 = arith.addf %129, %136 : vector<8x512xf32>
    %c495_i32_104 = arith.constant 495 : i32
    %138 = tpu.dynamic_rotate %75 by %c495_i32_104 dim 1 : vector<16x512xf32>, i32 -> vector<16x512xf32>
    %c8_105 = arith.constant 8 : index
    %c0_106 = arith.constant 0 : index
    %139 = vector.load %arg1[%c8_105, %c0_106] : memref<9x512xf32, #tpu.memory_space<vmem>>, vector<1x512xf32>
    %140 = vector.broadcast %139 : vector<1x512xf32> to vector<16x512xf32>
    %141 = arith.mulf %138, %140 : vector<16x512xf32>
    %c8_107 = arith.constant 8 : index
    %c0_108 = arith.constant 0 : index
    %c0_109 = arith.constant 0 : index
    %142 = vector.load %arg4[%c8_107, %c0_108, %c0_109] : memref<9x8x16xf32, #tpu.memory_space<vmem>>, vector<1x8x16xf32>
    %143 = vector.shape_cast %142 : vector<1x8x16xf32> to vector<8x16xf32>
    %cst_110 = arith.constant dense<0.000000e+00> : vector<8x512xf32>
    %144 = tpu.matmul %143, %141, %cst_110 {dimension_numbers = #tpu.dot_dimension_numbers<[1], [0], [0], [1], [0, 0, 1, 1], [], []>} : vector<8x16xf32>, vector<16x512xf32>, vector<8x512xf32> -> vector<8x512xf32>
    %145 = arith.addf %137, %144 : vector<8x512xf32>
    %c0_111 = arith.constant 0 : index
    %c0_112 = arith.constant 0 : index
    %146 = vector.load %arg5[%c0_111, %c0_112] : memref<8x1xf32, #tpu.memory_space<vmem>>, vector<8x1xf32>
    %147 = vector.broadcast %146 : vector<8x1xf32> to vector<8x512xf32>
    %148 = arith.addf %145, %147 : vector<8x512xf32>
    %cst_113 = arith.constant 0.000000e+00 : f32
    %149 = vector.broadcast %cst_113 : f32 to vector<8x512xf32>
    %150 = arith.maximumf %148, %149 : vector<8x512xf32>
    %c0_114 = arith.constant 0 : index
    %c0_115 = arith.constant 0 : index
    %151 = vector.load %arg9[%c0_114, %c0_115] : memref<3x128xf32, #tpu.memory_space<vmem>>, vector<1x128xf32>
    %c1_116 = arith.constant 1 : index
    %c0_117 = arith.constant 0 : index
    %152 = vector.load %arg9[%c1_116, %c0_117] : memref<3x128xf32, #tpu.memory_space<vmem>>, vector<1x128xf32>
    %c2_118 = arith.constant 2 : index
    %c0_119 = arith.constant 0 : index
    %153 = vector.load %arg9[%c2_118, %c0_119] : memref<3x128xf32, #tpu.memory_space<vmem>>, vector<1x128xf32>
    %c0_120 = arith.constant 0 : index
    %c0_121 = arith.constant 0 : index
    %154 = vector.load %arg10[%c0_120, %c0_121] : memref<2x128xf32, #tpu.memory_space<vmem>>, vector<1x128xf32>
    %c1_122 = arith.constant 1 : index
    %c0_123 = arith.constant 0 : index
    %155 = vector.load %arg10[%c1_122, %c0_123] : memref<2x128xf32, #tpu.memory_space<vmem>>, vector<1x128xf32>
    %156 = arith.mulf %154, %151 : vector<1x128xf32>
    %157 = arith.mulf %155, %153 : vector<1x128xf32>
    %158 = arith.addf %156, %157 : vector<1x128xf32>
    %cst_124 = arith.constant 0.000000e+00 : f32
    %159 = vector.broadcast %cst_124 : f32 to vector<1x128xf32>
    %160 = arith.subf %159, %155 : vector<1x128xf32>
    %161 = arith.mulf %160, %151 : vector<1x128xf32>
    %162 = arith.mulf %154, %153 : vector<1x128xf32>
    %163 = arith.addf %161, %162 : vector<1x128xf32>
    %cst_125 = arith.constant 1.000000e+00 : f32
    %164 = vector.broadcast %cst_125 : f32 to vector<1x128xf32>
    %165 = arith.addf %163, %164 : vector<1x128xf32>
    %cst_126 = arith.constant 9.99999997E-7 : f32
    %166 = vector.broadcast %cst_126 : f32 to vector<1x128xf32>
    %167 = arith.maximumf %165, %166 : vector<1x128xf32>
    %168 = arith.divf %158, %167 : vector<1x128xf32>
    %cst_127 = arith.constant 1.000000e+00 : f32
    %169 = vector.broadcast %cst_127 : f32 to vector<1x128xf32>
    %170 = arith.addf %168, %169 : vector<1x128xf32>
    %cst_128 = arith.constant 5.000000e-01 : f32
    %171 = vector.broadcast %cst_128 : f32 to vector<1x128xf32>
    %172 = arith.mulf %170, %171 : vector<1x128xf32>
    %cst_129 = arith.constant 1.500000e+01 : f32
    %173 = vector.broadcast %cst_129 : f32 to vector<1x128xf32>
    %174 = arith.mulf %172, %173 : vector<1x128xf32>
    %175 = arith.divf %152, %167 : vector<1x128xf32>
    %cst_130 = arith.constant 1.000000e+00 : f32
    %176 = vector.broadcast %cst_130 : f32 to vector<1x128xf32>
    %177 = arith.addf %175, %176 : vector<1x128xf32>
    %cst_131 = arith.constant 5.000000e-01 : f32
    %178 = vector.broadcast %cst_131 : f32 to vector<1x128xf32>
    %179 = arith.mulf %177, %178 : vector<1x128xf32>
    %cst_132 = arith.constant 1.500000e+01 : f32
    %180 = vector.broadcast %cst_132 : f32 to vector<1x128xf32>
    %181 = arith.mulf %179, %180 : vector<1x128xf32>
    %c0_133 = arith.constant 0 : index
    %c0_134 = arith.constant 0 : index
    %182 = vector.load %arg6[%c0_133, %c0_134] : memref<512x1xf32, #tpu.memory_space<vmem>>, vector<512x1xf32>
    %c0_135 = arith.constant 0 : index
    %c0_136 = arith.constant 0 : index
    %183 = vector.load %arg7[%c0_135, %c0_136] : memref<512x1xf32, #tpu.memory_space<vmem>>, vector<512x1xf32>
    %c0_137 = arith.constant 0 : index
    %c0_138 = arith.constant 0 : index
    %184 = vector.load %arg8[%c0_137, %c0_138] : memref<512x1xf32, #tpu.memory_space<vmem>>, vector<512x1xf32>
    %185 = vector.broadcast %181 : vector<1x128xf32> to vector<512x128xf32>
    %186 = vector.broadcast %182 : vector<512x1xf32> to vector<512x128xf32>
    %187 = arith.subf %185, %186 : vector<512x128xf32>
    %188 = math.absf %187 : vector<512x128xf32>
    %cst_139 = arith.constant 1.000000e+00 : f32
    %189 = vector.broadcast %cst_139 : f32 to vector<512x128xf32>
    %190 = arith.subf %189, %188 : vector<512x128xf32>
    %cst_140 = arith.constant 0.000000e+00 : f32
    %191 = vector.broadcast %cst_140 : f32 to vector<512x128xf32>
    %192 = arith.maximumf %191, %190 : vector<512x128xf32>
    %193 = vector.broadcast %174 : vector<1x128xf32> to vector<512x128xf32>
    %194 = vector.broadcast %183 : vector<512x1xf32> to vector<512x128xf32>
    %195 = arith.subf %193, %194 : vector<512x128xf32>
    %196 = math.absf %195 : vector<512x128xf32>
    %cst_141 = arith.constant 1.000000e+00 : f32
    %197 = vector.broadcast %cst_141 : f32 to vector<512x128xf32>
    %198 = arith.subf %197, %196 : vector<512x128xf32>
    %cst_142 = arith.constant 0.000000e+00 : f32
    %199 = vector.broadcast %cst_142 : f32 to vector<512x128xf32>
    %200 = arith.maximumf %199, %198 : vector<512x128xf32>
    %201 = arith.mulf %192, %200 : vector<512x128xf32>
    %c0_143 = arith.constant 0 : index
    %c0_144 = arith.constant 0 : index
    %202 = vector.load %arg11[%c0_143, %c0_144] : memref<1x128xf32, #tpu.memory_space<vmem>>, vector<1x128xf32>
    %203 = vector.broadcast %184 : vector<512x1xf32> to vector<512x128xf32>
    %204 = vector.broadcast %202 : vector<1x128xf32> to vector<512x128xf32>
    %205 = arith.cmpf oeq, %203, %204 : vector<512x128xf32>
    %cst_145 = arith.constant 0.000000e+00 : f32
    %206 = vector.broadcast %cst_145 : f32 to vector<512x128xf32>
    %207 = arith.select %205, %201, %206 : vector<512x128xi1>, vector<512x128xf32>
    %cst_146 = arith.constant dense<0.000000e+00> : vector<8x128xf32>
    %208 = tpu.matmul %150, %207, %cst_146 {dimension_numbers = #tpu.dot_dimension_numbers<[1], [0], [0], [1], [0, 0, 1, 1], [], []>} : vector<8x512xf32>, vector<512x128xf32>, vector<8x128xf32> -> vector<8x128xf32>
    %c0_147 = arith.constant 0 : index
    %c0_148 = arith.constant 0 : index
    %209 = vector.load %arg13[%c0_147, %c0_148] : memref<32x8xf32, #tpu.memory_space<vmem>>, vector<32x8xf32>
    %cst_149 = arith.constant dense<0.000000e+00> : vector<32x128xf32>
    %210 = tpu.matmul %209, %208, %cst_149 {dimension_numbers = #tpu.dot_dimension_numbers<[1], [0], [0], [1], [0, 0, 1, 1], [], []>} : vector<32x8xf32>, vector<8x128xf32>, vector<32x128xf32> -> vector<32x128xf32>
    %c0_150 = arith.constant 0 : index
    %c0_151 = arith.constant 0 : index
    %211 = vector.load %arg14[%c0_150, %c0_151] : memref<32x8xf32, #tpu.memory_space<vmem>>, vector<32x8xf32>
    %c0_152 = arith.constant 0 : index
    %c0_153 = arith.constant 0 : index
    %212 = vector.load %arg12[%c0_152, %c0_153] : memref<8x128xf32, #tpu.memory_space<vmem>>, vector<8x128xf32>
    %cst_154 = arith.constant dense<0.000000e+00> : vector<32x128xf32>
    %213 = tpu.matmul %211, %212, %cst_154 {dimension_numbers = #tpu.dot_dimension_numbers<[1], [0], [0], [1], [0, 0, 1, 1], [], []>} : vector<32x8xf32>, vector<8x128xf32>, vector<32x128xf32> -> vector<32x128xf32>
    %214 = arith.addf %210, %213 : vector<32x128xf32>
    %c0_155 = arith.constant 0 : index
    %c0_156 = arith.constant 0 : index
    %215 = vector.load %arg15[%c0_155, %c0_156] : memref<32x1xf32, #tpu.memory_space<vmem>>, vector<32x1xf32>
    %216 = vector.broadcast %215 : vector<32x1xf32> to vector<32x128xf32>
    %217 = arith.addf %214, %216 : vector<32x128xf32>
    %cst_157 = arith.constant 0.000000e+00 : f32
    %218 = vector.broadcast %cst_157 : f32 to vector<32x128xf32>
    %219 = arith.maximumf %217, %218 : vector<32x128xf32>
    %c0_158 = arith.constant 0 : index
    %c0_159 = arith.constant 0 : index
    %220 = vector.load %arg16[%c0_158, %c0_159] : memref<32x32xf32, #tpu.memory_space<vmem>>, vector<32x32xf32>
    %cst_160 = arith.constant dense<0.000000e+00> : vector<32x128xf32>
    %221 = tpu.matmul %220, %219, %cst_160 {dimension_numbers = #tpu.dot_dimension_numbers<[1], [0], [0], [1], [0, 0, 1, 1], [], []>} : vector<32x32xf32>, vector<32x128xf32>, vector<32x128xf32> -> vector<32x128xf32>
    %c0_161 = arith.constant 0 : index
    %c0_162 = arith.constant 0 : index
    %222 = vector.load %arg17[%c0_161, %c0_162] : memref<32x1xf32, #tpu.memory_space<vmem>>, vector<32x1xf32>
    %223 = vector.broadcast %222 : vector<32x1xf32> to vector<32x128xf32>
    %224 = arith.addf %221, %223 : vector<32x128xf32>
    %cst_163 = arith.constant 0.000000e+00 : f32
    %225 = vector.broadcast %cst_163 : f32 to vector<32x128xf32>
    %226 = arith.maximumf %224, %225 : vector<32x128xf32>
    %c0_164 = arith.constant 0 : index
    %c0_165 = arith.constant 0 : index
    %227 = vector.load %arg18[%c0_164, %c0_165] : memref<1x32xf32, #tpu.memory_space<vmem>>, vector<1x32xf32>
    %cst_166 = arith.constant dense<0.000000e+00> : vector<1x128xf32>
    %228 = tpu.matmul %227, %226, %cst_166 {dimension_numbers = #tpu.dot_dimension_numbers<[1], [0], [0], [1], [0, 0, 1, 1], [], []>} : vector<1x32xf32>, vector<32x128xf32>, vector<1x128xf32> -> vector<1x128xf32>
    %c0_167 = arith.constant 0 : index
    %c0_168 = arith.constant 0 : index
    %229 = vector.load %arg19[%c0_167, %c0_168] : memref<1x1xf32, #tpu.memory_space<vmem>>, vector<1x1xf32>
    %230 = vector.broadcast %229 : vector<1x1xf32> to vector<1x128xf32>
    %231 = arith.addf %228, %230 : vector<1x128xf32>
    %232 = arith.negf %231 : vector<1x128xf32>
    %233 = math.exp %232 : vector<1x128xf32>
    %cst_169 = arith.constant 1.000000e+00 : f32
    %234 = vector.broadcast %cst_169 : f32 to vector<1x128xf32>
    %235 = arith.addf %234, %233 : vector<1x128xf32>
    %236 = arith.divf %234, %235 : vector<1x128xf32>
    %c0_170 = arith.constant 0 : index
    %c0_171 = arith.constant 0 : index
    %237 = vector.load %arg20[%c0_170, %c0_171] : memref<1x128xf32, #tpu.memory_space<vmem>>, vector<1x128xf32>
    tpu.vector_store %arg20[%c0_170, %c0_171], %236 {strides = array<i32>} : memref<1x128xf32, #tpu.memory_space<vmem>>, vector<1x128xf32>,
    %c0_172 = arith.constant 0 : index
    %c0_173 = arith.constant 0 : index
    %238 = vector.load %arg21[%c0_172, %c0_173] : memref<8x128xf32, #tpu.memory_space<vmem>>, vector<8x128xf32>
    tpu.vector_store %arg21[%c0_172, %c0_173], %208 {strides = array<i32>} : memref<8x128xf32, #tpu.memory_space<vmem>>, vector<8x128xf32>,
    return
  }
}

</mosaic_0001>

<bundles_post_ra>
// kernel: occnet_forward.1
= control target key start
LH: loop header
LB: loop body
LE: loop exit
PB: predicated region body
PF: predicated region fallthrough
CT: control target
= control target key end

     0   :  { %v6856_v2 = vmov 0   ;;  %s6857_s28 = smov 16   ;;  %v9571_v5 = vmov 0.0   ;;  %s6859_s29 = smov 17   ;;  %v85_v28 = vlaneseq  ;;  %vm170_vm1 = vcmask 1042432   ;;  %s9533_s0 = inlined_call_operand.vmem [shape: f32[3,512], index: 0, kind: input, shape index: {}]   ;;  %s9534_s3 = inlined_call_operand.vmem [shape: f32[16,1], index: 3, kind: input, shape index: {}]   ;;  %s9535_s6 = inlined_call_operand.vmem [shape: f32[512,1], index: 6, kind: input, shape index: {}]   ;;  %s9536_s7 = inlined_call_operand.vmem [shape: f32[512,1], index: 7, kind: input, shape index: {}]   ;;  %s9537_s1 = inlined_call_operand.vmem [shape: f32[9,512], index: 1, kind: input, shape index: {}]   ;;  %s9538_s2 = inlined_call_operand.vmem [shape: f32[9,16,3], index: 2, kind: input, shape index: {}]   ;;  %s9539_s8 = inlined_call_operand.vmem [shape: f32[512,1], index: 8, kind: input, shape index: {}]   ;;  %s9540_s10 = inlined_call_operand.vmem [shape: f32[2,128], index: 10, kind: input, shape index: {}]   ;;  %s9541_s9 = inlined_call_operand.vmem [shape: f32[3,128], index: 9, kind: input, shape index: {}]   ;;  %s9542_s4 = inlined_call_operand.vmem [shape: f32[9,8,16], index: 4, kind: input, shape index: {}]   ;;  %s9543_s19 = inlined_call_operand.<no memory space> [shape: f32[1,1], index: 19, kind: input, shape index: {}]   ;;  %s9544_s11 = inlined_call_operand.vmem [shape: f32[1,128], index: 11, kind: input, shape index: {}]   ;;  %s9545_s5 = inlined_call_operand.vmem [shape: f32[8,1], index: 5, kind: input, shape index: {}]   ;;  %s9546_s15 = inlined_call_operand.vmem [shape: f32[32,1], index: 15, kind: input, shape index: {}]   ;;  %s9547_s17 = inlined_call_operand.vmem [shape: f32[32,1], index: 17, kind: input, shape index: {}]   ;;  %s9548_s12 = inlined_call_operand.vmem [shape: f32[8,128], index: 12, kind: input, shape index: {}]   ;;  %s9549_s14 = inlined_call_operand.vmem [shape: f32[32,8], index: 14, kind: input, shape index: {}]   ;;  %s9550_s13 = inlined_call_operand.vmem [shape: f32[32,8], index: 13, kind: input, shape index: {}]   ;;  %s9551_s21 = inlined_call_operand.vmem [shape: f32[8,128], index: 21, kind: output, shape index: {1}]   ;;  %s9552_s16 = inlined_call_operand.vmem [shape: f32[32,32], index: 16, kind: input, shape index: {}]   ;;  %s9553_s18 = inlined_call_operand.vmem [shape: f32[1,32], index: 18, kind: input, shape index: {}]   ;;  %s9554_s20 = inlined_call_operand.vmem [shape: f32[1,128], index: 20, kind: output, shape index: {0}]  }
   0x1   :  { %9653 = sst [smem:[#allocation113_spill]] %s9533_s0  ;;  %6846 = vset.pattern.permute.xlu1 %v6856_v2  ;;  %6845 = vset.pattern.permute.xlu0 %v6856_v2  ;;  %s6860_s0 = smov 15   ;;  %vm163_vm3 = vcmask 23552   ;;  %vm2150_vm10 = vcmask 130048  }
   0x2   :  { %9654 = sst [smem:[#allocation114_spill]] %s9534_s3  ;;  %s9659_s26 = sld [smem:[#allocation113_spill]]  ;;  %247 = vmatprep.mubr.f32.mxu0 %v9571_v5  ;;  %324 = vmatprep.mubr.f32.mxu1 %v9571_v5  ;;  %v95_v31 = vshrl.u32 %v85_v28, 7  ;;  %v7120_v34 = vand.u32 127, %v85_v28 }
   0x3   :  { %9655 = sst [smem:[#allocation115_spill]] %s9535_s6  ;;  %s9565_s30 = smov 127  }
   0x4   :  { %9656 = sst [smem:[#allocation116_spill]] %s9536_s7  ;;  %s9561_s22 = smov 112   ;;  %v7122_v35 = vsub.s32 3, %v95_v31  ;;  %v7124_v36 = vsub.s32 0, %v95_v31  ;;  %v7129_v38 = vsub.s32 1, %v95_v31  ;;  %v7131_v39 = vsub.s32 2, %v95_v31 }
   0x5   :  { %9657 = sst [smem:[#allocation117_spill]] %s9537_s1  ;;  %s9569_s1 = smov 1   ;;  %vm128_vm0 = vcmp.lt.s32.totalorder %v7120_v34, 16  ;;  %vm87_vm2 = vcmp.lt.s32.totalorder %v7120_v34, 17  ;;  %vm517_vm4 = vcmp.lt.s32.totalorder %v7120_v34, 15  ;;  %vm740_vm5 = vcmp.lt.s32.totalorder %v7120_v34, 1 }
   0x6   :  { %9658 = sst [smem:[#allocation118_spill]] %s9538_s2  ;;  %s9563_s2 = smov 113   ;;  %vm1171_vm6 = vcmp.lt.s32.totalorder %v7120_v34, 127  ;;  %vm1394_vm7 = vcmp.lt.s32.totalorder %v7120_v34, 113  ;;  %vm1617_vm8 = vcmp.lt.s32.totalorder %v7120_v34, 112  ;;  %vm1840_vm9 = vcmp.lt.s32.totalorder %v7120_v34, 111 }
   0x7   :  { %s9567_s23 = smov 111   ;;  %s9660_s6 = sld [smem:[#allocation114_spill]] }
   0x8   :  { %v6981_v0 = vld [vmem:[%s9659_s26 + $0x8] sm:$0x77]  ;;  %v6986_v1 = vld [vmem:[%s9659_s26] sm:$0x77]  ;;  %s9662_s26 = sld [smem:[#allocation116_spill]]  ;;  %s9663_s27 = sld [smem:[#allocation117_spill]] }
   0x9   :  { %124 = vrot.lane.b32.xlu1 %v6981_v0, %s6857_s28  ;;  %120 = vrot.lane.b32.xlu0 %v6986_v1, %s6857_s28  ;;  %v74_v3 = vcombine.high %v6981_v0, %v6981_v0  ;;  %v73_v4 = vcombine.high %v6986_v1, %v6986_v1  ;;  %s9725_s7 = smov 1  }
   0xd   :  { %126 = vrot.lane.b32.xlu1 %v74_v3, %s6857_s28  ;;  %122 = vrot.lane.b32.xlu0 %v73_v4, %s6857_s28  ;;  %v2056_v6 = vld [vmem:[%s9660_s6 + $0x8] sm:$0xff]  ;;  %v2055_v7 = vld [vmem:[%s9660_s6] sm:$0xff] }
   0xe   :  { %v3819_v12 = vld [vmem:[%s9662_s26 + $0x80] sm:$0xff]  ;;  %v3820_v13 = vld [vmem:[%s9662_s26 + $0x88] sm:$0xff]  ;;  %v3821_v29 = vld [vmem:[%s9662_s26 + $0x90] sm:$0xff] }
   0xf   :  { %v3851_v14 = vld [vmem:[%s9662_s26 + $0x180] sm:$0xff]  ;;  %v3852_v15 = vld [vmem:[%s9662_s26 + $0x188] sm:$0xff]  ;;  %v3822_v30 = vld [vmem:[%s9662_s26 + $0x98] sm:$0xff] }
  0x10   :  { %v3803_v20 = vld [vmem:[%s9662_s26] sm:$0xff]  ;;  %v3804_v21 = vld [vmem:[%s9662_s26 + $0x8] sm:$0xff]  ;;  %v3853_v32 = vld [vmem:[%s9662_s26 + $0x190] sm:$0xff] }
  0x11   :  { %79 = vrot.lane.b32.xlu1 %v73_v4, %s6859_s29  ;;  %77 = vrot.lane.b32.xlu0 %v6986_v1, %s6859_s29  ;;  %v3835_v22 = vld [vmem:[%s9662_s26 + $0x100] sm:$0xff]  ;;  %v3836_v23 = vld [vmem:[%s9662_s26 + $0x108] sm:$0xff] }
  0x12   :  { %v3854_v33 = vld [vmem:[%s9662_s26 + $0x198] sm:$0xff] }
  0x13   :  { %v6216_v37 = vld [vmem:[%s9663_s27 + $0x1] ss:$8 sm:$0xf]  ;;  %v92_v45 = vld [vmem:[%s9663_s27] ss:$8 sm:$0xf] }
  0x14   :  { %v7140_v44 = vrot.slane %v6216_v37, %v7122_v35  ;;  %v7147_v46 = vrot.slane %v6216_v37, %v7129_v38  ;;  %v7150_v47 = vrot.slane %v6216_v37, %v7124_v36  ;;  %v7153_v48 = vrot.slane %v6216_v37, %v7131_v39 }
  0x15   :  { %83 = vrot.lane.b32.xlu1 %v74_v3, %s6859_s29  ;;  %81 = vrot.lane.b32.xlu0 %v6981_v0, %s6859_s29  ;;  %v7160_v52 = vrot.slane %v92_v45, %v7129_v38 }
  0x19   :  { %511 = vrot.lane.b32.xlu1 %v73_v4, %s6860_s0  ;;  %509 = vrot.lane.b32.xlu0 %v6986_v1, %s6860_s0 }
  0x1d   :  { %515 = vrot.lane.b32.xlu1 %v74_v3, %s6860_s0  ;;  %513 = vrot.lane.b32.xlu0 %v6981_v0, %s6860_s0 }
  0x21   :  { %734 = vrot.lane.b32.xlu1 %v73_v4, %s9569_s1  ;;  %732 = vrot.lane.b32.xlu0 %v6986_v1, %s9569_s1 }
  0x25   :  { %738 = vrot.lane.b32.xlu1 %v74_v3, %s9569_s1  ;;  %736 = vrot.lane.b32.xlu0 %v6981_v0, %s9569_s1  ;;  %s9664_s1 = sld [smem:[#allocation118_spill]] }
  0x29   :  { %1163 = vrot.lane.b32.xlu0 %v6986_v1, %s9565_s30  ;;  %1165 = vrot.lane.b32.xlu1 %v73_v4, %s9565_s30 }
  0x2b   :  { %v6217_v62 = vld [vmem:[%s9664_s1 + $0x10] sm:$0xff] }
  0x2d   :  { %1167 = vrot.lane.b32.xlu0 %v6981_v0, %s9565_s30  ;;  %1169 = vrot.lane.b32.xlu1 %v74_v3, %s9565_s30  ;;  %s9732_s30 = smov 113  }
  0x31   :  { %1386 = vrot.lane.b32.xlu0 %v6986_v1, %s9563_s2  ;;  %1388 = vrot.lane.b32.xlu1 %v73_v4, %s9563_s2 }
  0x35   :  { %1390 = vrot.lane.b32.xlu0 %v6981_v0, %s9563_s2  ;;  %1392 = vrot.lane.b32.xlu1 %v74_v3, %s9563_s2  ;;  %s9736_s2 = smov 112  }
  0x39   :  { %1609 = vrot.lane.b32.xlu0 %v6986_v1, %s9561_s22  ;;  %1611 = vrot.lane.b32.xlu1 %v73_v4, %s9561_s22 }
  0x3d   :  { %1613 = vrot.lane.b32.xlu0 %v6981_v0, %s9561_s22  ;;  %1615 = vrot.lane.b32.xlu1 %v74_v3, %s9561_s22  ;;  %s9661_s22 = sld [smem:[#allocation115_spill]] }
  0x41   :  { %1832 = vrot.lane.b32.xlu0 %v6986_v1, %s9567_s23  ;;  %1834 = vrot.lane.b32.xlu1 %v73_v4, %s9567_s23  ;;  %v7187_v4 = vrot.slane %v92_v45, %v7124_v36 }
  0x43   :  { %v3755_v8 = vld [vmem:[%s9661_s22 + $0x80] sm:$0xff]  ;;  %v3756_v9 = vld [vmem:[%s9661_s22 + $0x88] sm:$0xff]  ;;  %v3757_v24 = vld [vmem:[%s9661_s22 + $0x90] sm:$0xff] }
  0x44   :  { %v3787_v10 = vld [vmem:[%s9661_s22 + $0x180] sm:$0xff]  ;;  %v3788_v11 = vld [vmem:[%s9661_s22 + $0x188] sm:$0xff]  ;;  %v3758_v25 = vld [vmem:[%s9661_s22 + $0x98] sm:$0xff] }
  0x45   :  { %1836 = vrot.lane.b32.xlu0 %v6981_v0, %s9567_s23  ;;  %1838 = vrot.lane.b32.xlu1 %v74_v3, %s9567_s23  ;;  %v3739_v16 = vld [vmem:[%s9661_s22] sm:$0xff]  ;;  %v3740_v17 = vld [vmem:[%s9661_s22 + $0x8] sm:$0xff]  ;;  %s9740_s23 = smov 111  }
  0x46   :  { %v3771_v18 = vld [vmem:[%s9661_s22 + $0x100] sm:$0xff]  ;;  %v3772_v19 = vld [vmem:[%s9661_s22 + $0x108] sm:$0xff]  ;;  %v3789_v26 = vld [vmem:[%s9661_s22 + $0x190] sm:$0xff] }
  0x47   :  { %v3790_v27 = vld [vmem:[%s9661_s22 + $0x198] sm:$0xff]  ;;  %v3741_v40 = vld [vmem:[%s9661_s22 + $0x10] sm:$0xff]  ;;  %v3759_v37 = vld [vmem:[%s9661_s22 + $0xa0] sm:$0xff] }
  0x48   :  { %v3742_v41 = vld [vmem:[%s9661_s22 + $0x18] sm:$0xff]  ;;  %v3773_v49 = vld [vmem:[%s9661_s22 + $0x110] sm:$0xff] }
  0x49   :  { %2064 = vperm.xlu1 %6846, %v2056_v6   ;;  %2059 = vperm.xlu0 %6845, %v2055_v7   ;;  %v3774_v53 = vld [vmem:[%s9661_s22 + $0x118] sm:$0xff]  ;;  %v3805_v6 = vld [vmem:[%s9662_s26 + $0x10] sm:$0xff] }
  0x4d   :  { %4017 = vperm.xlu1 %6846, %v3755_v8   ;;  %4022 = vperm.xlu0 %6845, %v3756_v9   ;;  %v7196_v8 = vrot.slane %v92_v45, %v7131_v39  ;;  %v7199_v9 = vrot.slane %v92_v45, %v7122_v35 }
  0x51   :  { %4177 = vperm.xlu1 %6846, %v3787_v10   ;;  %4182 = vperm.xlu0 %6845, %v3788_v11   ;;  %v6235_v10 = vld [vmem:[%s9663_s27 + $0x2] ss:$8 sm:$0xf] }
  0x52   :  { %v3806_v11 = vld [vmem:[%s9662_s26 + $0x18] sm:$0xff]  ;;  %v7245_v28 = vrot.slane %v6235_v10, %v7124_v36  ;;  %v7254_v31 = vrot.slane %v6235_v10, %v7131_v39 }
  0x55   :  { %4597 = vperm.xlu1 %6846, %v3819_v12   ;;  %4602 = vperm.xlu0 %6845, %v3820_v13   ;;  %v6218_v12 = vld [vmem:[%s9664_s1 + $0x18] sm:$0xff] }
  0x59   :  { %4757 = vperm.xlu1 %6846, %v3851_v14   ;;  %4762 = vperm.xlu0 %6845, %v3852_v15  }
  0x5d   :  { %3937 = vperm.xlu1 %6846, %v3739_v16   ;;  %3942 = vperm.xlu0 %6845, %v3740_v17  }
  0x61   :  { %4097 = vperm.xlu1 %6846, %v3771_v18   ;;  %4102 = vperm.xlu0 %6845, %v3772_v19   ;;  %v7220_v18 = vrot.slane %v6235_v10, %v7129_v38 }
  0x65   :  { %4517 = vperm.xlu1 %6846, %v3803_v20   ;;  %4522 = vperm.xlu0 %6845, %v3804_v21  }
  0x69   :  { %4677 = vperm.xlu1 %6846, %v3835_v22   ;;  %4682 = vperm.xlu0 %6845, %v3836_v23   ;;  %v3837_v22 = vld [vmem:[%s9662_s26 + $0x110] sm:$0xff]  ;;  %v118_v23 = vld [vmem:[%s9664_s1] sm:$0xff] }
  0x6d   :  { %4027 = vperm.xlu1 %6846, %v3757_v24   ;;  %4032 = vperm.xlu0 %6845, %v3758_v25  }
  0x71   :  { %4187 = vperm.xlu1 %6846, %v3789_v26   ;;  %4192 = vperm.xlu0 %6845, %v3790_v27   ;;  %v6257_v26 = vld [vmem:[%s9663_s27 + $0x4] ss:$8 sm:$0xf] }
  0x72   :  { %v7275_v45 = vrot.slane %v6257_v26, %v7129_v38 }
  0x75   :  { %4607 = vperm.xlu1 %6846, %v3821_v29   ;;  %4612 = vperm.xlu0 %6845, %v3822_v30   ;;  %v3838_v29 = vld [vmem:[%s9662_s26 + $0x118] sm:$0xff] }
  0x79   :  { %4767 = vperm.xlu1 %6846, %v3853_v32   ;;  %4772 = vperm.xlu0 %6845, %v3854_v33   ;;  %v7257_v32 = vrot.slane %v6235_v10, %v7122_v35  ;;  %v6246_v33 = vld [vmem:[%s9663_s27 + $0x3] ss:$8 sm:$0xf] }
  0x7b   :  { %v125_v42 = vpop.permute.xlu1 %124  ;;  %v121_v43 = vpop.permute.xlu0 %120 }
  0x7d   :  { %3947 = vperm.xlu1 %6846, %v3741_v40   ;;  %3952 = vperm.xlu0 %6845, %v3742_v41   ;;  %v119_v40 = vld [vmem:[%s9664_s1 + $0x8] sm:$0xff]  ;;  %v7271_v41 = vrot.slane %v6257_v26, %v7124_v36 }
  0x7f   :  { %v127_v50 = vpop.permute.xlu1 %126  ;;  %v123_v51 = vpop.permute.xlu0 %122 }
  0x80   :  { %v132_v54 = vsel %vm128_vm0, %v127_v50, %v121_v43  ;;  %v130_v55 = vsel %vm128_vm0, %v123_v51, %v125_v42  ;;  %v129_v56 = vsel %vm128_vm0, %v125_v42, %v127_v50  ;;  %v131_v57 = vsel %vm128_vm0, %v121_v43, %v123_v51 }
  0x81   :  { %v159_v58 = vmul.f32 %v7140_v44, %v129_v56  ;;  %v157_v59 = vmul.f32 %v7147_v46, %v131_v57  ;;  %v156_v60 = vmul.f32 %v7150_v47, %v132_v54  ;;  %v158_v61 = vmul.f32 %v7153_v48, %v130_v55  ;;  %4107 = vperm.xlu1 %6846, %v3773_v49  }
  0x82   :  { %4112 = vperm.xlu0 %6845, %v3774_v53   ;;  %v7278_v49 = vrot.slane %v6257_v26, %v7131_v39  ;;  %v7281_v50 = vrot.slane %v6257_v26, %v7122_v35  ;;  %v7290_v55 = vrot.slane %v6246_v33, %v7129_v38  ;;  %v6268_v26 = vld [vmem:[%s9663_s27 + $0x5] ss:$8 sm:$0xf] }
  0x83   :  { %6223 = vmatprep.subr.msk.mxu1 %vm170_vm1, %v159_v58  ;;  %v80_v63 = vpop.permute.xlu1 %79  ;;  %6219 = vmatprep.subr.msk.mxu0 %vm170_vm1, %v157_v59  ;;  %v78_v2 = vpop.permute.xlu0 %77  ;;  %v3791_v59 = vld [vmem:[%s9661_s22 + $0x1a0] sm:$0xff] }
  0x84   :  { %v90_v3 = vsel %vm87_vm2, %v78_v2, %v80_v63  ;;  %6220 = vmatpush1.msk.msra.mxu0 %vm170_vm1, %v156_v60  ;;  %6224 = vmatpush1.msk.msra.mxu1 %vm170_vm1, %v158_v61  ;;  %9665 = vst [vmem:[#allocation3_spill] sm:$0xff] %v7281_v50  ;;  %v6236_v60 = vld [vmem:[%s9664_s1 + $0x20] sm:$0xff] }
  0x85   :  { %v115_v7 = vmul.f32 %v7160_v52, %v90_v3  ;;  %6221 = vmatmul.mubr.msk.f32.vlgmr.msra.gmra.mrb[0].mxu0 %vm163_vm3, %v6217_v62  ;;  %6225 = vmatmul.mubr.msk.f32.vlgmr.msra.gmra.mrb[0].mxu1 %vm163_vm3, %v6217_v62 }
  0x86   :  { %253 = vmatprep.mubr.f32.mxu0 %v9571_v5  ;;  %330 = vmatprep.mubr.f32.mxu1 %v9571_v5 }
  0x87   :  { %v84_v13 = vpop.permute.xlu1 %83  ;;  %v82_v14 = vpop.permute.xlu0 %81  ;;  %6227 = vmatprep.subr.msk.mxu0 %vm170_vm1, %v115_v7  ;;  %4527 = vperm.xlu1 %6846, %v3805_v6   ;;  %v7316_v6 = vrot.slane %v6246_v33, %v7124_v36  ;;  %v3760_v7 = vld [vmem:[%s9661_s22 + $0xa8] sm:$0xff] }
  0x88   :  { %v91_v15 = vsel %vm87_vm2, %v84_v13, %v78_v2  ;;  %v88_v16 = vsel %vm87_vm2, %v82_v14, %v84_v13  ;;  %v89_v17 = vsel %vm87_vm2, %v80_v63, %v82_v14  ;;  %4532 = vperm.xlu0 %6845, %v3806_v11   ;;  %v974_v63 = vcombine.low %v7271_v41, %v7275_v45  ;;  %v3823_v13 = vld [vmem:[%s9662_s26 + $0xa0] sm:$0xff]  ;;  %v6237_v14 = vld [vmem:[%s9664_s1 + $0x28] sm:$0xff] }
  0x89   :  { %v114_v19 = vmul.f32 %v7187_v4, %v91_v15  ;;  %v116_v20 = vmul.f32 %v7196_v8, %v89_v17  ;;  %v117_v21 = vmul.f32 %v7199_v9, %v88_v16  ;;  %6222 = vmatmul.mubr.msk.f32.gmra.mrb[2].mxu0 %vm163_vm3, %v6218_v12  ;;  %6226 = vmatmul.mubr.msk.f32.gmra.mrb[2].mxu1 %vm163_vm3, %v6218_v12 }
  0x8a   :  { %419 = vmatprep.mubr.f32.mxu0 %v9571_v5  ;;  %496 = vmatprep.mubr.f32.mxu1 %v9571_v5  ;;  %v975_v2 = vcombine.low %v7278_v49, %v7281_v50  ;;  %9666 = vst [vmem:[#allocation4_spill] sm:$0xff] %v7316_v6  ;;  %v7325_v11 = vrot.slane %v6246_v33, %v7131_v39 }
  0x8b   :  { %v512_v24 = vpop.permute.xlu1 %511  ;;  %6228 = vmatpush1.msk.msra.mxu0 %vm170_vm1, %v114_v19  ;;  %6231 = vmatprep.subr.msk.mxu1 %vm170_vm1, %v117_v21  ;;  %v510_v25 = vpop.permute.xlu0 %509  ;;  %v7328_v12 = vrot.slane %v6246_v33, %v7122_v35  ;;  %v978_v17 = vmul.f32 %v974_v63, %v6986_v1  ;;  %v6247_v1 = vld [vmem:[%s9664_s1 + $0x30] sm:$0xff] }
  0x8c   :  { %v520_v27 = vsel %vm517_vm4, %v510_v25, %v512_v24  ;;  %6232 = vmatpush1.msk.msra.mxu1 %vm170_vm1, %v116_v20  ;;  %4687 = vperm.xlu1 %6846, %v3837_v22   ;;  %9667 = vst [vmem:[#allocation5_spill] sm:$0xff] %v7325_v11  ;;  %v979_v19 = vmul.f32 %v975_v2, %v6981_v0  ;;  %v3792_v0 = vld [vmem:[%s9661_s22 + $0x1a8] sm:$0xff] }
  0x8d   :  { %v546_v30 = vmul.f32 %v7220_v18, %v520_v27  ;;  %6229 = vmatmul.mubr.msk.f32.vlgmr.msra.gmra.mrb[0].mxu0 %vm163_vm3, %v118_v23  ;;  %6233 = vmatmul.mubr.msk.f32.vlgmr.msra.gmra.mrb[0].mxu1 %vm163_vm3, %v118_v23  ;;  %9668 = vst [vmem:[#allocation6_spill] sm:$0xff] %v7328_v12 }
  0x8e   :  { %425 = vmatprep.mubr.f32.mxu0 %v9571_v5  ;;  %502 = vmatprep.mubr.f32.mxu1 %v9571_v5  ;;  %v986_v33 = vcombine.high %v979_v19, %v979_v19 }
  0x8f   :  { %v516_v42 = vpop.permute.xlu1 %515  ;;  %v514_v43 = vpop.permute.xlu0 %513  ;;  %6238 = vmatprep.subr.msk.mxu0 %vm170_vm1, %v546_v30  ;;  %4692 = vperm.xlu0 %6845, %v3838_v29   ;;  %v985_v30 = vcombine.high %v978_v17, %v978_v17 }
  0x90   :  { %v521_v51 = vsel %vm517_vm4, %v516_v42, %v510_v25  ;;  %v518_v53 = vsel %vm517_vm4, %v514_v43, %v516_v42  ;;  %v519_v54 = vsel %vm517_vm4, %v512_v24, %v514_v43  ;;  %4037 = vperm.xlu1 %6846, %v3759_v37   ;;  %v7370_v37 = vrot.slane %v6268_v26, %v7129_v38  ;;  %v6248_v43 = vld [vmem:[%s9664_s1 + $0x38] sm:$0xff] }
  0x91   :  { %v545_v56 = vmul.f32 %v7245_v28, %v521_v51  ;;  %v547_v57 = vmul.f32 %v7254_v31, %v519_v54  ;;  %v548_v58 = vmul.f32 %v7257_v32, %v518_v53  ;;  %6230 = vmatmul.mubr.msk.f32.gmra.mrb[2].mxu0 %vm163_vm3, %v119_v40  ;;  %6234 = vmatmul.mubr.msk.f32.gmra.mrb[2].mxu1 %vm163_vm3, %v119_v40 }
  0x92   :  { %634 = vmatprep.mubr.f32.mxu0 %v9571_v5  ;;  %711 = vmatprep.mubr.f32.mxu1 %v9571_v5  ;;  %9669 = vst [vmem:[#allocation7_spill] sm:$0xff] %v7370_v37  ;;  %v7373_v40 = vrot.slane %v6268_v26, %v7122_v35  ;;  %v7376_v42 = vrot.slane %v6268_v26, %v7124_v36 }
  0x93   :  { %v735_v61 = vpop.permute.xlu1 %734  ;;  %6239 = vmatpush1.msk.msra.mxu0 %vm170_vm1, %v545_v56  ;;  %6242 = vmatprep.subr.msk.mxu1 %vm170_vm1, %v548_v58  ;;  %v733_v62 = vpop.permute.xlu0 %732 }
  0x94   :  { %v743_v3 = vsel %vm740_vm5, %v733_v62, %v735_v61  ;;  %6243 = vmatpush1.msk.msra.mxu1 %vm170_vm1, %v547_v57  ;;  %4197 = vperm.xlu1 %6846, %v3791_v59   ;;  %9670 = vst [vmem:[#allocation8_spill] sm:$0xff] %v7373_v40  ;;  %9671 = vst [vmem:[#allocation9_spill] sm:$0xff] %v7376_v42  ;;  %v7390_v57 = vrot.slane %v6268_v26, %v7131_v39  ;;  %v3855_v59 = vld [vmem:[%s9662_s26 + $0x1a0] sm:$0xff] }
  0x95   :  { %v769_v10 = vmul.f32 %v7290_v55, %v743_v3  ;;  %6240 = vmatmul.mubr.msk.f32.vlgmr.msra.gmra.mrb[0].mxu0 %vm163_vm3, %v6236_v60  ;;  %6244 = vmatmul.mubr.msk.f32.vlgmr.msra.gmra.mrb[0].mxu1 %vm163_vm3, %v6236_v60  ;;  %v3824_v60 = vld [vmem:[%s9662_s26 + $0xa8] sm:$0xff]  ;;  %v6258_v3 = vld [vmem:[%s9664_s1 + $0x40] sm:$0xff] }
  0x96   :  { %640 = vmatprep.mubr.f32.mxu0 %v9571_v5  ;;  %717 = vmatprep.mubr.f32.mxu1 %v9571_v5  ;;  %9672 = vst [vmem:[#allocation10_spill] sm:$0xff] %v7390_v57  ;;  %v3775_v26 = vld [vmem:[%s9661_s22 + $0x120] sm:$0xff] }
  0x97   :  { %v739_v15 = vpop.permute.xlu1 %738  ;;  %v737_v16 = vpop.permute.xlu0 %736  ;;  %6249 = vmatprep.subr.msk.mxu0 %vm170_vm1, %v769_v10  ;;  %4042 = vperm.xlu0 %6845, %v3760_v7   ;;  %v6279_v7 = vld [vmem:[%s9663_s27 + $0x6] ss:$8 sm:$0xf] }
  0x98   :  { %v744_v20 = vsel %vm740_vm5, %v739_v15, %v733_v62  ;;  %v741_v21 = vsel %vm740_vm5, %v737_v16, %v739_v15  ;;  %v742_v22 = vsel %vm740_vm5, %v735_v61, %v737_v16  ;;  %4617 = vperm.xlu1 %6846, %v3823_v13   ;;  %v3743_v15 = vld [vmem:[%s9661_s22 + $0x20] sm:$0xff]  ;;  %v3856_v16 = vld [vmem:[%s9662_s26 + $0x1a8] sm:$0xff] }
  0x99   :  { %v768_v23 = vmul.f32 %v7316_v6, %v744_v20  ;;  %v770_v24 = vmul.f32 %v7325_v11, %v742_v22  ;;  %v771_v25 = vmul.f32 %v7328_v12, %v741_v21  ;;  %6241 = vmatmul.mubr.msk.f32.gmra.mrb[2].mxu0 %vm163_vm3, %v6237_v14  ;;  %6245 = vmatmul.mubr.msk.f32.gmra.mrb[2].mxu1 %vm163_vm3, %v6237_v14  ;;  %v6259_v21 = vld [vmem:[%s9664_s1 + $0x48] sm:$0xff] }
  0x9a   :  { %857 = vmatprep.mubr.f32.mxu0 %v9571_v5  ;;  %934 = vmatprep.mubr.f32.mxu1 %v9571_v5  ;;  %v7436_v20 = vrot.slane %v6279_v7, %v7124_v36 }
  0x9b   :  { %6250 = vmatpush1.msk.msra.mxu0 %vm170_vm1, %v768_v23  ;;  %6253 = vmatprep.subr.msk.mxu1 %vm170_vm1, %v771_v25  ;;  %v1164_v27 = vpop.permute.xlu0 %1163  ;;  %v1166_v29 = vpop.permute.xlu1 %1165 }
  0x9c   :  { %6254 = vmatpush1.msk.msra.mxu1 %vm170_vm1, %v770_v24  ;;  %4202 = vperm.xlu0 %6845, %v3792_v0   ;;  %v1174_v51 = vsel %vm1171_vm6, %v1164_v27, %v1166_v29  ;;  %9675 = vst [vmem:[#allocation13_spill] sm:$0xff] %v7436_v20  ;;  %v7449_v0 = vrot.slane %v6279_v7, %v7131_v39 }
  0x9d   :  { %6251 = vmatmul.mubr.msk.f32.vlgmr.msra.gmra.mrb[0].mxu0 %vm163_vm3, %v6247_v1  ;;  %6255 = vmatmul.mubr.msk.f32.vlgmr.msra.gmra.mrb[0].mxu1 %vm163_vm3, %v6247_v1  ;;  %v1199_v2 = vmul.f32 %v7376_v42, %v1174_v51  ;;  %v6269_v51 = vld [vmem:[%s9664_s1 + $0x50] sm:$0xff] }
  0x9e   :  { %863 = vmatprep.mubr.f32.mxu0 %v9571_v5  ;;  %940 = vmatprep.mubr.f32.mxu1 %v9571_v5  ;;  %9676 = vst [vmem:[#allocation14_spill] sm:$0xff] %v7449_v0 }
  0x9f   :  { %v1168_v53 = vpop.permute.xlu0 %1167  ;;  %v1170_v54 = vpop.permute.xlu1 %1169  ;;  %6260 = vmatprep.subr.msk.mxu0 %vm170_vm1, %v985_v30  ;;  %6264 = vmatprep.subr.msk.mxu1 %vm170_vm1, %v986_v33  ;;  %v3744_v33 = vld [vmem:[%s9661_s22 + $0x28] sm:$0xff] }
  0xa0   :  { %v1173_v56 = vsel %vm1171_vm6, %v1166_v29, %v1168_v53  ;;  %v1175_v58 = vsel %vm1171_vm6, %v1170_v54, %v1164_v27  ;;  %6261 = vmatpush1.msk.msra.mxu0 %vm170_vm1, %v978_v17  ;;  %6265 = vmatpush1.msk.msra.mxu1 %vm170_vm1, %v979_v19  ;;  %v1172_v62 = vsel %vm1171_vm6, %v1168_v53, %v1170_v54  ;;  %v6290_v53 = vld [vmem:[%s9663_s27 + $0x7] ss:$8 sm:$0xf] }
  0xa1   :  { %6252 = vmatmul.mubr.msk.f32.gmra.mrb[2].mxu0 %vm163_vm3, %v6248_v43  ;;  %6256 = vmatmul.mubr.msk.f32.gmra.mrb[2].mxu1 %vm163_vm3, %v6248_v43  ;;  %v1200_v61 = vmul.f32 %v7370_v37, %v1173_v56  ;;  %v1202_v63 = vmul.f32 %v7373_v40, %v1175_v58  ;;  %v1201_v14 = vmul.f32 %v7390_v57, %v1172_v62 }
  0xa2   :  { %1065 = vmatprep.mubr.f32.mxu0 %v9571_v5  ;;  %1142 = vmatprep.mubr.f32.mxu1 %v9571_v5  ;;  %v7430_v17 = vrot.slane %v6279_v7, %v7129_v38  ;;  %v7433_v19 = vrot.slane %v6279_v7, %v7122_v35  ;;  %v7491_v62 = vrot.slane %v6290_v53, %v7122_v35 }
  0xa3   :  { %4777 = vperm.xlu1 %6846, %v3855_v59   ;;  %4622 = vperm.xlu0 %6845, %v3824_v60   ;;  %v1387_v10 = vpop.permute.xlu0 %1386  ;;  %v1389_v13 = vpop.permute.xlu1 %1388  ;;  %v3807_v59 = vld [vmem:[%s9662_s26 + $0x20] sm:$0xff]  ;;  %v3776_v60 = vld [vmem:[%s9661_s22 + $0x128] sm:$0xff] }
  0xa4   :  { %6271 = vmatprep.subr.msk.mxu0 %vm170_vm1, %v1200_v61  ;;  %6275 = vmatprep.subr.msk.mxu1 %vm170_vm1, %v1202_v63  ;;  %9673 = vst [vmem:[#allocation11_spill] sm:$0xff] %v7430_v17  ;;  %9674 = vst [vmem:[#allocation12_spill] sm:$0xff] %v7433_v19  ;;  %v1397_v22 = vsel %vm1394_vm7, %v1387_v10, %v1389_v13  ;;  %v7488_v61 = vrot.slane %v6290_v53, %v7129_v38 }
  0xa5   :  { %6262 = vmatmul.mubr.msk.f32.vlgmr.msra.gmra.mrb[0].mxu0 %vm163_vm3, %v6258_v3  ;;  %6266 = vmatmul.mubr.msk.f32.vlgmr.msra.gmra.mrb[0].mxu1 %vm163_vm3, %v6258_v3  ;;  %v1422_v43 = vmul.f32 %v7436_v20, %v1397_v22  ;;  %9678 = vst [vmem:[#allocation16_spill] sm:$0xff] %v7491_v62  ;;  %v7494_v63 = vrot.slane %v6290_v53, %v7124_v36 }
  0xa6   :  { %6272 = vmatpush1.msk.msra.mxu0 %vm170_vm1, %v1199_v2  ;;  %1071 = vmatprep.mubr.f32.mxu0 %v9571_v5  ;;  %9677 = vst [vmem:[#allocation15_spill] sm:$0xff] %v7488_v61  ;;  %v6270_v2 = vld [vmem:[%s9664_s1 + $0x58] sm:$0xff] }
  0xa7   :  { %1148 = vmatprep.mubr.f32.mxu1 %v9571_v5  ;;  %3957 = vperm.xlu1 %6846, %v3743_v15   ;;  %v1391_v23 = vpop.permute.xlu0 %1390  ;;  %v1393_v24 = vpop.permute.xlu1 %1392  ;;  %9679 = vst [vmem:[#allocation17_spill] sm:$0xff] %v7494_v63 }
  0xa8   :  { %4782 = vperm.xlu0 %6845, %v3856_v16   ;;  %v1396_v25 = vsel %vm1394_vm7, %v1389_v13, %v1391_v23  ;;  %v1398_v1 = vsel %vm1394_vm7, %v1393_v24, %v1387_v10  ;;  %6276 = vmatpush1.msk.msra.mxu1 %vm170_vm1, %v1201_v14  ;;  %v1395_v29 = vsel %vm1394_vm7, %v1391_v23, %v1393_v24  ;;  %v3839_v16 = vld [vmem:[%s9662_s26 + $0x120] sm:$0xff]  ;;  %v3808_v24 = vld [vmem:[%s9662_s26 + $0x28] sm:$0xff] }
  0xa9   :  { %6263 = vmatmul.mubr.msk.f32.gmra.mrb[2].mxu0 %vm163_vm3, %v6259_v21  ;;  %6267 = vmatmul.mubr.msk.f32.gmra.mrb[2].mxu1 %vm163_vm3, %v6259_v21  ;;  %v1423_v27 = vmul.f32 %v7430_v17, %v1396_v25  ;;  %v1425_v30 = vmul.f32 %v7433_v19, %v1398_v1  ;;  %v1424_v58 = vmul.f32 %v7449_v0, %v1395_v29  ;;  %v6280_v1 = vld [vmem:[%s9664_s1 + $0x60] sm:$0xff] }
  0xaa   :  { %1288 = vmatprep.mubr.f32.mxu0 %v9571_v5  ;;  %1365 = vmatprep.mubr.f32.mxu1 %v9571_v5  ;;  %v7507_v14 = vrot.slane %v6290_v53, %v7131_v39 }
  0xab   :  { %4117 = vperm.xlu1 %6846, %v3775_v26   ;;  %6282 = vmatprep.subr.msk.mxu0 %vm170_vm1, %v1423_v27  ;;  %v1610_v54 = vpop.permute.xlu0 %1609  ;;  %v1612_v56 = vpop.permute.xlu1 %1611  ;;  %v6301_v26 = vld [vmem:[%s9663_s27 + $0x20] ss:$8 sm:$0xf]  ;;  %s9729_s27 = smov 127  }
  0xac   :  { %3962 = vperm.xlu0 %6845, %v3744_v33   ;;  %6286 = vmatprep.subr.msk.mxu1 %vm170_vm1, %v1425_v30  ;;  %v1620_v3 = vsel %vm1617_vm8, %v1610_v54, %v1612_v56  ;;  %9680 = vst [vmem:[#allocation18_spill] sm:$0xff] %v7507_v14  ;;  %v3883_v33 = vld [vmem:[%s9539_s8 + $0x80] sm:$0xff]  ;;  %v7549_v53 = vrot.slane %v6301_v26, %v7122_v35 }
  0xad   :  { %6273 = vmatmul.mubr.msk.f32.vlgmr.msra.gmra.mrb[0].mxu0 %vm163_vm3, %v6269_v51  ;;  %6277 = vmatmul.mubr.msk.f32.vlgmr.msra.gmra.mrb[0].mxu1 %vm163_vm3, %v6269_v51  ;;  %v1645_v25 = vmul.f32 %v7494_v63, %v1620_v3  ;;  %v7546_v51 = vrot.slane %v6301_v26, %v7129_v38  ;;  %v3915_v3 = vld [vmem:[%s9539_s8 + $0x180] sm:$0xff] }
  0xae   :  { %6283 = vmatpush1.msk.msra.mxu0 %vm170_vm1, %v1422_v43  ;;  %1294 = vmatprep.mubr.f32.mxu0 %v9571_v5  ;;  %v3840_v43 = vld [vmem:[%s9662_s26 + $0x128] sm:$0xff]  ;;  %9682 = vst [vmem:[#allocation20_spill] sm:$0xff] %v7549_v53 }
  0xaf   :  { %1371 = vmatprep.mubr.f32.mxu1 %v9571_v5  ;;  %4537 = vperm.xlu1 %6846, %v3807_v59   ;;  %v1614_v7 = vpop.permute.xlu0 %1613  ;;  %v1616_v10 = vpop.permute.xlu1 %1615  ;;  %9681 = vst [vmem:[#allocation19_spill] sm:$0xff] %v7546_v51 }
  0xb0   :  { %4122 = vperm.xlu0 %6845, %v3776_v60   ;;  %v1619_v13 = vsel %vm1617_vm8, %v1612_v56, %v1614_v7  ;;  %v1621_v15 = vsel %vm1617_vm8, %v1616_v10, %v1610_v54  ;;  %6287 = vmatpush1.msk.msra.mxu1 %vm170_vm1, %v1424_v58  ;;  %v1618_v22 = vsel %vm1617_vm8, %v1614_v7, %v1616_v10  ;;  %v6281_v56 = vld [vmem:[%s9664_s1 + $0x68] sm:$0xff] }
  0xb1   :  { %6274 = vmatmul.mubr.msk.f32.gmra.mrb[2].mxu0 %vm163_vm3, %v6270_v2  ;;  %6278 = vmatmul.mubr.msk.f32.gmra.mrb[2].mxu1 %vm163_vm3, %v6270_v2  ;;  %v1646_v21 = vmul.f32 %v7488_v61, %v1619_v13  ;;  %v1648_v23 = vmul.f32 %v7491_v62, %v1621_v15  ;;  %v1647_v30 = vmul.f32 %v7507_v14, %v1618_v22  ;;  %v3884_v13 = vld [vmem:[%s9539_s8 + $0x88] sm:$0xff]  ;;  %v3867_v22 = vld [vmem:[%s9539_s8] sm:$0xff] }
  0xb2   :  { %1511 = vmatprep.mubr.f32.mxu0 %v9571_v5  ;;  %1588 = vmatprep.mubr.f32.mxu1 %v9571_v5  ;;  %v7552_v54 = vrot.slane %v6301_v26, %v7124_v36  ;;  %v7565_v60 = vrot.slane %v6301_v26, %v7131_v39  ;;  %v6302_v26 = vld [vmem:[%s9664_s1 + $0x80] sm:$0xff] }
  0xb3   :  { %4697 = vperm.xlu1 %6846, %v3839_v16   ;;  %6293 = vmatprep.subr.msk.mxu0 %vm170_vm1, %v1646_v21  ;;  %v1833_v27 = vpop.permute.xlu0 %1832  ;;  %v1835_v29 = vpop.permute.xlu1 %1834  ;;  %v6291_v16 = vld [vmem:[%s9664_s1 + $0x70] sm:$0xff] }
  0xb4   :  { %4542 = vperm.xlu0 %6845, %v3808_v24   ;;  %6297 = vmatprep.subr.msk.mxu1 %vm170_vm1, %v1648_v23  ;;  %9683 = vst [vmem:[#allocation21_spill] sm:$0xff] %v7552_v54  ;;  %v1843_v58 = vsel %vm1840_vm9, %v1833_v27, %v1835_v29  ;;  %9684 = vst [vmem:[#allocation22_spill] sm:$0xff] %v7565_v60  ;;  %v3916_v23 = vld [vmem:[%s9539_s8 + $0x188] sm:$0xff]  ;;  %v6292_v24 = vld [vmem:[%s9664_s1 + $0x78] sm:$0xff] }
  0xb5   :  { %6284 = vmatmul.mubr.msk.f32.vlgmr.msra.gmra.mrb[0].mxu0 %vm163_vm3, %v6280_v1  ;;  %6288 = vmatmul.mubr.msk.f32.vlgmr.msra.gmra.mrb[0].mxu1 %vm163_vm3, %v6280_v1  ;;  %v1868_v15 = vmul.f32 %v7552_v54, %v1843_v58  ;;  %v3868_v1 = vld [vmem:[%s9539_s8 + $0x8] sm:$0xff]  ;;  %v3794_v58 = vld [vmem:[%s9661_s22 + $0x1b8] sm:$0xff] }
  0xb6   :  { %6294 = vmatpush1.msk.msra.mxu0 %vm170_vm1, %v1645_v25  ;;  %1517 = vmatprep.mubr.f32.mxu0 %v9571_v5  ;;  %v3899_v25 = vld [vmem:[%s9539_s8 + $0x100] sm:$0xff] }
  0xb7   :  { %1594 = vmatprep.mubr.f32.mxu1 %v9571_v5  ;;  %5238 = vperm.xlu1 %6846, %v3883_v33   ;;  %v1837_v38 = vpop.permute.xlu0 %1836  ;;  %v1839_v35 = vpop.permute.xlu1 %1838  ;;  %v3793_v33 = vld [vmem:[%s9661_s22 + $0x1b0] sm:$0xff] }
  0xb8   :  { %4702 = vperm.xlu0 %6845, %v3840_v43   ;;  %v1842_v59 = vsel %vm1840_vm9, %v1835_v29, %v1837_v38  ;;  %v1844_v2 = vsel %vm1840_vm9, %v1839_v35, %v1833_v27  ;;  %6298 = vmatpush1.msk.msra.mxu1 %vm170_vm1, %v1647_v30  ;;  %v1841_v10 = vsel %vm1840_vm9, %v1837_v38, %v1839_v35  ;;  %v3761_v27 = vld [vmem:[%s9661_s22 + $0xb0] sm:$0xff]  ;;  %v3900_v29 = vld [vmem:[%s9539_s8 + $0x108] sm:$0xff]  ;;  %v3762_v43 = vld [vmem:[%s9661_s22 + $0xb8] sm:$0xff] }
  0xb9   :  { %6285 = vmatmul.mubr.msk.f32.gmra.mrb[2].mxu0 %vm163_vm3, %v6281_v56  ;;  %6289 = vmatmul.mubr.msk.f32.gmra.mrb[2].mxu1 %vm163_vm3, %v6281_v56  ;;  %v1869_v7 = vmul.f32 %v7546_v51, %v1842_v59  ;;  %v1871_v39 = vmul.f32 %v7549_v53, %v1844_v2  ;;  %v1870_v21 = vmul.f32 %v7565_v60, %v1841_v10  ;;  %v6303_v30 = vld [vmem:[%s9664_s1 + $0x88] sm:$0xff]  ;;  %v3825_v56 = vld [vmem:[%s9662_s26 + $0xb0] sm:$0xff]  ;;  %v3826_v35 = vld [vmem:[%s9662_s26 + $0xb8] sm:$0xff] }
  0xba   :  { %1734 = vmatprep.mubr.f32.mxu0 %v9571_v5  ;;  %1811 = vmatprep.mubr.f32.mxu1 %v9571_v5  ;;  %v3857_v38 = vld [vmem:[%s9662_s26 + $0x1b0] sm:$0xff]  ;;  %v3858_v2 = vld [vmem:[%s9662_s26 + $0x1b8] sm:$0xff] }
  0xbb   :  { %5398 = vperm.xlu1 %6846, %v3915_v3   ;;  %6304 = vmatprep.subr.msk.mxu0 %vm170_vm1, %v1869_v7  ;;  %v3745_v59 = vld [vmem:[%s9661_s22 + $0x30] sm:$0xff]  ;;  %v3746_v7 = vld [vmem:[%s9661_s22 + $0x38] sm:$0xff] }
  0xbc   :  { %5243 = vperm.xlu0 %6845, %v3884_v13   ;;  %6308 = vmatprep.subr.msk.mxu1 %vm170_vm1, %v1871_v39  ;;  %v3777_v3 = vld [vmem:[%s9661_s22 + $0x130] sm:$0xff]  ;;  %v3778_v39 = vld [vmem:[%s9661_s22 + $0x138] sm:$0xff] }
  0xbd   :  { %6295 = vmatmul.mubr.msk.f32.vlgmr.msra.gmra.mrb[0].mxu0 %vm163_vm3, %v6291_v16  ;;  %6299 = vmatmul.mubr.msk.f32.vlgmr.msra.gmra.mrb[0].mxu1 %vm163_vm3, %v6291_v16  ;;  %v3809_v10 = vld [vmem:[%s9662_s26 + $0x30] sm:$0xff] }
  0xbe   :  { %6305 = vmatpush1.msk.msra.mxu0 %vm170_vm1, %v1868_v15  ;;  %1740 = vmatprep.mubr.f32.mxu0 %v9571_v5  ;;  %v3841_v13 = vld [vmem:[%s9662_s26 + $0x130] sm:$0xff]  ;;  %v3810_v15 = vld [vmem:[%s9662_s26 + $0x38] sm:$0xff] }
  0xbf   :  { %1817 = vmatprep.mubr.f32.mxu1 %v9571_v5  ;;  %5158 = vperm.xlu1 %6846, %v3867_v22   ;;  %v3885_v16 = vld [vmem:[%s9539_s8 + $0x90] sm:$0xff] }
  0xc0   :  { %5403 = vperm.xlu0 %6845, %v3916_v23   ;;  %6309 = vmatpush1.msk.msra.mxu1 %vm170_vm1, %v1870_v21  ;;  %v3842_v21 = vld [vmem:[%s9662_s26 + $0x138] sm:$0xff]  ;;  %v3917_v22 = vld [vmem:[%s9539_s8 + $0x190] sm:$0xff] }
  0xc1   :  { %6296 = vmatmul.mubr.msk.f32.gmra.mrb[2].mxu0 %vm163_vm3, %v6292_v24  ;;  %6300 = vmatmul.mubr.msk.f32.gmra.mrb[2].mxu1 %vm163_vm3, %v6292_v24  ;;  %v3886_v23 = vld [vmem:[%s9539_s8 + $0x98] sm:$0xff]  ;;  %v3869_v24 = vld [vmem:[%s9539_s8 + $0x10] sm:$0xff] }
  0xc2   :  { %1957 = vmatprep.mubr.f32.mxu0 %v9571_v5  ;;  %2034 = vmatprep.mubr.f32.mxu1 %v9571_v5 }
  0xc3   :  { %5318 = vperm.xlu1 %6846, %v3899_v25   ;;  %v3918_v25 = vld [vmem:[%s9539_s8 + $0x198] sm:$0xff] }
  0xc4   :  { %5163 = vperm.xlu0 %6845, %v3868_v1   ;;  %v3901_v1 = vld [vmem:[%s9539_s8 + $0x110] sm:$0xff] }
  0xc5   :  { %6306 = vmatmul.mubr.msk.f32.vlgmr.msra.gmra.mrb[0].mxu0 %vm163_vm3, %v6302_v26  ;;  %6310 = vmatmul.mubr.msk.f32.vlgmr.msra.gmra.mrb[0].mxu1 %vm163_vm3, %v6302_v26  ;;  %v3870_v26 = vld [vmem:[%s9539_s8 + $0x18] sm:$0xff] }
  0xc6   :  { %1963 = vmatprep.mubr.f32.mxu0 %v9571_v5  ;;  %2040 = vmatprep.mubr.f32.mxu1 %v9571_v5 }
  0xc7   :  { %4047 = vperm.xlu1 %6846, %v3761_v27   ;;  %v3763_v27 = vld [vmem:[%s9661_s22 + $0xc0] sm:$0xff] }
  0xc8   :  { %5323 = vperm.xlu0 %6845, %v3900_v29   ;;  %v3902_v29 = vld [vmem:[%s9539_s8 + $0x118] sm:$0xff] }
  0xc9   :  { %6307 = vmatmul.mubr.msk.f32.gmra.mrb[2].mxu0 %vm163_vm3, %v6303_v30  ;;  %6311 = vmatmul.mubr.msk.f32.gmra.mrb[2].mxu1 %vm163_vm3, %v6303_v30  ;;  %v7708_v30 = vpop.permute.xlu1 %2064 }
  0xca   :  { %2218 = vmatprep.mubr.f32.mxu0 %v9571_v5  ;;  %2289 = vmatprep.mubr.f32.mxu1 %v9571_v5 }
  0xcb   :  { %4207 = vperm.xlu1 %6846, %v3793_v33  }
  0xcc   :  { %4052 = vperm.xlu0 %6845, %v3762_v43   ;;  %v7712_v43 = vpop.permute.xlu0 %2059 }
  0xcd   :  { %v7710_v33 = vpop.permute.xlu1 %4017 }
  0xcf   :  { %4627 = vperm.xlu1 %6846, %v3825_v56  }
  0xd0   :  { %4212 = vperm.xlu0 %6845, %v3794_v58   ;;  %v7716_v58 = vpop.permute.xlu0 %4022 }
  0xd1   :  { %v7714_v56 = vpop.permute.xlu1 %4177 }
  0xd3   :  { %4787 = vperm.xlu1 %6846, %v3857_v38  }
  0xd4   :  { %4632 = vperm.xlu0 %6845, %v3826_v35   ;;  %v7720_v35 = vpop.permute.xlu0 %4182 }
  0xd5   :  { %v7718_v38 = vpop.permute.xlu1 %4597 }
  0xd7   :  { %3967 = vperm.xlu1 %6846, %v3745_v59  }
  0xd8   :  { %4792 = vperm.xlu0 %6845, %v3858_v2   ;;  %v7724_v2 = vpop.permute.xlu0 %4602 }
  0xd9   :  { %v7722_v59 = vpop.permute.xlu1 %4757 }
  0xdb   :  { %4127 = vperm.xlu1 %6846, %v3777_v3  }
  0xdc   :  { %3972 = vperm.xlu0 %6845, %v3746_v7   ;;  %v7728_v7 = vpop.permute.xlu0 %4762 }
  0xdd   :  { %v7726_v3 = vpop.permute.xlu1 %3937 }
  0xdf   :  { %4547 = vperm.xlu1 %6846, %v3809_v10  }
  0xe0   :  { %4132 = vperm.xlu0 %6845, %v3778_v39   ;;  %v7732_v39 = vpop.permute.xlu0 %3942 }
  0xe1   :  { %v7730_v10 = vpop.permute.xlu1 %4097 }
  0xe3   :  { %4707 = vperm.xlu1 %6846, %v3841_v13  }
  0xe4   :  { %4552 = vperm.xlu0 %6845, %v3810_v15   ;;  %v7736_v15 = vpop.permute.xlu0 %4102 }
  0xe5   :  { %v7734_v13 = vpop.permute.xlu1 %4517 }
  0xe7   :  { %5248 = vperm.xlu1 %6846, %v3885_v16  }
  0xe8   :  { %4712 = vperm.xlu0 %6845, %v3842_v21   ;;  %v7740_v21 = vpop.permute.xlu0 %4522 }
  0xe9   :  { %v7738_v16 = vpop.permute.xlu1 %4677 }
  0xeb   :  { %5408 = vperm.xlu1 %6846, %v3917_v22  }
  0xec   :  { %5253 = vperm.xlu0 %6845, %v3886_v23   ;;  %v7744_v23 = vpop.permute.xlu0 %4682 }
  0xed   :  { %v7742_v22 = vpop.permute.xlu1 %4027  ;;  %9686 = vst [vmem:[#allocation24_spill] sm:$0xff] %v7744_v23 }
  0xee   :  { %9685 = vst [vmem:[#allocation23_spill] sm:$0xff] %v7742_v22 }
  0xef   :  { %5168 = vperm.xlu1 %6846, %v3869_v24  }
  0xf0   :  { %5413 = vperm.xlu0 %6845, %v3918_v25   ;;  %v7748_v25 = vpop.permute.xlu0 %4032 }
  0xf1   :  { %v7746_v24 = vpop.permute.xlu1 %4187  ;;  %9688 = vst [vmem:[#allocation26_spill] sm:$0xff] %v7748_v25 }
  0xf2   :  { %9687 = vst [vmem:[#allocation25_spill] sm:$0xff] %v7746_v24 }
  0xf3   :  { %5328 = vperm.xlu1 %6846, %v3901_v1  }
  0xf4   :  { %5173 = vperm.xlu0 %6845, %v3870_v26   ;;  %v7752_v26 = vpop.permute.xlu0 %4192 }
  0xf5   :  { %v7750_v1 = vpop.permute.xlu1 %4607  ;;  %9690 = vst [vmem:[#allocation28_spill] sm:$0xff] %v7752_v26  ;;  %v3719_v26 = vld [vmem:[%s9540_s10] sm:$0x1] }
  0xf6   :  { %9689 = vst [vmem:[#allocation27_spill] sm:$0xff] %v7750_v1 }
  0xf7   :  { %4057 = vperm.xlu1 %6846, %v3763_v27  }
  0xf8   :  { %5333 = vperm.xlu0 %6845, %v3902_v29   ;;  %v7756_v29 = vpop.permute.xlu0 %4612 }
  0xf9   :  { %v7754_v27 = vpop.permute.xlu1 %4767  ;;  %9692 = vst [vmem:[#allocation30_spill] sm:$0xff] %v7756_v29 }
  0xfa   :  { %9691 = vst [vmem:[#allocation29_spill] sm:$0xff] %v7754_v27  ;;  %v3718_v27 = vld [vmem:[%s9541_s9 + $0x2] sm:$0x1] }
  0xfb   :  { %v3726_v24 = vmul.f32 %v3719_v26, %v3718_v27 }
  0xfc   :  { %v7760_v53 = vpop.permute.xlu0 %4772 }
  0xfd   :  { %v7758_v5 = vpop.permute.xlu1 %3947  ;;  %9694 = vst [vmem:[#allocation32_spill] sm:$0xff] %v7760_v53 }
  0xfe   :  { %9693 = vst [vmem:[#allocation31_spill] sm:$0xff] %v7758_v5 }
 0x100   :  { %v7764_v51 = vpop.permute.xlu0 %3952 }
 0x101   :  { %v7762_v60 = vpop.permute.xlu1 %4107  ;;  %9696 = vst [vmem:[#allocation34_spill] sm:$0xff] %v7764_v51 }
 0x102   :  { %9695 = vst [vmem:[#allocation33_spill] sm:$0xff] %v7762_v60 }
 0x104   :  { %v7768_v62 = vpop.permute.xlu0 %4112 }
 0x105   :  { %9698 = vst [vmem:[#allocation36_spill] sm:$0xff] %v7768_v62 }
 0x106   :  { %v7766_v54 = vpop.permute.xlu1 %4527 }
 0x107   :  { %9697 = vst [vmem:[#allocation35_spill] sm:$0xff] %v7766_v54 }
 0x108   :  { %v7772_v61 = vpop.permute.xlu0 %4532 }
 0x109   :  { %9700 = vst [vmem:[#allocation38_spill] sm:$0xff] %v7772_v61 }
 0x10b   :  { %v7770_v14 = vpop.permute.xlu1 %4687 }
 0x10c   :  { %9699 = vst [vmem:[#allocation37_spill] sm:$0xff] %v7770_v14 }
 0x10e   :  { %v7776_v19 = vpop.permute.xlu0 %4692 }
 0x10f   :  { %v7774_v63 = vpop.permute.xlu1 %4037  ;;  %9702 = vst [vmem:[#allocation40_spill] sm:$0xff] %v7776_v19 }
 0x110   :  { %9701 = vst [vmem:[#allocation39_spill] sm:$0xff] %v7774_v63 }
 0x113   :  { %v7778_v0 = vpop.permute.xlu1 %4197 }
 0x114   :  { %9703 = vst [vmem:[#allocation41_spill] sm:$0xff] %v7778_v0 }
 0x116   :  { %v7780_v17 = vpop.permute.xlu0 %4042 }
 0x117   :  { %9704 = vst [vmem:[#allocation42_spill] sm:$0xff] %v7780_v17  ;;  %v7782_v20 = vpop.permute.xlu1 %4617 }
 0x118   :  { %9705 = vst [vmem:[#allocation43_spill] sm:$0xff] %v7782_v20 }
 0x11b   :  { %v7784_v60 = vpop.permute.xlu0 %4202 }
 0x11c   :  { %9706 = vst [vmem:[#allocation44_spill] sm:$0xff] %v7784_v60 }
 0x122   :  { %v7786_v40 = vpop.permute.xlu1 %4777  ;;  %v7788_v54 = vpop.permute.xlu0 %4622 }
 0x123   :  { %9707 = vst [vmem:[#allocation45_spill] sm:$0xff] %v7786_v40  ;;  %9708 = vst [vmem:[#allocation46_spill] sm:$0xff] %v7788_v54 }
 0x126   :  { %v7790_v62 = vpop.permute.xlu1 %3957 }
 0x127   :  { %9709 = vst [vmem:[#allocation47_spill] sm:$0xff] %v7790_v62  ;;  %v7792_v14 = vpop.permute.xlu0 %4782 }
 0x128   :  { %9710 = vst [vmem:[#allocation48_spill] sm:$0xff] %v7792_v14 }
 0x12a   :  { %v7794_v61 = vpop.permute.xlu1 %4117 }
 0x12b   :  { %9711 = vst [vmem:[#allocation49_spill] sm:$0xff] %v7794_v61  ;;  %v7802_v60 = vpop.permute.xlu0 %3962 }
 0x12c   :  { %9712 = vst [vmem:[#allocation50_spill] sm:$0xff] %v7802_v60 }
 0x198   :  { %v1959_v63 = vpop.f32.mrb[0].mxu0  ;;  %v2036_v19 = vpop.f32.mrb[0].mxu1 }
 0x199   :  { %v2067_v0 = vadd.f32 %v7712_v43, %v1959_v63  ;;  %v2069_v17 = vadd.f32 %v7712_v43, %v2036_v19  ;;  %v7798_v57 = vpop.f32.mrb[1].mxu0  ;;  %v7800_v20 = vpop.f32.mrb[1].mxu1 }
 0x19a   :  { %v7811_v19 = vpop.permute.xlu1 %4537 }
 0x19b   :  { %v2075_v40 = vmax.f32 %v2067_v0, 0.0  ;;  %v2077_v62 = vmax.f32 %v2069_v17, 0.0  ;;  %9713 = vst [vmem:[#allocation51_spill] sm:$0xff] %v7811_v19 }
 0x19c   :  { %v1965_v54 = vpop.f32.mrb[2].mxu0  ;;  %v2042_v51 = vpop.f32.mrb[2].mxu1 }
 0x19d   :  { %v2071_v14 = vadd.f32 %v7708_v30, %v1965_v54  ;;  %v2073_v61 = vadd.f32 %v7708_v30, %v2042_v51  ;;  %v7806_v42 = vpop.f32.mrb[3].mxu0  ;;  %v7808_v5 = vpop.f32.mrb[3].mxu1  ;;  %2116 = vrot.lane.b32.xlu1 %v2075_v40, %s6857_s28  ;;  %v7814_v60 = vmul.f32 %v2075_v40, %v7271_v41  ;;  %v7822_v0 = vmul.f32 %v2077_v62, %v7278_v49 }
 0x19e   :  { %v7827_v54 = vpop.permute.xlu0 %4122  ;;  %v7833_v19 = vpop.permute.xlu1 %4697 }
 0x19f   :  { %v2079_v63 = vmax.f32 %v2071_v14, 0.0  ;;  %v2081_v37 = vmax.f32 %v2073_v61, 0.0  ;;  %9714 = vst [vmem:[#allocation52_spill] sm:$0xff] %v7814_v60  ;;  %9716 = vst [vmem:[#allocation54_spill] sm:$0xff] %v7822_v0  ;;  %v3859_v0 = vld [vmem:[%s9662_s26 + $0x1c0] sm:$0xff] }
 0x1a0   :  { %9718 = vst [vmem:[#allocation56_spill] sm:$0xff] %v7827_v54  ;;  %9719 = vst [vmem:[#allocation57_spill] sm:$0xff] %v7833_v19  ;;  %v3747_v60 = vld [vmem:[%s9661_s22 + $0x40] sm:$0xff] }
 0x1a1   :  { %2118 = vrot.lane.b32.xlu0 %v2079_v63, %s6857_s28  ;;  %2124 = vrot.lane.b32.xlu1 %v2077_v62, %s6857_s28  ;;  %v7819_v17 = vmul.f32 %v2079_v63, %v7271_v41  ;;  %v7825_v51 = vmul.f32 %v2081_v37, %v7278_v49 }
 0x1a2   :  { %v7837_v41 = vpop.permute.xlu0 %4542  ;;  %v7841_v49 = vpop.permute.xlu1 %5238 }
 0x1a3   :  { %9715 = vst [vmem:[#allocation53_spill] sm:$0xff] %v7819_v17  ;;  %9717 = vst [vmem:[#allocation55_spill] sm:$0xff] %v7825_v51  ;;  %v3828_v17 = vld [vmem:[%s9662_s26 + $0xc8] sm:$0xff] }
 0x1a4   :  { %9720 = vst [vmem:[#allocation58_spill] sm:$0xff] %v7837_v41  ;;  %9721 = vst [vmem:[#allocation59_spill] sm:$0xff] %v7841_v49 }
 0x1a5   :  { %2126 = vrot.lane.b32.xlu0 %v2081_v37, %s6857_s28  ;;  %2083 = vrot.lane.b32.xlu1 %v2075_v40, %s6859_s29 }
 0x1a6   :  { %v7845_v61 = vpop.permute.xlu0 %4702  ;;  %v7847_v14 = vpop.permute.xlu1 %5398 }
 0x1a7   :  { %9722 = vst [vmem:[#allocation60_spill] sm:$0xff] %v7845_v61  ;;  %9723 = vst [vmem:[#allocation61_spill] sm:$0xff] %v7847_v14 }
 0x1a9   :  { %2085 = vrot.lane.b32.xlu0 %v2079_v63, %s6859_s29  ;;  %2091 = vrot.lane.b32.xlu1 %v2077_v62, %s6859_s29 }
 0x1aa   :  { %v7851_v19 = vpop.permute.xlu0 %5243  ;;  %v7855_v54 = vpop.permute.xlu1 %5158 }
 0x1ab   :  { %9724 = vst [vmem:[#allocation62_spill] sm:$0xff] %v7851_v19  ;;  %9726 = vst [vmem:[#allocation63_spill] sm:$0xff] %v7855_v54 }
 0x1ad   :  { %2093 = vrot.lane.b32.xlu0 %v2081_v37, %s6859_s29  ;;  %2441 = vrot.lane.b32.xlu1 %v2075_v40, %s6860_s0 }
 0x1ae   :  { %v7859_v41 = vpop.permute.xlu0 %5403  ;;  %v7861_v61 = vpop.permute.xlu1 %5318 }
 0x1af   :  { %9727 = vst [vmem:[#allocation64_spill] sm:$0xff] %v7859_v41  ;;  %9728 = vst [vmem:[#allocation65_spill] sm:$0xff] %v7861_v61 }
 0x1b1   :  { %2443 = vrot.lane.b32.xlu0 %v2079_v63, %s6860_s0  ;;  %2449 = vrot.lane.b32.xlu1 %v2077_v62, %s6860_s0 }
 0x1b2   :  { %v7865_v14 = vpop.permute.xlu0 %5163  ;;  %v7869_v19 = vpop.permute.xlu1 %4047  ;;  %v9847_v34 = vld [vmem:[#allocation63_spill] sm:$0xff] }
 0x1b3   :  { %9730 = vst [vmem:[#allocation66_spill] sm:$0xff] %v7865_v14  ;;  %9731 = vst [vmem:[#allocation67_spill] sm:$0xff] %v7869_v19 }
 0x1b5   :  { %2451 = vrot.lane.b32.xlu0 %v2081_v37, %s6860_s0  ;;  %2624 = vrot.lane.b32.xlu1 %v2075_v40, %s9725_s7 }
 0x1b6   :  { %v7873_v54 = vpop.permute.xlu0 %5323  ;;  %v7875_v41 = vpop.permute.xlu1 %4207 }
 0x1b7   :  { %9733 = vst [vmem:[#allocation68_spill] sm:$0xff] %v7873_v54  ;;  %9734 = vst [vmem:[#allocation69_spill] sm:$0xff] %v7875_v41 }
 0x1b9   :  { %2626 = vrot.lane.b32.xlu0 %v2079_v63, %s9725_s7  ;;  %2632 = vrot.lane.b32.xlu1 %v2077_v62, %s9725_s7 }
 0x1ba   :  { %v7879_v61 = vpop.permute.xlu0 %4052  ;;  %v7883_v14 = vpop.permute.xlu1 %4627 }
 0x1bb   :  { %9735 = vst [vmem:[#allocation70_spill] sm:$0xff] %v7879_v61  ;;  %9737 = vst [vmem:[#allocation71_spill] sm:$0xff] %v7883_v14  ;;  %v2068_v61 = vadd.f32 %v7712_v43, %v7798_v57 }
 0x1bd   :  { %2634 = vrot.lane.b32.xlu0 %v2081_v37, %s9725_s7  ;;  %2970 = vrot.lane.b32.xlu1 %v2075_v40, %s9729_s27  ;;  %v7901_v49 = vmax.f32 %v2068_v61, 0.0  ;;  %v2074_v61 = vadd.f32 %v7708_v30, %v7808_v5 }
 0x1be   :  { %v7887_v19 = vpop.permute.xlu0 %4212  ;;  %v7889_v54 = vpop.permute.xlu1 %4787 }
 0x1bf   :  { %9738 = vst [vmem:[#allocation72_spill] sm:$0xff] %v7887_v19  ;;  %9739 = vst [vmem:[#allocation73_spill] sm:$0xff] %v7889_v54  ;;  %v2070_v19 = vadd.f32 %v7712_v43, %v7800_v20 }
 0x1c0   :  { %9743 = vst [vmem:[#allocation76_spill] sm:$0xff] %v7901_v49 }
 0x1c1   :  { %2978 = vrot.lane.b32.xlu1 %v2077_v62, %s9729_s27  ;;  %2972 = vrot.lane.b32.xlu0 %v2079_v63, %s9729_s27 }
 0x1c2   :  { %v7895_v41 = vpop.permute.xlu0 %4632  ;;  %v7899_v14 = vpop.permute.xlu1 %3967 }
 0x1c3   :  { %9741 = vst [vmem:[#allocation74_spill] sm:$0xff] %v7895_v41  ;;  %9742 = vst [vmem:[#allocation75_spill] sm:$0xff] %v7899_v14 }
 0x1c5   :  { %3153 = vrot.lane.b32.xlu1 %v2075_v40, %s9732_s30  ;;  %2980 = vrot.lane.b32.xlu0 %v2081_v37, %s9729_s27 }
 0x1c6   :  { %v7910_v57 = vpop.permute.xlu0 %4792  ;;  %v7918_v14 = vpop.permute.xlu1 %4127 }
 0x1c7   :  { %9744 = vst [vmem:[#allocation77_spill] sm:$0xff] %v7910_v57  ;;  %9747 = vst [vmem:[#allocation80_spill] sm:$0xff] %v7918_v14 }
 0x1c9   :  { %3161 = vrot.lane.b32.xlu1 %v2077_v62, %s9732_s30  ;;  %3155 = vrot.lane.b32.xlu0 %v2079_v63, %s9732_s30 }
 0x1ca   :  { %v7932_v20 = vpop.permute.xlu1 %4547 }
 0x1cb   :  { %9750 = vst [vmem:[#allocation83_spill] sm:$0xff] %v7932_v20 }
 0x1cd   :  { %3336 = vrot.lane.b32.xlu1 %v2075_v40, %s9736_s2  ;;  %3163 = vrot.lane.b32.xlu0 %v2081_v37, %s9732_s30 }
 0x1d1   :  { %3344 = vrot.lane.b32.xlu1 %v2077_v62, %s9736_s2  ;;  %3338 = vrot.lane.b32.xlu0 %v2079_v63, %s9736_s2 }
 0x1d5   :  { %3519 = vrot.lane.b32.xlu1 %v2075_v40, %s9740_s23  ;;  %3346 = vrot.lane.b32.xlu0 %v2081_v37, %s9736_s2  ;;  %v2072_v40 = vadd.f32 %v7708_v30, %v7806_v42  ;;  %v7924_v42 = vmax.f32 %v2074_v61, 0.0  ;;  %v7940_v30 = vpop.permute.xlu1 %4707 }
 0x1d6   :  { %9752 = vst [vmem:[#allocation85_spill] sm:$0xff] %v7940_v30 }
 0x1d7   :  { %9748 = vst [vmem:[#allocation81_spill] sm:$0xff] %v7924_v42 }
 0x1d9   :  { %3527 = vrot.lane.b32.xlu1 %v2077_v62, %s9740_s23  ;;  %3521 = vrot.lane.b32.xlu0 %v2079_v63, %s9740_s23  ;;  %v7912_v62 = vmax.f32 %v2070_v19, 0.0  ;;  %v7914_v63 = vmax.f32 %v2072_v40, 0.0  ;;  %v7952_v19 = vpop.permute.xlu1 %5248 }
 0x1da   :  { %9754 = vst [vmem:[#allocation87_spill] sm:$0xff] %v7952_v19 }
 0x1db   :  { %9745 = vst [vmem:[#allocation78_spill] sm:$0xff] %v7912_v62  ;;  %9746 = vst [vmem:[#allocation79_spill] sm:$0xff] %v7914_v63 }
 0x1dd   :  { %2120 = vrot.lane.b32.xlu1 %v7901_v49, %s6857_s28  ;;  %3529 = vrot.lane.b32.xlu0 %v2081_v37, %s9740_s23  ;;  %v7926_v37 = vpop.permute.xlu0 %3972  ;;  %v7960_v61 = vpop.permute.xlu1 %5408 }
 0x1de   :  { %9749 = vst [vmem:[#allocation82_spill] sm:$0xff] %v7926_v37  ;;  %9756 = vst [vmem:[#allocation89_spill] sm:$0xff] %v7960_v61 }
 0x1e1   :  { %2128 = vrot.lane.b32.xlu1 %v7912_v62, %s6857_s28  ;;  %2122 = vrot.lane.b32.xlu0 %v7914_v63, %s6857_s28  ;;  %v7938_v5 = vpop.permute.xlu0 %4132 }
 0x1e2   :  { %9751 = vst [vmem:[#allocation84_spill] sm:$0xff] %v7938_v5  ;;  %v7975_v5 = vpop.permute.xlu1 %5168 }
 0x1e3   :  { %9758 = vst [vmem:[#allocation91_spill] sm:$0xff] %v7975_v5  ;;  %v3827_v5 = vld [vmem:[%s9662_s26 + $0xc0] sm:$0xff] }
 0x1e5   :  { %2087 = vrot.lane.b32.xlu1 %v7901_v49, %s6859_s29  ;;  %2130 = vrot.lane.b32.xlu0 %v7924_v42, %s6857_s28  ;;  %v7946_v43 = vpop.permute.xlu0 %4552 }
 0x1e6   :  { %9753 = vst [vmem:[#allocation86_spill] sm:$0xff] %v7946_v43  ;;  %v3796_v43 = vld [vmem:[%s9661_s22 + $0x1c8] sm:$0xff]  ;;  %v7984_v20 = vpop.permute.xlu1 %5328 }
 0x1e7   :  { %9760 = vst [vmem:[#allocation93_spill] sm:$0xff] %v7984_v20  ;;  %v3795_v20 = vld [vmem:[%s9661_s22 + $0x1c0] sm:$0xff] }
 0x1e9   :  { %2095 = vrot.lane.b32.xlu1 %v7912_v62, %s6859_s29  ;;  %2089 = vrot.lane.b32.xlu0 %v7914_v63, %s6859_s29  ;;  %v7958_v40 = vpop.permute.xlu0 %4712 }
 0x1ea   :  { %9755 = vst [vmem:[#allocation88_spill] sm:$0xff] %v7958_v40  ;;  %v3764_v40 = vld [vmem:[%s9661_s22 + $0xc8] sm:$0xff] }
 0x1ed   :  { %2445 = vrot.lane.b32.xlu1 %v7901_v49, %s6860_s0  ;;  %2097 = vrot.lane.b32.xlu0 %v7924_v42, %s6859_s29  ;;  %v7966_v30 = vpop.permute.xlu0 %5253 }
 0x1ee   :  { %9757 = vst [vmem:[#allocation90_spill] sm:$0xff] %v7966_v30 }
 0x1f1   :  { %2453 = vrot.lane.b32.xlu1 %v7912_v62, %s6860_s0  ;;  %2447 = vrot.lane.b32.xlu0 %v7914_v63, %s6860_s0  ;;  %v7982_v14 = vpop.permute.xlu0 %5413 }
 0x1f2   :  { %9759 = vst [vmem:[#allocation92_spill] sm:$0xff] %v7982_v14 }
 0x1f5   :  { %2628 = vrot.lane.b32.xlu1 %v7901_v49, %s9725_s7  ;;  %2455 = vrot.lane.b32.xlu0 %v7924_v42, %s6860_s0  ;;  %v7988_v37 = vpop.permute.xlu0 %5173 }
 0x1f6   :  { %9761 = vst [vmem:[#allocation94_spill] sm:$0xff] %v7988_v37  ;;  %v8036_v37 = vld [vmem:[%s9540_s10 + $0x1] sm:$0x1] }
 0x1f7   :  { %v3724_v53 = vsub.f32 0.0, %v8036_v37  ;;  %v3722_v12 = vmul.f32 %v8036_v37, %v3718_v27  ;;  %v3904_v37 = vld [vmem:[%s9539_s8 + $0x128] sm:$0xff] }
 0x1f9   :  { %2636 = vrot.lane.b32.xlu1 %v7912_v62, %s9725_s7  ;;  %2630 = vrot.lane.b32.xlu0 %v7914_v63, %s9725_s7  ;;  %v8000_v57 = vpop.permute.xlu0 %5333 }
 0x1fa   :  { %9763 = vst [vmem:[#allocation96_spill] sm:$0xff] %v8000_v57 }
 0x1fd   :  { %2974 = vrot.lane.b32.xlu1 %v7901_v49, %s9729_s27  ;;  %2638 = vrot.lane.b32.xlu0 %v7924_v42, %s9725_s7 }
 0x201   :  { %2982 = vrot.lane.b32.xlu1 %v7912_v62, %s9729_s27  ;;  %4062 = vperm.xlu0 %6845, %v3764_v40   ;;  %v7994_v40 = vpop.permute.xlu1 %4057 }
 0x202   :  { %9762 = vst [vmem:[#allocation95_spill] sm:$0xff] %v7994_v40 }
 0x205   :  { %3157 = vrot.lane.b32.xlu1 %v7901_v49, %s9732_s30  ;;  %4222 = vperm.xlu0 %6845, %v3796_v43  }
 0x209   :  { %3165 = vrot.lane.b32.xlu1 %v7912_v62, %s9732_s30  ;;  %2976 = vrot.lane.b32.xlu0 %v7914_v63, %s9729_s27 }
 0x20d   :  { %3340 = vrot.lane.b32.xlu1 %v7901_v49, %s9736_s2  ;;  %2984 = vrot.lane.b32.xlu0 %v7924_v42, %s9729_s27 }
 0x20f   :  { %v8002_v41 = vpop.permute.xlu1 %2116 }
 0x211   :  { %3348 = vrot.lane.b32.xlu1 %v7912_v62, %s9736_s2  ;;  %3159 = vrot.lane.b32.xlu0 %v7914_v63, %s9732_s30 }
 0x213   :  { %v8008_v43 = vpop.permute.xlu1 %2124  ;;  %v8010_v54 = vpop.permute.xlu0 %2118 }
 0x215   :  { %3523 = vrot.lane.b32.xlu1 %v7901_v49, %s9740_s23  ;;  %3167 = vrot.lane.b32.xlu0 %v7924_v42, %s9732_s30 }
 0x217   :  { %v8016_v40 = vpop.permute.xlu1 %2083  ;;  %v8018_v57 = vpop.permute.xlu0 %2126 }
 0x219   :  { %3531 = vrot.lane.b32.xlu1 %v7912_v62, %s9740_s23  ;;  %3342 = vrot.lane.b32.xlu0 %v7914_v63, %s9736_s2 }
 0x21b   :  { %v8027_v14 = vpop.permute.xlu1 %2091  ;;  %v8029_v61 = vpop.permute.xlu0 %2085 }
 0x21d   :  { %4217 = vperm.xlu1 %6846, %v3795_v20   ;;  %3350 = vrot.lane.b32.xlu0 %v7924_v42, %s9736_s2  ;;  %v8048_v20 = vld [vmem:[%s9541_s9] sm:$0x1] }
 0x21e   :  { %v3721_v11 = vmul.f32 %v3719_v26, %v8048_v20 }
 0x21f   :  { %v8041_v30 = vpop.permute.xlu1 %2441  ;;  %v8043_v19 = vpop.permute.xlu0 %2093 }
 0x221   :  { %4637 = vperm.xlu1 %6846, %v3827_v5   ;;  %3525 = vrot.lane.b32.xlu0 %v7914_v63, %s9740_s23  ;;  %v3725_v5 = vmul.f32 %v3724_v53, %v8048_v20  ;;  %v3779_v53 = vld [vmem:[%s9661_s22 + $0x140] sm:$0xff] }
 0x223   :  { %v8062_v51 = vpop.permute.xlu1 %2449  ;;  %v8064_v29 = vpop.permute.xlu0 %2443  ;;  %v3727_v22 = vadd.f32 %v3726_v24, %v3725_v5  ;;  %v3748_v24 = vld [vmem:[%s9661_s22 + $0x48] sm:$0xff] }
 0x225   :  { %4797 = vperm.xlu1 %6846, %v3859_v0   ;;  %3533 = vrot.lane.b32.xlu0 %v7924_v42, %s9740_s23  ;;  %v3860_v0 = vld [vmem:[%s9662_s26 + $0x1c8] sm:$0xff]  ;;  %v3728_v50 = vadd.f32 1.0, %v3727_v22  ;;  %v3843_v22 = vld [vmem:[%s9662_s26 + $0x140] sm:$0xff] }
 0x227   :  { %v8075_v25 = vpop.permute.xlu1 %2624  ;;  %v8077_v1 = vpop.permute.xlu0 %2451  ;;  %v3729_v49 = vmax.f32 %v3728_v50, 1e-06  ;;  %v3887_v50 = vld [vmem:[%s9539_s8 + $0xa0] sm:$0xff] }
 0x229   :  { %3977 = vperm.xlu1 %6846, %v3747_v60   ;;  %4642 = vperm.xlu0 %6845, %v3828_v17   ;;  %v3811_v60 = vld [vmem:[%s9662_s26 + $0x40] sm:$0xff]  ;;  %6849 = vrcp.f32 %v3729_v49 }
 0x22a   :  { %v3919_v49 = vld [vmem:[%s9539_s8 + $0x1a0] sm:$0xff] }
 0x22b   :  { %v8085_v62 = vpop.permute.xlu1 %2632  ;;  %v8087_v42 = vpop.permute.xlu0 %2626 }
 0x22d   :  { %4137 = vperm.xlu1 %6846, %v3779_v53   ;;  %4802 = vperm.xlu0 %6845, %v3860_v0   ;;  %v3780_v53 = vld [vmem:[%s9661_s22 + $0x148] sm:$0xff] }
 0x22f   :  { %v8095_v17 = vpop.permute.xlu1 %2970  ;;  %v8097_v5 = vpop.permute.xlu0 %2634 }
 0x230   :  { %9764 = vst [vmem:[#allocation97_spill] sm:$0xff] %v8095_v17 }
 0x231   :  { %4557 = vperm.xlu1 %6846, %v3811_v60   ;;  %3982 = vperm.xlu0 %6845, %v3748_v24   ;;  %v3812_v60 = vld [vmem:[%s9662_s26 + $0x48] sm:$0xff] }
 0x233   :  { %v8105_v0 = vpop.permute.xlu1 %2978  ;;  %v8107_v23 = vpop.permute.xlu0 %2972 }
 0x234   :  { %9765 = vst [vmem:[#allocation98_spill] sm:$0xff] %v8105_v0  ;;  %9766 = vst [vmem:[#allocation99_spill] sm:$0xff] %v8107_v23 }
 0x235   :  { %4717 = vperm.xlu1 %6846, %v3843_v22   ;;  %4142 = vperm.xlu0 %6845, %v3780_v53   ;;  %v3844_v22 = vld [vmem:[%s9662_s26 + $0x148] sm:$0xff] }
 0x237   :  { %v8115_v24 = vpop.permute.xlu1 %3153  ;;  %v8117_v17 = vpop.permute.xlu0 %2980 }
 0x238   :  { %9767 = vst [vmem:[#allocation100_spill] sm:$0xff] %v8115_v24  ;;  %9768 = vst [vmem:[#allocation101_spill] sm:$0xff] %v8117_v17  ;;  %v3871_v24 = vld [vmem:[%s9539_s8 + $0x20] sm:$0xff] }
 0x239   :  { %5258 = vperm.xlu1 %6846, %v3887_v50   ;;  %4562 = vperm.xlu0 %6845, %v3812_v60   ;;  %v3888_v50 = vld [vmem:[%s9539_s8 + $0xa8] sm:$0xff]  ;;  %v6850_v60 = vpop.eup %6849  ;;  %v3717_v17 = vld [vmem:[%s9541_s9 + $0x1] sm:$0x1] }
 0x23b   :  { %v8125_v53 = vpop.permute.xlu1 %3161  ;;  %v8127_v23 = vpop.permute.xlu0 %3155 }
 0x23c   :  { %9769 = vst [vmem:[#allocation102_spill] sm:$0xff] %v8125_v53  ;;  %9770 = vst [vmem:[#allocation103_spill] sm:$0xff] %v8127_v23  ;;  %v3920_v23 = vld [vmem:[%s9539_s8 + $0x1a8] sm:$0xff] }
 0x23d   :  { %5418 = vperm.xlu1 %6846, %v3919_v49   ;;  %4722 = vperm.xlu0 %6845, %v3844_v22   ;;  %v3735_v49 = vmul.f32 %v6850_v60, %v3717_v17  ;;  %v3903_v22 = vld [vmem:[%s9539_s8 + $0x120] sm:$0xff]  ;;  %v3765_v17 = vld [vmem:[%s9661_s22 + $0xd0] sm:$0xff] }
 0x23f   :  { %v8138_v0 = vpop.permute.xlu1 %3336  ;;  %v8140_v53 = vpop.permute.xlu0 %3163 }
 0x240   :  { %9771 = vst [vmem:[#allocation104_spill] sm:$0xff] %v8138_v0  ;;  %9772 = vst [vmem:[#allocation105_spill] sm:$0xff] %v8140_v53  ;;  %v3723_v53 = vadd.f32 %v3722_v12, %v3721_v11  ;;  %v3829_v12 = vld [vmem:[%s9662_s26 + $0xd0] sm:$0xff] }
 0x241   :  { %5178 = vperm.xlu1 %6846, %v3871_v24   ;;  %5263 = vperm.xlu0 %6845, %v3888_v50   ;;  %v3736_v24 = vadd.f32 1.0, %v3735_v49  ;;  %v3872_v50 = vld [vmem:[%s9539_s8 + $0x28] sm:$0xff] }
 0x242   :  { %v3731_v20 = vmul.f32 %v6850_v60, %v3723_v53 }
 0x243   :  { %v8150_v6 = vpop.permute.xlu1 %3344  ;;  %v8152_v0 = vpop.permute.xlu0 %3338  ;;  %v3737_v27 = vmul.f32 0.5, %v3736_v24  ;;  %v3766_v24 = vld [vmem:[%s9661_s22 + $0xd8] sm:$0xff] }
 0x244   :  { %9773 = vst [vmem:[#allocation106_spill] sm:$0xff] %v8150_v6  ;;  %9774 = vst [vmem:[#allocation107_spill] sm:$0xff] %v8152_v0  ;;  %v3749_v0 = vld [vmem:[%s9661_s22 + $0x50] sm:$0xff] }
 0x245   :  { %5338 = vperm.xlu1 %6846, %v3903_v22   ;;  %5423 = vperm.xlu0 %6845, %v3920_v23   ;;  %v3797_v23 = vld [vmem:[%s9661_s22 + $0x1d0] sm:$0xff]  ;;  %v3738_v11 = vmul.f32 15.0, %v3737_v27 }
 0x246   :  { %v3861_v27 = vld [vmem:[%s9662_s26 + $0x1d0] sm:$0xff] }
 0x247   :  { %v8160_v63 = vpop.permute.xlu1 %3519  ;;  %v8162_v26 = vpop.permute.xlu0 %3346  ;;  %v8183_v53 = vrot.slane %v3738_v11, %v7124_v36 }
 0x248   :  { %9775 = vst [vmem:[#allocation108_spill] sm:$0xff] %v8160_v63  ;;  %9776 = vst [vmem:[#allocation109_spill] sm:$0xff] %v8162_v26 }
 0x249   :  { %4067 = vperm.xlu1 %6846, %v3765_v17   ;;  %5183 = vperm.xlu0 %6845, %v3872_v50   ;;  %v3732_v17 = vadd.f32 1.0, %v3731_v20  ;;  %v3798_v20 = vld [vmem:[%s9661_s22 + $0x1d8] sm:$0xff] }
 0x24b   :  { %v8170_v49 = vpop.permute.xlu1 %3527  ;;  %v8172_v22 = vpop.permute.xlu0 %3521 }
 0x24c   :  { %9777 = vst [vmem:[#allocation110_spill] sm:$0xff] %v8170_v49  ;;  %9778 = vst [vmem:[#allocation111_spill] sm:$0xff] %v8172_v22 }
 0x24d   :  { %4227 = vperm.xlu1 %6846, %v3797_v23   ;;  %5343 = vperm.xlu0 %6845, %v3904_v37   ;;  %v3733_v23 = vmul.f32 0.5, %v3732_v17 }
 0x24f   :  { %v2121_v50 = vpop.permute.xlu1 %2120  ;;  %v8180_v63 = vpop.permute.xlu0 %3529 }
 0x250   :  { %9779 = vst [vmem:[#allocation112_spill] sm:$0xff] %v8180_v63  ;;  %v2136_v60 = vsel %vm128_vm0, %v8002_v41, %v2121_v50  ;;  %v4271_v63 = vsub.f32 %v8183_v53, %v7710_v33 }
 0x251   :  { %4647 = vperm.xlu1 %6846, %v3829_v12   ;;  %4072 = vperm.xlu0 %6845, %v3766_v24   ;;  %v2141_v12 = vmul.f32 %v2136_v60, %v7147_v46  ;;  %v3734_v60 = vmul.f32 15.0, %v3733_v23 }
 0x253   :  { %v2129_v37 = vpop.permute.xlu1 %2128  ;;  %v2123_v22 = vpop.permute.xlu0 %2122 }
 0x254   :  { %v2137_v11 = vsel %vm128_vm0, %v8010_v54, %v2123_v22  ;;  %v2132_v17 = vsel %vm128_vm0, %v8008_v43, %v2129_v37  ;;  %v2138_v49 = vsel %vm128_vm0, %v2129_v37, %v8002_v41  ;;  %v4272_v41 = vsub.f32 %v8183_v53, %v7716_v58 }
 0x255   :  { %v2145_v24 = vmul.f32 %v2137_v11, %v7147_v46  ;;  %4807 = vperm.xlu1 %6846, %v3861_v27   ;;  %4232 = vperm.xlu0 %6845, %v3798_v20   ;;  %v2135_v46 = vsel %vm128_vm0, %v2123_v22, %v8018_v57  ;;  %v3830_v11 = vld [vmem:[%s9662_s26 + $0xd8] sm:$0xff]  ;;  %v2134_v37 = vsel %vm128_vm0, %v2121_v50, %v8008_v43 }
 0x256   :  { %v2140_v20 = vmul.f32 %v2138_v49, %v7150_v47  ;;  %v2143_v6 = vmul.f32 %v2132_v17, %v7140_v44  ;;  %v2146_v43 = vmul.f32 %v2135_v46, %v7153_v48 }
 0x257   :  { %v2088_v27 = vpop.permute.xlu1 %2087  ;;  %v2131_v33 = vpop.permute.xlu0 %2130  ;;  %v6551_v26 = vpack.c.bf16 %v2145_v24, %v2141_v12  ;;  %v4335_v24 = vand.u32 2147483647, %v4271_v63  ;;  %v4336_v63 = vand.u32 2147483647, %v4272_v41 }
 0x258   :  { %v2133_v23 = vsel %vm128_vm0, %v8018_v57, %v2131_v33  ;;  %v2139_v22 = vsel %vm128_vm0, %v2131_v33, %v8010_v54  ;;  %v2103_v57 = vsel %vm87_vm2, %v8016_v40, %v2088_v27  ;;  %v3781_v54 = vld [vmem:[%s9661_s22 + $0x150] sm:$0xff] }
 0x259   :  { %v2144_v12 = vmul.f32 %v2139_v22, %v7150_v47  ;;  %v2147_v58 = vmul.f32 %v2133_v23, %v7140_v44  ;;  %3987 = vperm.xlu1 %6846, %v3749_v0   ;;  %4652 = vperm.xlu0 %6845, %v3830_v11   ;;  %v3862_v44 = vld [vmem:[%s9662_s26 + $0x1d8] sm:$0xff]  ;;  %v2142_v0 = vmul.f32 %v2134_v37, %v7153_v48  ;;  %v4399_v23 = vsub.f32 1.0, %v4335_v24 }
 0x25a   :  { %6552 = vmatprep.subr.bf16.mxu0 %v6551_v26  ;;  %v8246_v26 = vrot.slane %v3734_v60, %v7124_v36  ;;  %v2108_v33 = vmul.f32 %v2103_v57, %v7160_v52  ;;  %v3813_v60 = vld [vmem:[%s9662_s26 + $0x50] sm:$0xff]  ;;  %v4400_v24 = vsub.f32 1.0, %v4336_v63  ;;  %v3782_v63 = vld [vmem:[%s9661_s22 + $0x158] sm:$0xff] }
 0x25b   :  { %v6553_v49 = vpack.c.bf16 %v2144_v12, %v2140_v20  ;;  %v2096_v50 = vpop.permute.xlu1 %2095  ;;  %v2090_v17 = vpop.permute.xlu0 %2089  ;;  %v6555_v47 = vpack.c.bf16 %v2147_v58, %v2143_v6  ;;  %v6557_v22 = vpack.c.bf16 %v2146_v43, %v2142_v0  ;;  %v6312_v12 = vld [vmem:[%s9542_s4 + $0x8] sm:$0xff] }
 0x25c   :  { %v2104_v46 = vsel %vm87_vm2, %v8029_v61, %v2090_v17  ;;  %v2099_v6 = vsel %vm87_vm2, %v8027_v14, %v2096_v50  ;;  %v2105_v48 = vsel %vm87_vm2, %v2096_v50, %v8016_v40  ;;  %v2102_v41 = vsel %vm87_vm2, %v2090_v17, %v8043_v19  ;;  %v3750_v40 = vld [vmem:[%s9661_s22 + $0x58] sm:$0xff] }
 0x25d   :  { %v2112_v11 = vmul.f32 %v2104_v46, %v7160_v52  ;;  %4147 = vperm.xlu1 %6846, %v3781_v54   ;;  %4812 = vperm.xlu0 %6845, %v3862_v44   ;;  %v4303_v52 = vsub.f32 %v8183_v53, %v7714_v56  ;;  %v2101_v56 = vsel %vm87_vm2, %v2088_v27, %v8027_v14  ;;  %v8299_v46 = vmax.f32 %v4400_v24, 0.0 }
 0x25e   :  { %6554 = vmatpush1.bf16.msra.mxu0 %v6553_v49  ;;  %6556 = vmatprep.subr.bf16.mxu1 %v6555_v47  ;;  %v2107_v54 = vmul.f32 %v2105_v48, %v7187_v4  ;;  %v2110_v49 = vmul.f32 %v2099_v6, %v7199_v9  ;;  %v4304_v14 = vsub.f32 %v8183_v53, %v7720_v35 }
 0x25f   :  { %v2446_v37 = vpop.permute.xlu1 %2445  ;;  %v2098_v20 = vpop.permute.xlu0 %2097  ;;  %v6559_v58 = vpack.c.bf16 %v2112_v11, %v2108_v33  ;;  %6558 = vmatpush1.bf16.msra.mxu1 %v6557_v22  ;;  %v2113_v27 = vmul.f32 %v2102_v41, %v7196_v8  ;;  %v4851_v33 = vsub.f32 %v8246_v26, %v7718_v38  ;;  %v2109_v11 = vmul.f32 %v2101_v56, %v7196_v8 }
 0x260   :  { %v2100_v43 = vsel %vm87_vm2, %v8043_v19, %v2098_v20  ;;  %v2106_v57 = vsel %vm87_vm2, %v2098_v20, %v8029_v61  ;;  %v2461_v19 = vsel %vm517_vm4, %v8041_v30, %v2446_v37  ;;  %v3845_v61 = vld [vmem:[%s9662_s26 + $0x150] sm:$0xff]  ;;  %v9780_v22 = vmov 0.0  }
 0x261   :  { %v2111_v50 = vmul.f32 %v2106_v57, %v7187_v4  ;;  %v2114_v17 = vmul.f32 %v2100_v43, %v7199_v9  ;;  %4567 = vperm.xlu1 %6846, %v3813_v60   ;;  %3992 = vperm.xlu0 %6845, %v3750_v40   ;;  %v8293_v4 = vmax.f32 %v4399_v23, 0.0  ;;  %v4367_v9 = vand.u32 2147483647, %v4303_v52  ;;  %v3889_v40 = vld [vmem:[%s9539_s8 + $0xb0] sm:$0xff]  ;;  %v2115_v43 = vld [vmem:[%s9542_s4] sm:$0xff] }
 0x262   :  { %6313 = vmatmul.mubr.msk.f32.vlgmr.msra.gmra.mrb[4].mxu0 %vm2150_vm10, %v6312_v12  ;;  %6560 = vmatprep.subr.bf16.mxu0 %v6559_v58  ;;  %v4883_v6 = vsub.f32 %v8246_v26, %v7722_v59  ;;  %v4852_v48 = vsub.f32 %v8246_v26, %v7724_v2  ;;  %v2466_v60 = vmul.f32 %v2461_v19, %v7220_v18  ;;  %v8314_v38 = vand.u32 2147483647, %v4304_v14 }
 0x263   :  { %v6561_v44 = vpack.c.bf16 %v2111_v50, %v2107_v54  ;;  %6314 = vmatmul.mubr.msk.f32.vlgmr.msra.gmra.mrb[4].mxu1 %vm2150_vm10, %v6312_v12  ;;  %v2454_v35 = vpop.permute.xlu1 %2453  ;;  %v2448_v47 = vpop.permute.xlu0 %2447  ;;  %v6563_v0 = vpack.c.bf16 %v2114_v17, %v2110_v49  ;;  %2363 = vmatprep.mubr.f32.mxu0 %v9780_v22  ;;  %v6565_v8 = vpack.c.bf16 %v2113_v27, %v2109_v11  ;;  %v4431_v12 = vsub.f32 1.0, %v4367_v9 }
 0x264   :  { %v2462_v23 = vsel %vm517_vm4, %v8064_v29, %v2448_v47  ;;  %v2457_v41 = vsel %vm517_vm4, %v8062_v51, %v2454_v35  ;;  %v2463_v20 = vsel %vm517_vm4, %v2454_v35, %v8041_v30  ;;  %v2460_v58 = vsel %vm517_vm4, %v2448_v47, %v8077_v1  ;;  %v3814_v30 = vld [vmem:[%s9662_s26 + $0x58] sm:$0xff]  ;;  %2434 = vmatprep.mubr.f32.mxu1 %v9780_v22 }
 0x265   :  { %v2470_v52 = vmul.f32 %v2462_v23, %v7220_v18  ;;  %4727 = vperm.xlu1 %6846, %v3845_v61   ;;  %4152 = vperm.xlu0 %6845, %v3782_v63   ;;  %v4884_v18 = vsub.f32 %v8246_v26, %v7728_v7  ;;  %v4255_v54 = vsub.f32 %v8183_v53, %v7726_v3  ;;  %v3846_v63 = vld [vmem:[%s9662_s26 + $0x158] sm:$0xff] }
 0x266   :  { %6562 = vmatpush1.bf16.msra.mxu0 %v6561_v44  ;;  %6564 = vmatprep.subr.bf16.mxu1 %v6563_v0  ;;  %v2459_v49 = vsel %vm517_vm4, %v2446_v37, %v8062_v51  ;;  %v2465_v14 = vmul.f32 %v2463_v20, %v7245_v28  ;;  %v2468_v27 = vmul.f32 %v2457_v41, %v7257_v32  ;;  %v4432_v51 = vsub.f32 1.0, %v8314_v38  ;;  %v3799_v38 = vld [vmem:[%s9661_s22 + $0x1e0] sm:$0xff] }
 0x267   :  { %v2629_v24 = vpop.permute.xlu1 %2628  ;;  %v2456_v56 = vpop.permute.xlu0 %2455  ;;  %v6567_v57 = vpack.c.bf16 %v2470_v52, %v2466_v60  ;;  %6566 = vmatpush1.bf16.msra.mxu1 %v6565_v8  ;;  %v4256_v37 = vsub.f32 %v8183_v53, %v7732_v39  ;;  %v4287_v9 = vsub.f32 %v8183_v53, %v7730_v10  ;;  %v4835_v11 = vsub.f32 %v8246_v26, %v7734_v13  ;;  %v3767_v10 = vld [vmem:[%s9661_s22 + $0xe0] sm:$0xff]  ;;  %v6320_v13 = vld [vmem:[%s9542_s4 + $0x18] sm:$0xff] }
 0x268   :  { %v2458_v50 = vsel %vm517_vm4, %v8077_v1, %v2456_v56  ;;  %v2464_v17 = vsel %vm517_vm4, %v2456_v56, %v8064_v29  ;;  %v2471_v1 = vmul.f32 %v2460_v58, %v7254_v31  ;;  %v2644_v29 = vsel %vm740_vm5, %v8075_v25, %v2629_v24 }
 0x269   :  { %v2469_v19 = vmul.f32 %v2464_v17, %v7245_v28  ;;  %v2472_v61 = vmul.f32 %v2458_v50, %v7257_v32  ;;  %5268 = vperm.xlu1 %6846, %v3889_v40   ;;  %4572 = vperm.xlu0 %6845, %v3814_v30   ;;  %v3921_v28 = vld [vmem:[%s9539_s8 + $0x1b0] sm:$0xff]  ;;  %v8363_v32 = vmax.f32 %v4431_v12, 0.0  ;;  %v4288_v23 = vsub.f32 %v8183_v53, %v7736_v15  ;;  %v3890_v30 = vld [vmem:[%s9539_s8 + $0xb8] sm:$0xff] }
 0x26a   :  { %6315 = vmatmul.mubr.msk.f32.vlgmr.msra.gmra.mrb[4].mxu0 %vm2150_vm10, %v2115_v43  ;;  %6568 = vmatprep.subr.bf16.mxu0 %v6567_v57  ;;  %v2467_v60 = vmul.f32 %v2459_v49, %v7254_v31  ;;  %v4836_v8 = vsub.f32 %v8246_v26, %v7740_v21  ;;  %v2649_v41 = vmul.f32 %v2644_v29, %v7290_v55  ;;  %v8387_v15 = vand.u32 2147483647, %v4851_v33  ;;  %v9782_v49 = vld [vmem:[#allocation4_spill] sm:$0xff] }
 0x26b   :  { %v6569_v44 = vpack.c.bf16 %v2469_v19, %v2465_v14  ;;  %6316 = vmatmul.mubr.msk.f32.vlgmr.msra.gmra.mrb[4].mxu1 %vm2150_vm10, %v2115_v43  ;;  %v2637_v35 = vpop.permute.xlu1 %2636  ;;  %v2631_v47 = vpop.permute.xlu0 %2630  ;;  %v6571_v0 = vpack.c.bf16 %v2472_v61, %v2468_v27  ;;  %2542 = vmatprep.mubr.f32.mxu0 %v9780_v22  ;;  %v4867_v33 = vsub.f32 %v8246_v26, %v7738_v16  ;;  %v6317_v43 = vld [vmem:[%s9542_s4 + $0x10] sm:$0xff]  ;;  %v9783_v27 = vld [vmem:[#allocation6_spill] sm:$0xff]  ;;  %v4948_v59 = vand.u32 2147483647, %v4884_v18 }
 0x26c   :  { %v2645_v52 = vsel %vm740_vm5, %v8087_v42, %v2631_v47  ;;  %v2646_v20 = vsel %vm740_vm5, %v2637_v35, %v8075_v25  ;;  %v6573_v31 = vpack.c.bf16 %v2471_v1, %v2467_v60  ;;  %v2640_v12 = vsel %vm740_vm5, %v8085_v62, %v2637_v35  ;;  %v3873_v25 = vld [vmem:[%s9539_s8 + $0x30] sm:$0xff]  ;;  %2613 = vmatprep.mubr.f32.mxu1 %v9780_v22 }
 0x26d   :  { %v2653_v40 = vmul.f32 %v2645_v52, %v7290_v55  ;;  %5428 = vperm.xlu1 %6846, %v3921_v28   ;;  %v2643_v21 = vsel %vm740_vm5, %v2631_v47, %v8097_v5  ;;  %4732 = vperm.xlu0 %6845, %v3846_v63   ;;  %v8401_v55 = vand.u32 2147483647, %v4852_v48  ;;  %v9781_v48 = vld [vmem:[#allocation79_spill] sm:$0xff]  ;;  %v2642_v16 = vsel %vm740_vm5, %v2629_v24, %v8085_v62  ;;  %v9784_v61 = vld [vmem:[#allocation5_spill] sm:$0xff]  ;;  %v9785_v24 = vld [vmem:[#allocation24_spill] sm:$0xff] }
 0x26e   :  { %6570 = vmatpush1.bf16.msra.mxu0 %v6569_v44  ;;  %6572 = vmatprep.subr.bf16.mxu1 %v6571_v0  ;;  %v2816_v57 = vmul.f32 %v9781_v48, %v7275_v45  ;;  %v2648_v50 = vmul.f32 %v2646_v20, %v9782_v49  ;;  %v2651_v19 = vmul.f32 %v2640_v12, %v9783_v27  ;;  %v4979_v62 = vsub.f32 1.0, %v8387_v15  ;;  %v9787_v47 = vld [vmem:[#allocation3_spill] sm:$0xff]  ;;  %v9788_v63 = vld [vmem:[#allocation81_spill] sm:$0xff] }
 0x26f   :  { %v8405_v58 = vpop.permute.xlu1 %2974  ;;  %v2639_v56 = vpop.permute.xlu0 %2638  ;;  %v6575_v2 = vpack.c.bf16 %v2653_v40, %v2649_v41  ;;  %6574 = vmatpush1.bf16.msra.mxu1 %v6573_v31  ;;  %v2654_v1 = vmul.f32 %v2643_v21, %v9784_v61  ;;  %v4868_v44 = vsub.f32 %v8246_v26, %v9785_v24  ;;  %v2818_v0 = vmul.f32 %v9788_v63, %v9787_v47  ;;  %v3922_v20 = vld [vmem:[%s9539_s8 + $0x1b8] sm:$0xff] }
 0x270   :  { %v2641_v17 = vsel %vm740_vm5, %v8097_v5, %v2639_v56  ;;  %v2647_v14 = vsel %vm740_vm5, %v2639_v56, %v8087_v42  ;;  %v3905_v42 = vld [vmem:[%s9539_s8 + $0x130] sm:$0xff]  ;;  %v4947_v60 = vand.u32 2147483647, %v4883_v6  ;;  %v2650_v52 = vmul.f32 %v2642_v16, %v9784_v61  ;;  %v9789_v31 = vld [vmem:[#allocation78_spill] sm:$0xff] }
 0x271   :  { %v2652_v29 = vmul.f32 %v2647_v14, %v9782_v49  ;;  %v2655_v28 = vmul.f32 %v2641_v17, %v9783_v27  ;;  %5188 = vperm.xlu1 %6846, %v3873_v25   ;;  %5273 = vperm.xlu0 %6845, %v3890_v30   ;;  %v9786_v5 = vld [vmem:[#allocation76_spill] sm:$0xff]  ;;  %v4320_v6 = vand.u32 2147483647, %v4256_v37  ;;  %v2814_v12 = vmul.f32 %v9789_v31, %v9787_v47  ;;  %v9797_v63 = vld [vmem:[#allocation30_spill] sm:$0xff] }
 0x272   :  { %6318 = vmatmul.mubr.msk.f32.vlgmr.msra.gmra.mrb[4].mxu0 %vm2150_vm10, %v6317_v43  ;;  %v2812_v35 = vmul.f32 %v9786_v5, %v7275_v45  ;;  %6576 = vmatprep.subr.bf16.mxu0 %v6575_v2  ;;  %v4319_v45 = vand.u32 2147483647, %v4255_v54  ;;  %v4351_v3 = vand.u32 2147483647, %v4287_v9  ;;  %v4352_v54 = vand.u32 2147483647, %v4288_v23 }
 0x273   :  { %v6577_v41 = vpack.c.bf16 %v2652_v29, %v2648_v50  ;;  %6319 = vmatmul.mubr.msk.f32.vlgmr.msra.gmra.mrb[4].mxu1 %vm2150_vm10, %v6317_v43  ;;  %v6579_v40 = vpack.c.bf16 %v2655_v28, %v2651_v19  ;;  %v8458_v15 = vpop.permute.xlu1 %2982  ;;  %2725 = vmatprep.mubr.f32.mxu0 %v9780_v22  ;;  %v6581_v7 = vpack.c.bf16 %v2654_v1, %v2650_v52  ;;  %v4980_v39 = vsub.f32 1.0, %v8401_v55  ;;  %v3874_v55 = vld [vmem:[%s9539_s8 + $0x38] sm:$0xff]  ;;  %v9790_v2 = vld [vmem:[#allocation23_spill] sm:$0xff] }
 0x274   :  { %2796 = vmatprep.mubr.f32.mxu1 %v9780_v22  ;;  %v6583_v18 = vpack.c.bf16 %v2816_v57, %v2812_v35  ;;  %v4899_v37 = vand.u32 2147483647, %v4835_v11  ;;  %v4900_v21 = vand.u32 2147483647, %v4836_v8  ;;  %v6587_v25 = vpack.c.bf16 %v2818_v0, %v2814_v12  ;;  %v9791_v57 = vld [vmem:[#allocation27_spill] sm:$0xff]  ;;  %v9792_v1 = vld [vmem:[#allocation26_spill] sm:$0xff] }
 0x275   :  { %5348 = vperm.xlu1 %6846, %v3905_v42   ;;  %6578 = vmatpush1.bf16.msra.mxu0 %v6577_v41  ;;  %v4931_v9 = vand.u32 2147483647, %v4867_v33  ;;  %v4932_v23 = vand.u32 2147483647, %v4868_v44  ;;  %v5043_v11 = vmax.f32 %v4979_v62, 0.0  ;;  %v4496_v8 = vmax.f32 %v4432_v51, 0.0 }
 0x276   :  { %5433 = vperm.xlu0 %6845, %v3922_v20   ;;  %6580 = vmatprep.subr.bf16.mxu1 %v6579_v40  ;;  %v5011_v56 = vsub.f32 1.0, %v4947_v60  ;;  %v5012_v30 = vsub.f32 1.0, %v4948_v59  ;;  %v4383_v43 = vsub.f32 1.0, %v4319_v45  ;;  %v4384_v33 = vsub.f32 1.0, %v4320_v6  ;;  %v9793_v28 = vld [vmem:[#allocation53_spill] sm:$0xff]  ;;  %v9794_v62 = vld [vmem:[#allocation52_spill] sm:$0xff] }
 0x277   :  { %6582 = vmatpush1.bf16.msra.mxu1 %v6581_v7  ;;  %6584 = vmatprep.subr.bf16.mxu0 %v6583_v18  ;;  %v4273_v48 = vsub.f32 %v8183_v53, %v9790_v2  ;;  %v4853_v16 = vsub.f32 %v8246_v26, %v9791_v57  ;;  %v4415_v49 = vsub.f32 1.0, %v4351_v3  ;;  %v4963_v50 = vsub.f32 1.0, %v4899_v37  ;;  %v8486_v27 = vpop.permute.xlu1 %3157  ;;  %v3906_v44 = vld [vmem:[%s9539_s8 + $0x138] sm:$0xff]  ;;  %v9798_v60 = vld [vmem:[#allocation55_spill] sm:$0xff] }
 0x278   :  { %6588 = vmatprep.subr.bf16.mxu1 %v6587_v25  ;;  %v4416_v17 = vsub.f32 1.0, %v4352_v54  ;;  %v4964_v14 = vsub.f32 1.0, %v4900_v21  ;;  %v5044_v51 = vmax.f32 %v4980_v39, 0.0  ;;  %v4995_v19 = vsub.f32 1.0, %v4931_v9  ;;  %v9796_v35 = vld [vmem:[#allocation25_spill] sm:$0xff]  ;;  %v9799_v52 = vld [vmem:[#allocation54_spill] sm:$0xff] }
 0x279   :  { %4077 = vperm.xlu1 %6846, %v3767_v10   ;;  %v4996_v61 = vsub.f32 1.0, %v4932_v23  ;;  %v4274_v29 = vsub.f32 %v8183_v53, %v9792_v1  ;;  %v9795_v24 = vpack.c.bf16 %v9793_v28, %v9794_v62  ;;  %v5075_v42 = vmax.f32 %v5011_v56, 0.0  ;;  %v3831_v54 = vld [vmem:[%s9662_s26 + $0xe0] sm:$0xff]  ;;  %v3768_v37 = vld [vmem:[%s9661_s22 + $0xe8] sm:$0xff]  ;;  %v9802_v2 = vld [vmem:[#allocation29_spill] sm:$0xff] }
 0x27a   :  { %5193 = vperm.xlu0 %6845, %v3874_v55   ;;  %6321 = vmatmul.mubr.msk.f32.vlgmr.msra.gmra.mrb[4].mxu0 %vm2150_vm10, %v6320_v13  ;;  %v5076_v5 = vmax.f32 %v5012_v30, 0.0  ;;  %v4305_v47 = vsub.f32 %v8183_v53, %v9796_v35  ;;  %v4854_v0 = vsub.f32 %v8246_v26, %v9797_v63  ;;  %v9800_v41 = vpack.c.bf16 %v9798_v60, %v9799_v52  ;;  %v6323_v21 = vld [vmem:[%s9542_s4 + $0x20] sm:$0xff]  ;;  %v9801_v9 = vld [vmem:[#allocation28_spill] sm:$0xff] }
 0x27b   :  { %6586 = vmatpush1.bf16.msra.mxu0 %v9795_v24  ;;  %6322 = vmatmul.mubr.msk.f32.vlgmr.msra.gmra.mrb[4].mxu1 %vm2150_vm10, %v6320_v13  ;;  %v4447_v20 = vmax.f32 %v4383_v43, 0.0  ;;  %v4448_v40 = vmax.f32 %v4384_v33, 0.0  ;;  %v4337_v45 = vand.u32 2147483647, %v4273_v48  ;;  %v4917_v59 = vand.u32 2147483647, %v4853_v16  ;;  %v8524_v13 = vpop.permute.xlu1 %3165 }
 0x27c   :  { %6590 = vmatpush1.bf16.msra.mxu1 %v9800_v41  ;;  %2888 = vmatprep.mubr.f32.mxu0 %v9780_v22  ;;  %v4479_v6 = vmax.f32 %v4415_v49, 0.0  ;;  %v5027_v31 = vmax.f32 %v4963_v50, 0.0  ;;  %v4480_v12 = vmax.f32 %v4416_v17, 0.0  ;;  %v5028_v3 = vmax.f32 %v4964_v14, 0.0  ;;  %v3863_v16 = vld [vmem:[%s9662_s26 + $0x1e0] sm:$0xff]  ;;  %v3832_v60 = vld [vmem:[%s9662_s26 + $0xe8] sm:$0xff] }
 0x27d   :  { %4237 = vperm.xlu1 %6846, %v3799_v38   ;;  %2959 = vmatprep.mubr.f32.mxu1 %v9780_v22  ;;  %v5059_v7 = vmax.f32 %v4995_v19, 0.0  ;;  %v5060_v18 = vmax.f32 %v4996_v61, 0.0  ;;  %v4338_v39 = vand.u32 2147483647, %v4274_v29  ;;  %v8520_v25 = vmul.f32 %v5043_v11, %v8293_v4  ;;  %v9803_v29 = vld [vmem:[#allocation32_spill] sm:$0xff]  ;;  %v9804_v63 = vld [vmem:[#allocation98_spill] sm:$0xff] }
 0x27e   :  { %5353 = vperm.xlu0 %6845, %v3906_v44   ;;  %v4369_v10 = vand.u32 2147483647, %v4305_v47  ;;  %v4306_v23 = vsub.f32 %v8183_v53, %v9801_v9  ;;  %v4918_v55 = vand.u32 2147483647, %v4854_v0  ;;  %v8529_v30 = vmul.f32 %v5044_v51, %v8299_v46  ;;  %v9809_v9 = vld [vmem:[#allocation31_spill] sm:$0xff] }
 0x27f   :  { %v4401_v43 = vsub.f32 1.0, %v4337_v45  ;;  %v4981_v33 = vsub.f32 1.0, %v4917_v59  ;;  %v4885_v48 = vsub.f32 %v8246_v26, %v9802_v2  ;;  %v8534_v4 = vmul.f32 %v5075_v42, %v8363_v32  ;;  %v3800_v32 = vld [vmem:[%s9661_s22 + $0x1e8] sm:$0xff]  ;;  %v8564_v44 = vpop.permute.xlu1 %3340  ;;  %v3751_v42 = vld [vmem:[%s9661_s22 + $0x60] sm:$0xff] }
 0x280   :  { %v8526_v56 = vpop.permute.xlu0 %4062  ;;  %v8536_v11 = vmul.f32 %v5076_v5, %v4496_v8  ;;  %v8538_v57 = vmul.f32 %v5027_v31, %v4447_v20  ;;  %v8544_v46 = vmul.f32 %v5059_v7, %v4479_v6  ;;  %v8546_v49 = vmul.f32 %v5028_v3, %v4448_v40  ;;  %v9805_v40 = vld [vmem:[#allocation97_spill] sm:$0xff]  ;;  %v9807_v7 = vld [vmem:[#allocation7_spill] sm:$0xff] }
 0x281   :  { %4657 = vperm.xlu1 %6846, %v3831_v54   ;;  %v8548_v50 = vmul.f32 %v5060_v18, %v4480_v12  ;;  %v4402_v17 = vsub.f32 1.0, %v4338_v39  ;;  %v4433_v8 = vsub.f32 1.0, %v4369_v10  ;;  %v4370_v14 = vand.u32 2147483647, %v4306_v23  ;;  %v9806_v3 = vld [vmem:[#allocation101_spill] sm:$0xff]  ;;  %v9808_v39 = vld [vmem:[#allocation99_spill] sm:$0xff] }
 0x282   :  { %4082 = vperm.xlu0 %6845, %v3768_v37   ;;  %6324 = vmatmul.mubr.msk.f32.vlgmr.msra.gmra.mrb[4].mxu0 %vm2150_vm10, %v6323_v21  ;;  %v4982_v38 = vsub.f32 1.0, %v4918_v55  ;;  %v4465_v19 = vmax.f32 %v4401_v43, 0.0  ;;  %v5045_v61 = vmax.f32 %v4981_v33, 0.0  ;;  %v4949_v1 = vand.u32 2147483647, %v4885_v48  ;;  %v9810_v55 = vld [vmem:[#allocation9_spill] sm:$0xff] }
 0x283   :  { %6325 = vmatmul.mubr.msk.f32.vlgmr.msra.gmra.mrb[4].mxu1 %vm2150_vm10, %v6323_v21  ;;  %3071 = vmatprep.mubr.f32.mxu0 %v9780_v22  ;;  %v4886_v28 = vsub.f32 %v8246_v26, %v9803_v29  ;;  %v6623_v62 = vpack.c.bf16 %v8529_v30, %v8520_v25  ;;  %v6671_v24 = vpack.c.bf16 %v8536_v11, %v8534_v4  ;;  %v4466_v47 = vmax.f32 %v4402_v17, 0.0  ;;  %v3864_v48 = vld [vmem:[%s9662_s26 + $0x1e8] sm:$0xff]  ;;  %v9811_v17 = vld [vmem:[#allocation34_spill] sm:$0xff]  ;;  %v3833_v4 = vld [vmem:[%s9662_s26 + $0xf0] sm:$0xff] }
 0x284   :  { %v8555_v51 = vpop.permute.xlu0 %4222  ;;  %3142 = vmatprep.mubr.f32.mxu1 %v9780_v22  ;;  %v6626_v5 = vpack.c.bf16 %v8546_v49, %v8538_v57  ;;  %v6674_v35 = vpack.c.bf16 %v8548_v50, %v8544_v46  ;;  %v2988_v0 = vsel %vm1171_vm6, %v8405_v58, %v9804_v63  ;;  %v8580_v52 = vmax.f32 %v4433_v8, 0.0  ;;  %v9813_v29 = vld [vmem:[#allocation100_spill] sm:$0xff]  ;;  %v9868_v50 = vld [vmem:[#allocation47_spill] sm:$0xff] }
 0x285   :  { %4817 = vperm.xlu1 %6846, %v3863_v16   ;;  %v4434_v41 = vsub.f32 1.0, %v4370_v14  ;;  %v5046_v20 = vmax.f32 %v4982_v38, 0.0  ;;  %v2990_v45 = vsel %vm1171_vm6, %v9805_v40, %v8405_v58  ;;  %v8586_v6 = vmul.f32 %v5045_v61, %v4465_v19  ;;  %v3783_v58 = vld [vmem:[%s9661_s22 + $0x160] sm:$0xff]  ;;  %v8621_v14 = vpop.permute.xlu1 %3348 }
 0x286   :  { %4242 = vperm.xlu0 %6845, %v3800_v32   ;;  %v5013_v31 = vsub.f32 1.0, %v4949_v1  ;;  %v4950_v12 = vand.u32 2147483647, %v4886_v28  ;;  %v2995_v18 = vmul.f32 %v2988_v0, %v9807_v7  ;;  %v27_v10 = vstv %s9543_s19  ;;  %v9812_v61 = vld [vmem:[#allocation102_spill] sm:$0xff] }
 0x287   :  { %v4257_v23 = vsub.f32 %v8183_v53, %v9809_v9  ;;  %v2994_v43 = vmul.f32 %v2990_v45, %v9810_v55  ;;  %v2986_v33 = vsel %vm1171_vm6, %v9804_v63, %v8458_v15  ;;  %28 = vst [vmem:[#allocation2] sm:$0x1] %v27_v10  ;;  %v8613_v16 = vmul.f32 %v5046_v20, %v4466_v47  ;;  %v9814_v63 = vld [vmem:[#allocation10_spill] sm:$0xff] }
 0x288   :  { %v2977_v59 = vpop.permute.xlu0 %2976  ;;  %v4258_v32 = vsub.f32 %v8183_v53, %v9811_v17  ;;  %v2992_v8 = vsel %vm1171_vm6, %v8458_v15, %v9805_v40  ;;  %v3171_v1 = vsel %vm1394_vm7, %v8486_v27, %v9812_v61  ;;  %v3173_v28 = vsel %vm1394_vm7, %v9813_v29, %v8486_v27  ;;  %v3815_v27 = vld [vmem:[%s9662_s26 + $0x60] sm:$0xff] }
 0x289   :  { %v2989_v54 = vsel %vm1171_vm6, %v2977_v59, %v9806_v3  ;;  %3997 = vperm.xlu1 %6846, %v3751_v42   ;;  %v2991_v37 = vsel %vm1171_vm6, %v9808_v39, %v2977_v59  ;;  %v8634_v15 = vmax.f32 %v4434_v41, 0.0  ;;  %v2996_v0 = vmul.f32 %v2986_v33, %v9814_v63  ;;  %v9815_v59 = vld [vmem:[#allocation8_spill] sm:$0xff]  ;;  %v8672_v17 = vpop.permute.xlu1 %3523 }
 0x28a   :  { %v2999_v21 = vmul.f32 %v2989_v54, %v9807_v7  ;;  %4662 = vperm.xlu0 %6845, %v3832_v60   ;;  %v2998_v2 = vmul.f32 %v2991_v37, %v9810_v55  ;;  %v4321_v40 = vand.u32 2147483647, %v4257_v23  ;;  %v5014_v45 = vsub.f32 1.0, %v4950_v12  ;;  %v3752_v54 = vld [vmem:[%s9661_s22 + $0x68] sm:$0xff]  ;;  %v9818_v23 = vld [vmem:[#allocation105_spill] sm:$0xff] }
 0x28b   :  { %v6326_v7 = vld [vmem:[%s9542_s4 + $0x28] sm:$0xff]  ;;  %v3169_v9 = vsel %vm1394_vm7, %v9812_v61, %v8524_v13 }
 0x28c   :  { %v2985_v38 = vpop.permute.xlu0 %2984  ;;  %v6591_v19 = vpack.c.bf16 %v2999_v21, %v2995_v18  ;;  %v6593_v42 = vpack.c.bf16 %v2998_v2, %v2994_v43  ;;  %v8652_v18 = vmax.f32 %v5013_v31, 0.0  ;;  %v9817_v21 = vld [vmem:[#allocation11_spill] sm:$0xff]  ;;  %v8666_v2 = vand.u32 2147483647, %v4258_v32 }
 0x28d   :  { %v2987_v47 = vsel %vm1171_vm6, %v9806_v3, %v2985_v38  ;;  %4157 = vperm.xlu1 %6846, %v3783_v58   ;;  %v2993_v60 = vsel %vm1171_vm6, %v2985_v38, %v9808_v39  ;;  %v2997_v3 = vmul.f32 %v2992_v8, %v9815_v59  ;;  %v9816_v39 = vld [vmem:[#allocation13_spill] sm:$0xff]  ;;  %v3178_v58 = vmul.f32 %v3171_v1, %v9817_v21  ;;  %v9819_v43 = vld [vmem:[#allocation103_spill] sm:$0xff] }
 0x28e   :  { %v3000_v20 = vmul.f32 %v2987_v47, %v9814_v63  ;;  %4822 = vperm.xlu0 %6845, %v3864_v48   ;;  %6592 = vmatprep.subr.bf16.mxu0 %v6591_v19  ;;  %v3001_v41 = vmul.f32 %v2993_v60, %v9815_v59  ;;  %v3177_v37 = vmul.f32 %v3173_v28, %v9816_v39  ;;  %v3847_v19 = vld [vmem:[%s9662_s26 + $0x160] sm:$0xff]  ;;  %v4385_v32 = vsub.f32 1.0, %v4321_v40  ;;  %v9822_v47 = vld [vmem:[#allocation33_spill] sm:$0xff] }
 0x28f   :  { %6594 = vmatpush1.bf16.msra.mxu0 %v6593_v42  ;;  %v3175_v48 = vsel %vm1394_vm7, %v8524_v13, %v9813_v29  ;;  %v8680_v61 = vmax.f32 %v5014_v45, 0.0  ;;  %v9820_v1 = vld [vmem:[#allocation35_spill] sm:$0xff]  ;;  %v9821_v13 = vld [vmem:[#allocation38_spill] sm:$0xff]  ;;  %v4289_v63 = vsub.f32 %v8183_v53, %v9822_v47  ;;  %v9824_v45 = vld [vmem:[#allocation12_spill] sm:$0xff] }
 0x290   :  { %v6597_v12 = vpack.c.bf16 %v3000_v20, %v2996_v0  ;;  %v3160_v10 = vpop.permute.xlu0 %3159  ;;  %v6595_v33 = vpack.c.bf16 %v3001_v41, %v2997_v3  ;;  %v4837_v28 = vsub.f32 %v8246_v26, %v9820_v1  ;;  %v4838_v29 = vsub.f32 %v8246_v26, %v9821_v13  ;;  %v3784_v42 = vld [vmem:[%s9661_s22 + $0x168] sm:$0xff]  ;;  %v9823_v0 = vld [vmem:[#allocation14_spill] sm:$0xff]  ;;  %v9830_v47 = vld [vmem:[#allocation109_spill] sm:$0xff] }
 0x291   :  { %v3172_v55 = vsel %vm1394_vm7, %v3160_v10, %v9818_v23  ;;  %v3174_v31 = vsel %vm1394_vm7, %v9819_v43, %v3160_v10  ;;  %4577 = vperm.xlu1 %6846, %v3815_v27   ;;  %v3179_v60 = vmul.f32 %v3169_v9, %v9823_v0  ;;  %v3180_v59 = vmul.f32 %v3175_v48, %v9824_v45  ;;  %v9825_v3 = vld [vmem:[#allocation104_spill] sm:$0xff]  ;;  %v3891_v9 = vld [vmem:[%s9539_s8 + $0xc0] sm:$0xff] }
 0x292   :  { %v3181_v8 = vmul.f32 %v3174_v31, %v9816_v39  ;;  %v3182_v38 = vmul.f32 %v3172_v55, %v9817_v21  ;;  %4002 = vperm.xlu0 %6845, %v3752_v54   ;;  %6327 = vmatmul.mubr.msk.f32.vlgmr.msra.gmra.mrb[4].mxu0 %vm2150_vm10, %v6326_v7  ;;  %v3356_v41 = vsel %vm1617_vm8, %v9825_v3, %v8564_v44  ;;  %v9826_v21 = vld [vmem:[#allocation106_spill] sm:$0xff]  ;;  %v4901_v55 = vand.u32 2147483647, %v4837_v28 }
 0x293   :  { %6596 = vmatprep.subr.bf16.mxu1 %v6595_v33  ;;  %3254 = vmatprep.mubr.f32.mxu0 %v9780_v22  ;;  %v4902_v33 = vand.u32 2147483647, %v4838_v29  ;;  %v8725_v48 = vmax.f32 %v4385_v32, 0.0 }
 0x294   :  { %v6601_v20 = vpack.c.bf16 %v3181_v8, %v3177_v37  ;;  %6598 = vmatpush1.bf16.msra.mxu1 %v6597_v12  ;;  %v3168_v27 = vpop.permute.xlu0 %3167  ;;  %v6599_v40 = vpack.c.bf16 %v3182_v38, %v3178_v58  ;;  %v4386_v37 = vsub.f32 1.0, %v8666_v2  ;;  %v3354_v58 = vsel %vm1617_vm8, %v8564_v44, %v9826_v21  ;;  %v3816_v44 = vld [vmem:[%s9662_s26 + $0x68] sm:$0xff]  ;;  %v6329_v2 = vld [vmem:[%s9542_s4 + $0x30] sm:$0xff] }
 0x295   :  { %v3170_v54 = vsel %vm1394_vm7, %v9818_v23, %v3168_v27  ;;  %v3176_v39 = vsel %vm1394_vm7, %v3168_v27, %v9819_v43  ;;  %4737 = vperm.xlu1 %6846, %v3847_v19   ;;  %v6629_v23 = vpack.c.bf16 %v8613_v16, %v8586_v6  ;;  %v9827_v43 = vld [vmem:[#allocation36_spill] sm:$0xff]  ;;  %v9828_v8 = vld [vmem:[#allocation17_spill] sm:$0xff]  ;;  %v8728_v19 = vpop.permute.xlu1 %3531  ;;  %v3358_v27 = vsel %vm1617_vm8, %v8621_v14, %v9825_v3 }
 0x296   :  { %v3183_v12 = vmul.f32 %v3170_v54, %v9823_v0  ;;  %v3184_v10 = vmul.f32 %v3176_v39, %v9824_v45  ;;  %4162 = vperm.xlu0 %6845, %v3784_v42   ;;  %6600 = vmatprep.subr.bf16.mxu0 %v6599_v40  ;;  %v4290_v31 = vsub.f32 %v8183_v53, %v9827_v43  ;;  %v9831_v0 = vld [vmem:[#allocation107_spill] sm:$0xff]  ;;  %v9833_v3 = vld [vmem:[#allocation40_spill] sm:$0xff] }
 0x297   :  { %6328 = vmatmul.mubr.msk.f32.vlgmr.msra.gmra.mrb[4].mxu1 %vm2150_vm10, %v6326_v7  ;;  %6602 = vmatpush1.bf16.msra.mxu0 %v6601_v20  ;;  %v3360_v38 = vmul.f32 %v3356_v41, %v9828_v8  ;;  %v9829_v7 = vld [vmem:[#allocation15_spill] sm:$0xff]  ;;  %v3352_v42 = vsel %vm1617_vm8, %v9826_v21, %v8621_v14  ;;  %v4965_v41 = vsub.f32 1.0, %v4901_v55  ;;  %v4966_v21 = vsub.f32 1.0, %v4902_v33  ;;  %v9863_v16 = vld [vmem:[#allocation44_spill] sm:$0xff] }
 0x298   :  { %v6605_v1 = vpack.c.bf16 %v3183_v12, %v3179_v60  ;;  %v3343_v28 = vpop.permute.xlu0 %3342  ;;  %v6603_v13 = vpack.c.bf16 %v3184_v10, %v3180_v59  ;;  %3325 = vmatprep.mubr.f32.mxu1 %v9780_v22  ;;  %v3361_v29 = vmul.f32 %v3354_v58, %v9829_v7  ;;  %v8742_v60 = vand.u32 2147483647, %v4289_v63  ;;  %v3923_v59 = vld [vmem:[%s9539_s8 + $0x1c0] sm:$0xff]  ;;  %v9832_v63 = vld [vmem:[#allocation37_spill] sm:$0xff]  ;;  %v3848_v14 = vld [vmem:[%s9662_s26 + $0x168] sm:$0xff] }
 0x299   :  { %v3355_v32 = vsel %vm1617_vm8, %v3343_v28, %v9830_v47  ;;  %v3357_v20 = vsel %vm1617_vm8, %v9831_v0, %v3343_v28  ;;  %5278 = vperm.xlu1 %6846, %v3891_v9   ;;  %v8754_v54 = vand.u32 2147483647, %v4290_v31  ;;  %v4869_v39 = vsub.f32 %v8246_v26, %v9832_v63  ;;  %v9834_v12 = vld [vmem:[#allocation18_spill] sm:$0xff] }
 0x29a   :  { %v3364_v40 = vmul.f32 %v3357_v20, %v9828_v8  ;;  %v3365_v45 = vmul.f32 %v3355_v32, %v9829_v7  ;;  %4582 = vperm.xlu0 %6845, %v3816_v44   ;;  %6330 = vmatmul.mubr.msk.f32.vlgmr.msra.gmra.mrb[4].mxu0 %vm2150_vm10, %v6329_v2  ;;  %v4870_v58 = vsub.f32 %v8246_v26, %v9833_v3  ;;  %v9835_v44 = vld [vmem:[#allocation16_spill] sm:$0xff]  ;;  %v9836_v8 = vld [vmem:[#allocation110_spill] sm:$0xff] }
 0x29b   :  { %6604 = vmatprep.subr.bf16.mxu1 %v6603_v13  ;;  %3437 = vmatprep.mubr.f32.mxu0 %v9780_v22  ;;  %v3362_v10 = vmul.f32 %v3352_v42, %v9834_v12  ;;  %v3363_v33 = vmul.f32 %v3358_v27, %v9835_v44  ;;  %v3537_v28 = vsel %vm1840_vm9, %v8672_v17, %v9836_v8  ;;  %v9837_v7 = vld [vmem:[#allocation108_spill] sm:$0xff]  ;;  %v4933_v20 = vand.u32 2147483647, %v4869_v39  ;;  %v9838_v39 = vld [vmem:[#allocation21_spill] sm:$0xff] }
 0x29c   :  { %v6609_v9 = vpack.c.bf16 %v3364_v40, %v3360_v38  ;;  %6606 = vmatpush1.bf16.msra.mxu1 %v6605_v1  ;;  %v8765_v55 = vpop.permute.xlu1 %4217  ;;  %v3351_v43 = vpop.permute.xlu0 %3350  ;;  %v6607_v31 = vpack.c.bf16 %v3365_v45, %v3361_v29  ;;  %v4450_v1 = vmax.f32 %v4386_v37, 0.0  ;;  %v3539_v29 = vsel %vm1840_vm9, %v9837_v7, %v8672_v17  ;;  %v3892_v17 = vld [vmem:[%s9539_s8 + $0xc8] sm:$0xff]  ;;  %v6332_v40 = vld [vmem:[%s9542_s4 + $0x38] sm:$0xff] }
 0x29d   :  { %v3353_v13 = vsel %vm1617_vm8, %v9830_v47, %v3351_v43  ;;  %v3359_v38 = vsel %vm1617_vm8, %v3351_v43, %v9831_v0  ;;  %5438 = vperm.xlu1 %6846, %v3923_v59   ;;  %v3875_v47 = vld [vmem:[%s9539_s8 + $0x40] sm:$0xff]  ;;  %v8789_v0 = vmul.f32 %v8652_v18, %v8580_v52  ;;  %v5029_v37 = vmax.f32 %v4965_v41, 0.0 }
 0x29e   :  { %v3366_v42 = vmul.f32 %v3353_v13, %v9834_v12  ;;  %v3367_v32 = vmul.f32 %v3359_v38, %v9835_v44  ;;  %4742 = vperm.xlu0 %6845, %v3848_v14   ;;  %6608 = vmatprep.subr.bf16.mxu0 %v6607_v31  ;;  %v5030_v27 = vmax.f32 %v4966_v21, 0.0  ;;  %v4417_v45 = vsub.f32 1.0, %v8742_v60  ;;  %v9839_v14 = vld [vmem:[#allocation19_spill] sm:$0xff]  ;;  %v9840_v12 = vld [vmem:[#allocation112_spill] sm:$0xff] }
 0x29f   :  { %6331 = vmatmul.mubr.msk.f32.vlgmr.msra.gmra.mrb[4].mxu1 %vm2150_vm10, %v6329_v2  ;;  %6610 = vmatpush1.bf16.msra.mxu0 %v6609_v9  ;;  %v4418_v59 = vsub.f32 1.0, %v8754_v54  ;;  %v8806_v2 = vld [vmem:[%s9544_s11] ss:$0 sm:$0xff]  ;;  %v3543_v21 = vmul.f32 %v3539_v29, %v9838_v39  ;;  %v3544_v3 = vmul.f32 %v3537_v28, %v9839_v14  ;;  %v4934_v43 = vand.u32 2147483647, %v4870_v58  ;;  %v3924_v29 = vld [vmem:[%s9539_s8 + $0x1c8] sm:$0xff] }
 0x2a0   :  { %v6613_v52 = vpack.c.bf16 %v3366_v42, %v3362_v10  ;;  %v8800_v18 = vpop.permute.xlu1 %4637  ;;  %v3526_v41 = vpop.permute.xlu0 %3525  ;;  %v6611_v63 = vpack.c.bf16 %v3367_v32, %v3363_v33  ;;  %3508 = vmatprep.mubr.f32.mxu1 %v9780_v22  ;;  %v9841_v10 = vld [vmem:[#allocation111_spill] sm:$0xff]  ;;  %v3535_v31 = vsel %vm1840_vm9, %v9836_v8, %v8728_v19  ;;  %v8827_v13 = vmul.f32 %v5029_v37, %v8725_v48  ;;  %v9843_v48 = vld [vmem:[#allocation62_spill] sm:$0xff] }
 0x2a1   :  { %v3538_v60 = vsel %vm1840_vm9, %v3526_v41, %v9840_v12  ;;  %v3540_v9 = vsel %vm1840_vm9, %v9841_v10, %v3526_v41  ;;  %5198 = vperm.xlu1 %6846, %v3875_v47   ;;  %v3907_v28 = vld [vmem:[%s9539_s8 + $0x140] sm:$0xff]  ;;  %v4997_v58 = vsub.f32 1.0, %v4933_v20  ;;  %v8829_v38 = vmul.f32 %v5030_v27, %v4450_v1 }
 0x2a2   :  { %v3547_v44 = vmul.f32 %v3540_v9, %v9838_v39  ;;  %v3548_v33 = vmul.f32 %v3538_v60, %v9839_v14  ;;  %5283 = vperm.xlu0 %6845, %v3892_v17   ;;  %6333 = vmatmul.mubr.msk.f32.vlgmr.msra.gmra.mrb[4].mxu0 %vm2150_vm10, %v6332_v40  ;;  %v3541_v8 = vsel %vm1840_vm9, %v8728_v19, %v9837_v7  ;;  %v9842_v42 = vld [vmem:[#allocation59_spill] sm:$0xff]  ;;  %v9845_v20 = vld [vmem:[#allocation22_spill] sm:$0xff]  ;;  %v4481_v60 = vmax.f32 %v4417_v45, 0.0 }
 0x2a3   :  { %6612 = vmatprep.subr.bf16.mxu1 %v6611_v63  ;;  %3620 = vmatprep.mubr.f32.mxu0 %v9780_v22  ;;  %vm5498_vm11 = vcmp.eq.f32.partialorder %v9842_v42, %v8806_v2  ;;  %vm5499_vm12 = vcmp.eq.f32.partialorder %v9843_v48, %v8806_v2  ;;  %v9844_v19 = vld [vmem:[#allocation39_spill] sm:$0xff]  ;;  %v3545_v27 = vmul.f32 %v3535_v31, %v9845_v20  ;;  %v4998_v63 = vsub.f32 1.0, %v4934_v43  ;;  %v9850_v31 = vld [vmem:[#allocation90_spill] sm:$0xff]  ;;  %v9852_v42 = vld [vmem:[#allocation61_spill] sm:$0xff] }
 0x2a4   :  { %v6617_v1 = vpack.c.bf16 %v3547_v44, %v3543_v21  ;;  %6614 = vmatpush1.bf16.msra.mxu1 %v6613_v52  ;;  %v8843_v32 = vpop.permute.xlu1 %4797  ;;  %v3534_v47 = vpop.permute.xlu0 %3533  ;;  %v6615_v37 = vpack.c.bf16 %v3548_v33, %v3544_v3  ;;  %v4275_v7 = vsub.f32 %v8183_v53, %v9844_v19  ;;  %v9846_v52 = vld [vmem:[#allocation20_spill] sm:$0xff]  ;;  %vm6624_vm13 = vmpackc.low %vm5499_vm12, %vm5498_vm11  ;;  %vm5482_vm14 = vcmp.eq.f32.partialorder %v9847_v34, %v8806_v2  ;;  %v6335_v9 = vld [vmem:[%s9542_s4 + $0x40] sm:$0xff] }
 0x2a5   :  { %v3536_v17 = vsel %vm1840_vm9, %v9840_v12, %v3534_v47  ;;  %v3542_v41 = vsel %vm1840_vm9, %v3534_v47, %v9841_v10  ;;  %5358 = vperm.xlu1 %6846, %v3907_v28   ;;  %v3546_v39 = vmul.f32 %v3541_v8, %v9846_v52  ;;  %v3769_v3 = vld [vmem:[%s9661_s22 + $0xf0] sm:$0xff]  ;;  %v9848_v12 = vld [vmem:[#allocation66_spill] sm:$0xff]  ;;  %v9849_v10 = vld [vmem:[#allocation87_spill] sm:$0xff]  ;;  %v5061_v43 = vmax.f32 %v4997_v58, 0.0 }
 0x2a6   :  { %v3549_v21 = vmul.f32 %v3536_v17, %v9845_v20  ;;  %v3550_v14 = vmul.f32 %v3542_v41, %v9846_v52  ;;  %5443 = vperm.xlu0 %6845, %v3924_v29   ;;  %6616 = vmatprep.subr.bf16.mxu0 %v6615_v37  ;;  %vm5483_vm15 = vcmp.eq.f32.partialorder %v9848_v12, %v8806_v2  ;;  %v3876_v45 = vld [vmem:[%s9539_s8 + $0x48] sm:$0xff]  ;;  %v9851_v29 = vld [vmem:[#allocation42_spill] sm:$0xff]  ;;  %v4482_v25 = vmax.f32 %v4418_v59, 0.0  ;;  %v9858_v20 = vld [vmem:[#allocation65_spill] sm:$0xff] }
 0x2a7   :  { %vm5500_vm0 = vcmp.eq.f32.partialorder %v9849_v10, %v8806_v2  ;;  %6334 = vmatmul.mubr.msk.f32.vlgmr.msra.gmra.mrb[4].mxu1 %vm2150_vm10, %v6332_v40  ;;  %6618 = vmatpush1.bf16.msra.mxu0 %v6617_v1  ;;  %vm5501_vm1 = vcmp.eq.f32.partialorder %v9850_v31, %v8806_v2  ;;  %v5142_v8 = vmul.f32 %v8680_v61, %v8634_v15  ;;  %v9853_v48 = vld [vmem:[#allocation64_spill] sm:$0xff]  ;;  %v9854_v1 = vld [vmem:[#allocation43_spill] sm:$0xff]  ;;  %vm6627_vm4 = vmpackc.low %vm5483_vm15, %vm5482_vm14  ;;  %v4339_v19 = vand.u32 2147483647, %v4275_v7 }
 0x2a8   :  { %v6621_v44 = vpack.c.bf16 %v3549_v21, %v3545_v27  ;;  %v8881_v33 = vpop.permute.xlu1 %3977  ;;  %6625 = vmatprep.subr.msk.bf16.mxu0 %vm6624_vm13, %v6623_v62  ;;  %v8886_v40 = vpop.permute.xlu0 %4642  ;;  %v6619_v28 = vpack.c.bf16 %v3550_v14, %v3546_v39  ;;  %3691 = vmatprep.mubr.f32.mxu1 %v9780_v22  ;;  %v4276_v58 = vsub.f32 %v8183_v53, %v9851_v29  ;;  %v5062_v62 = vmax.f32 %v4998_v63, 0.0  ;;  %v3801_v61 = vld [vmem:[%s9661_s22 + $0x1f0] sm:$0xff]  ;;  %v9855_v54 = vld [vmem:[#allocation46_spill] sm:$0xff]  ;;  %vm6630_vm5 = vmpackc.low %vm5501_vm1, %vm5500_vm0 }
 0x2a9   :  { %vm5530_vm2 = vcmp.eq.f32.partialorder %v9852_v42, %v8806_v2  ;;  %vm5531_vm3 = vcmp.eq.f32.partialorder %v9853_v48, %v8806_v2  ;;  %4087 = vperm.xlu1 %6846, %v3769_v3   ;;  %v6632_v30 = vpack.c.bf16 %v8829_v38, %v8827_v13  ;;  %v4855_v15 = vsub.f32 %v8246_v26, %v9854_v1  ;;  %v9856_v13 = vld [vmem:[#allocation91_spill] sm:$0xff]  ;;  %v9857_v38 = vld [vmem:[#allocation94_spill] sm:$0xff]  ;;  %v9859_v27 = vld [vmem:[#allocation68_spill] sm:$0xff] }
 0x2aa   :  { %5203 = vperm.xlu0 %6845, %v3876_v45   ;;  %6336 = vmatmul.mubr.msk.f32.vlgmr.msra.gmra.mrb[4].mxu0 %vm2150_vm10, %v6335_v9  ;;  %v4856_v59 = vsub.f32 %v8246_v26, %v9855_v54  ;;  %vm5484_vm6 = vcmp.eq.f32.partialorder %v9856_v13, %v8806_v2  ;;  %vm5485_vm7 = vcmp.eq.f32.partialorder %v9857_v38, %v8806_v2  ;;  %v3908_v47 = vld [vmem:[%s9539_s8 + $0x148] sm:$0xff]  ;;  %vm6672_vm8 = vmpackc.low %vm5531_vm3, %vm5530_vm2  ;;  %v4340_v17 = vand.u32 2147483647, %v4276_v58  ;;  %v9861_v41 = vld [vmem:[#allocation89_spill] sm:$0xff] }
 0x2ab   :  { %6620 = vmatprep.subr.bf16.mxu1 %v6619_v28  ;;  %6628 = vmatpush3.bf16.msk.msra.mxu0 %vm6627_vm4, %v6626_v5  ;;  %v5125_v37 = vmul.f32 %v5061_v43, %v4481_v60  ;;  %vm5514_vm9 = vcmp.eq.f32.partialorder %v9858_v20, %v8806_v2  ;;  %vm5515_vm11 = vcmp.eq.f32.partialorder %v9859_v27, %v8806_v2  ;;  %v9860_v5 = vld [vmem:[#allocation41_spill] sm:$0xff]  ;;  %v9862_v63 = vld [vmem:[#allocation92_spill] sm:$0xff]  ;;  %v4919_v6 = vand.u32 2147483647, %v4855_v15  ;;  %vm6633_vm14 = vmpackc.low %vm5485_vm7, %vm5484_vm6 }
 0x2ac   :  { %6622 = vmatpush1.bf16.msra.mxu1 %v6621_v44  ;;  %v8941_v57 = vpop.permute.xlu1 %4137  ;;  %6631 = vmatprep.subr.msk.bf16.mxu0 %vm6630_vm5, %v6629_v23  ;;  %v8946_v49 = vpop.permute.xlu0 %4802  ;;  %v4307_v7 = vsub.f32 %v8183_v53, %v9860_v5  ;;  %vm5532_vm12 = vcmp.eq.f32.partialorder %v9861_v41, %v8806_v2  ;;  %vm5533_vm13 = vcmp.eq.f32.partialorder %v9862_v63, %v8806_v2  ;;  %v9864_v39 = vld [vmem:[#allocation45_spill] sm:$0xff]  ;;  %v9865_v14 = vld [vmem:[#allocation48_spill] sm:$0xff]  ;;  %vm6675_vm15 = vmpackc.low %vm5515_vm11, %vm5514_vm9  ;;  %v4403_v45 = vsub.f32 1.0, %v4339_v19 }
 0x2ad   :  { %6673 = vmatprep.subr.msk.bf16.mxu1 %vm6672_vm8, %v6671_v24  ;;  %4247 = vperm.xlu1 %6846, %v3801_v61   ;;  %v5126_v52 = vmul.f32 %v5062_v62, %v4482_v25  ;;  %v4308_v23 = vsub.f32 %v8183_v53, %v9863_v16  ;;  %v4887_v21 = vsub.f32 %v8246_v26, %v9864_v39  ;;  %v4920_v24 = vand.u32 2147483647, %v4856_v59  ;;  %v3770_v60 = vld [vmem:[%s9661_s22 + $0xf8] sm:$0xff]  ;;  %vm6678_vm0 = vmpackc.low %vm5533_vm13, %vm5532_vm12  ;;  %v9867_v34 = vld [vmem:[#allocation96_spill] sm:$0xff] }
 0x2ae   :  { %5363 = vperm.xlu0 %6845, %v3908_v47   ;;  %v6677_v11 = vpack.c.bf16 %v5142_v8, %v8789_v0  ;;  %v4888_v3 = vsub.f32 %v8246_v26, %v9865_v14  ;;  %v9866_v0 = vld [vmem:[#allocation93_spill] sm:$0xff]  ;;  %vm5517_vm2 = vcmp.eq.f32.partialorder %v9867_v34, %v8806_v2  ;;  %v4404_v43 = vsub.f32 1.0, %v4340_v17  ;;  %v9869_v48 = vld [vmem:[#allocation50_spill] sm:$0xff]  ;;  %v9873_v16 = vld [vmem:[#allocation56_spill] sm:$0xff] }
 0x2af   :  { %6337 = vmatmul.mubr.msk.f32.vlgmr.msra.gmra.mrb[4].mxu1 %vm2150_vm10, %v6335_v9  ;;  %6634 = vmatpush3.bf16.msk.msra.mxu0 %vm6633_vm14, %v6632_v30  ;;  %vm5516_vm1 = vcmp.eq.f32.partialorder %v9866_v0, %v8806_v2  ;;  %v4371_v9 = vand.u32 2147483647, %v4307_v7  ;;  %v6680_v31 = vpack.c.bf16 %v5126_v52, %v5125_v37  ;;  %v4983_v44 = vsub.f32 1.0, %v4919_v6  ;;  %v3865_v29 = vld [vmem:[%s9662_s26 + $0x1f0] sm:$0xff]  ;;  %v3802_v42 = vld [vmem:[%s9661_s22 + $0x1f8] sm:$0xff]  ;;  %v9870_v30 = vld [vmem:[#allocation51_spill] sm:$0xff] }
 0x2b0   :  { %6676 = vmatpush3.bf16.msk.msra.mxu1 %vm6675_vm15, %v6674_v35  ;;  %v8996_v12 = vpop.permute.xlu1 %4557  ;;  %v8998_v10 = vpop.permute.xlu0 %3982  ;;  %v4372_v28 = vand.u32 2147483647, %v4308_v23  ;;  %v4951_v8 = vand.u32 2147483647, %v4887_v21  ;;  %v4984_v46 = vsub.f32 1.0, %v4920_v24  ;;  %v4259_v35 = vsub.f32 %v8183_v53, %v9868_v50  ;;  %vm6681_vm10 = vmpackc.low %vm5517_vm2, %vm5516_vm1  ;;  %v9871_v59 = vld [vmem:[#allocation58_spill] sm:$0xff] }
 0x2b1   :  { %6679 = vmatprep.subr.msk.bf16.mxu1 %vm6678_vm0, %v6677_v11  ;;  %4667 = vperm.xlu1 %6846, %v3833_v4   ;;  %v4952_v58 = vand.u32 2147483647, %v4888_v3  ;;  %v4260_v25 = vsub.f32 %v8183_v53, %v9869_v48  ;;  %v4839_v62 = vsub.f32 %v8246_v26, %v9870_v30  ;;  %v4467_v61 = vmax.f32 %v4403_v45, 0.0  ;;  %v3753_v20 = vld [vmem:[%s9661_s22 + $0x70] sm:$0xff]  ;;  %v3834_v63 = vld [vmem:[%s9662_s26 + $0xf8] sm:$0xff] }
 0x2b2   :  { %4092 = vperm.xlu0 %6845, %v3770_v60   ;;  %v4435_v54 = vsub.f32 1.0, %v4371_v9  ;;  %v4840_v13 = vsub.f32 %v8246_v26, %v9871_v59  ;;  %v4468_v38 = vmax.f32 %v4404_v43, 0.0  ;;  %v5047_v47 = vmax.f32 %v4983_v44, 0.0  ;;  %v9872_v17 = vld [vmem:[#allocation49_spill] sm:$0xff]  ;;  %v9875_v14 = vld [vmem:[#allocation60_spill] sm:$0xff] }
 0x2b3   :  { %v4436_v37 = vsub.f32 1.0, %v4372_v28  ;;  %v5015_v19 = vsub.f32 1.0, %v4951_v8  ;;  %v5048_v27 = vmax.f32 %v4984_v46, 0.0  ;;  %v4323_v5 = vand.u32 2147483647, %v4259_v35  ;;  %v9874_v39 = vld [vmem:[#allocation57_spill] sm:$0xff] }
 0x2b4   :  { %6682 = vmatpush3.bf16.msk.msra.mxu1 %vm6681_vm10, %v6680_v31  ;;  %v9018_v1 = vpop.permute.xlu1 %4717  ;;  %v9020_v15 = vpop.permute.xlu0 %4142  ;;  %v5016_v7 = vsub.f32 1.0, %v4952_v58  ;;  %v4291_v41 = vsub.f32 %v8183_v53, %v9872_v17  ;;  %v4324_v52 = vand.u32 2147483647, %v4260_v25  ;;  %v4903_v6 = vand.u32 2147483647, %v4839_v62  ;;  %v3785_v9 = vld [vmem:[%s9661_s22 + $0x170] sm:$0xff] }
 0x2b5   :  { %4827 = vperm.xlu1 %6846, %v3865_v29   ;;  %v4292_v23 = vsub.f32 %v8183_v53, %v9873_v16  ;;  %v4871_v21 = vsub.f32 %v8246_v26, %v9874_v39  ;;  %v4904_v24 = vand.u32 2147483647, %v4840_v13  ;;  %v4872_v3 = vsub.f32 %v8246_v26, %v9875_v14  ;;  %v3866_v8 = vld [vmem:[%s9662_s26 + $0x1f8] sm:$0xff]  ;;  %v3817_v62 = vld [vmem:[%s9662_s26 + $0x70] sm:$0xff] }
 0x2b6   :  { %4252 = vperm.xlu0 %6845, %v3802_v42   ;;  %v4499_v60 = vmax.f32 %v4435_v54, 0.0  ;;  %v5111_v0 = vmul.f32 %v5047_v47, %v4467_v61  ;;  %v4500_v34 = vmax.f32 %v4436_v37, 0.0  ;;  %v5079_v45 = vmax.f32 %v5015_v19, 0.0 }
 0x2b7   :  { %v5112_v43 = vmul.f32 %v5048_v27, %v4468_v38  ;;  %v4387_v31 = vsub.f32 1.0, %v4323_v5  ;;  %v5080_v44 = vmax.f32 %v5016_v7, 0.0  ;;  %v4355_v28 = vand.u32 2147483647, %v4291_v41  ;;  %v3754_v38 = vld [vmem:[%s9661_s22 + $0x78] sm:$0xff]  ;;  %v3849_v41 = vld [vmem:[%s9662_s26 + $0x170] sm:$0xff] }
 0x2b8   :  { %v5259_v4 = vpop.permute.xlu1 %5258  ;;  %v9036_v11 = vpop.permute.xlu0 %4562  ;;  %v4388_v29 = vsub.f32 1.0, %v4324_v52  ;;  %v4967_v46 = vsub.f32 1.0, %v4903_v6  ;;  %v4356_v50 = vand.u32 2147483647, %v4292_v23  ;;  %v4935_v35 = vand.u32 2147483647, %v4871_v21 }
 0x2b9   :  { %4007 = vperm.xlu1 %6846, %v3753_v20   ;;  %v4968_v48 = vsub.f32 1.0, %v4904_v24  ;;  %v4936_v25 = vand.u32 2147483647, %v4872_v3  ;;  %v5143_v30 = vmul.f32 %v5079_v45, %v4499_v60  ;;  %v6635_v61 = vpack.c.bf16 %v5112_v43, %v5111_v0  ;;  %v3786_v52 = vld [vmem:[%s9661_s22 + $0x178] sm:$0xff]  ;;  %v3893_v3 = vld [vmem:[%s9539_s8 + $0xd0] sm:$0xff] }
 0x2ba   :  { %4672 = vperm.xlu0 %6845, %v3834_v63   ;;  %v4451_v54 = vmax.f32 %v4387_v31, 0.0  ;;  %v5144_v59 = vmul.f32 %v5080_v44, %v4500_v34  ;;  %v4419_v13 = vsub.f32 1.0, %v4355_v28  ;;  %v4452_v47 = vmax.f32 %v4388_v29, 0.0  ;;  %v3818_v60 = vld [vmem:[%s9662_s26 + $0x78] sm:$0xff]  ;;  %v3925_v31 = vld [vmem:[%s9539_s8 + $0x1d0] sm:$0xff] }
 0x2bb   :  { %v5031_v37 = vmax.f32 %v4967_v46, 0.0  ;;  %v4420_v19 = vsub.f32 1.0, %v4356_v50  ;;  %v4999_v20 = vsub.f32 1.0, %v4935_v35  ;;  %v5032_v7 = vmax.f32 %v4968_v48, 0.0  ;;  %v3850_v28 = vld [vmem:[%s9662_s26 + $0x178] sm:$0xff] }
 0x2bc   :  { %v5419_v58 = vpop.permute.xlu1 %5418  ;;  %v9046_v42 = vpop.permute.xlu0 %4722  ;;  %v5000_v17 = vsub.f32 1.0, %v4936_v25  ;;  %vm5502_vm3 = vcmp.eq.f32.partialorder %v5259_v4, %v8806_v2  ;;  %v4483_v63 = vmax.f32 %v4419_v13, 0.0  ;;  %v6683_v6 = vpack.c.bf16 %v5144_v59, %v5143_v30  ;;  %v3877_v25 = vld [vmem:[%s9539_s8 + $0x50] sm:$0xff] }
 0x2bd   :  { %4167 = vperm.xlu1 %6846, %v3785_v9   ;;  %v5095_v16 = vmul.f32 %v5031_v37, %v4451_v54  ;;  %v4484_v23 = vmax.f32 %v4420_v19, 0.0  ;;  %v5063_v39 = vmax.f32 %v4999_v20, 0.0  ;;  %v5096_v24 = vmul.f32 %v5032_v7, %v4452_v47  ;;  %v9878_v59 = vld [vmem:[#allocation69_spill] sm:$0xff]  ;;  %v9879_v37 = vld [vmem:[#allocation70_spill] sm:$0xff] }
 0x2be   :  { %4832 = vperm.xlu0 %6845, %v3866_v8   ;;  %v5064_v14 = vmax.f32 %v5000_v17, 0.0  ;;  %vm5534_vm6 = vcmp.eq.f32.partialorder %v5419_v58, %v8806_v2  ;;  %v9876_v8 = vld [vmem:[#allocation67_spill] sm:$0xff]  ;;  %v4309_v13 = vsub.f32 %v8183_v53, %v9878_v59  ;;  %v4278_v19 = vsub.f32 %v8183_v53, %v9879_v37  ;;  %v9880_v20 = vld [vmem:[#allocation73_spill] sm:$0xff]  ;;  %v9881_v17 = vld [vmem:[#allocation72_spill] sm:$0xff] }
 0x2bf   :  { %v5127_v0 = vmul.f32 %v5063_v39, %v4483_v63  ;;  %v6638_v9 = vpack.c.bf16 %v5096_v24, %v5095_v16  ;;  %v4277_v29 = vsub.f32 %v8183_v53, %v9876_v8  ;;  %v9877_v58 = vld [vmem:[#allocation71_spill] sm:$0xff]  ;;  %v9882_v63 = vld [vmem:[#allocation74_spill] sm:$0xff] }
 0x2c0   :  { %v5179_v27 = vpop.permute.xlu1 %5178  ;;  %v5264_v5 = vpop.permute.xlu0 %5263  ;;  %v5128_v43 = vmul.f32 %v5064_v14, %v4484_v23  ;;  %v4857_v48 = vsub.f32 %v8246_v26, %v9877_v58  ;;  %v4373_v24 = vand.u32 2147483647, %v4309_v13 }
 0x2c1   :  { %vm5503_vm4 = vcmp.eq.f32.partialorder %v5264_v5, %v8806_v2  ;;  %4587 = vperm.xlu1 %6846, %v3817_v62   ;;  %vm5486_vm9 = vcmp.eq.f32.partialorder %v5179_v27, %v8806_v2  ;;  %v4341_v54 = vand.u32 2147483647, %v4277_v29  ;;  %v4889_v27 = vsub.f32 %v8246_v26, %v9880_v20 }
 0x2c2   :  { %vm6636_vm5 = vmpackc.low %vm5503_vm4, %vm5502_vm3  ;;  %4012 = vperm.xlu0 %6845, %v3754_v38   ;;  %v6686_v35 = vpack.c.bf16 %v5128_v43, %v5127_v0  ;;  %v4921_v7 = vand.u32 2147483647, %v4857_v48  ;;  %v4437_v48 = vsub.f32 1.0, %v4373_v24 }
 0x2c3   :  { %6637 = vmatprep.subr.msk.bf16.mxu0 %vm6636_vm5, %v6635_v61  ;;  %v3894_v61 = vld [vmem:[%s9539_s8 + $0xd8] sm:$0xff]  ;;  %v4953_v0 = vand.u32 2147483647, %v4889_v27 }
 0x2c4   :  { %v5339_v21 = vpop.permute.xlu1 %5338  ;;  %v5424_v4 = vpop.permute.xlu0 %5423  ;;  %v4985_v43 = vsub.f32 1.0, %v4921_v7 }
 0x2c5   :  { %vm5535_vm7 = vcmp.eq.f32.partialorder %v5424_v4, %v8806_v2  ;;  %4747 = vperm.xlu1 %6846, %v3849_v41   ;;  %vm5518_vm13 = vcmp.eq.f32.partialorder %v5339_v21, %v8806_v2  ;;  %v4310_v41 = vsub.f32 %v8183_v53, %v9881_v17  ;;  %v3926_v21 = vld [vmem:[%s9539_s8 + $0x1d8] sm:$0xff]  ;;  %v4405_v4 = vsub.f32 1.0, %v4341_v54  ;;  %v9883_v54 = vld [vmem:[#allocation75_spill] sm:$0xff] }
 0x2c6   :  { %vm6684_vm8 = vmpackc.low %vm5535_vm7, %vm5534_vm6  ;;  %4172 = vperm.xlu0 %6845, %v3786_v52   ;;  %v4858_v52 = vsub.f32 %v8246_v26, %v9882_v63  ;;  %v4261_v59 = vsub.f32 %v8183_v53, %v9883_v54 }
 0x2c7   :  { %6685 = vmatprep.subr.msk.bf16.mxu1 %vm6684_vm8, %v6683_v6  ;;  %v3909_v6 = vld [vmem:[%s9539_s8 + $0x150] sm:$0xff]  ;;  %v4469_v58 = vmax.f32 %v4405_v4, 0.0 }
 0x2c8   :  { %v4068_v34 = vpop.permute.xlu1 %4067  ;;  %v5184_v45 = vpop.permute.xlu0 %5183  ;;  %v9130_v24 = vand.u32 2147483647, %v4261_v59 }
 0x2c9   :  { %vm5487_vm11 = vcmp.eq.f32.partialorder %v5184_v45, %v8806_v2  ;;  %5288 = vperm.xlu1 %6846, %v3893_v3   ;;  %v4281_v44 = vsub.f32 %v8183_v53, %v4068_v34 }
 0x2ca   :  { %vm6639_vm12 = vmpackc.low %vm5487_vm11, %vm5486_vm9  ;;  %4592 = vperm.xlu0 %6845, %v3818_v60   ;;  %v4342_v60 = vand.u32 2147483647, %v4278_v19  ;;  %v5049_v19 = vmax.f32 %v4985_v43, 0.0 }
 0x2cb   :  { %6640 = vmatpush3.bf16.msk.msra.mxu0 %vm6639_vm12, %v6638_v9  ;;  %v4345_v30 = vand.u32 2147483647, %v4281_v44  ;;  %v4922_v44 = vand.u32 2147483647, %v4858_v52  ;;  %v3910_v52 = vld [vmem:[%s9539_s8 + $0x158] sm:$0xff] }
 0x2cc   :  { %v4228_v46 = vpop.permute.xlu1 %4227  ;;  %v5344_v50 = vpop.permute.xlu0 %5343  ;;  %v4406_v37 = vsub.f32 1.0, %v4342_v60 }
 0x2cd   :  { %vm5519_vm14 = vcmp.eq.f32.partialorder %v5344_v50, %v8806_v2  ;;  %5448 = vperm.xlu1 %6846, %v3925_v31   ;;  %v4313_v62 = vsub.f32 %v8183_v53, %v4228_v46  ;;  %v4409_v16 = vsub.f32 1.0, %v4345_v30  ;;  %v4374_v31 = vand.u32 2147483647, %v4310_v41 }
 0x2ce   :  { %vm6687_vm15 = vmpackc.low %vm5519_vm14, %vm5518_vm13  ;;  %4752 = vperm.xlu0 %6845, %v3850_v28   ;;  %v3895_v28 = vld [vmem:[%s9539_s8 + $0xe0] sm:$0xff]  ;;  %v4986_v7 = vsub.f32 1.0, %v4922_v44  ;;  %v9144_v44 = vmul.f32 %v5049_v19, %v4469_v58 }
 0x2cf   :  { %6688 = vmatpush3.bf16.msk.msra.mxu1 %vm6687_vm15, %v6686_v35  ;;  %v4377_v23 = vand.u32 2147483647, %v4313_v62  ;;  %v4473_v8 = vmax.f32 %v4409_v16, 0.0  ;;  %v3878_v35 = vld [vmem:[%s9539_s8 + $0x58] sm:$0xff]  ;;  %v4438_v20 = vsub.f32 1.0, %v4374_v31  ;;  %v3879_v31 = vld [vmem:[%s9539_s8 + $0x60] sm:$0xff] }
 0x2d0   :  { %v4648_v38 = vpop.permute.xlu1 %4647  ;;  %v4073_v47 = vpop.permute.xlu0 %4072 }
 0x2d1   :  { %v4861_v5 = vsub.f32 %v8246_v26, %v4648_v38  ;;  %5208 = vperm.xlu1 %6846, %v3877_v25   ;;  %v4282_v14 = vsub.f32 %v8183_v53, %v4073_v47  ;;  %v4441_v29 = vsub.f32 1.0, %v4377_v23 }
 0x2d2   :  { %5293 = vperm.xlu0 %6845, %v3894_v61   ;;  %v5017_v61 = vsub.f32 1.0, %v4953_v0 }
 0x2d3   :  { %v4925_v39 = vand.u32 2147483647, %v4861_v5  ;;  %v4346_v25 = vand.u32 2147483647, %v4282_v14  ;;  %v3927_v5 = vld [vmem:[%s9539_s8 + $0x1e0] sm:$0xff]  ;;  %v4505_v17 = vmax.f32 %v4441_v29, 0.0 }
 0x2d4   :  { %v4808_v3 = vpop.permute.xlu1 %4807  ;;  %v4233_v9 = vpop.permute.xlu0 %4232  ;;  %v5081_v4 = vmax.f32 %v5017_v61, 0.0  ;;  %v9884_v14 = vld [vmem:[#allocation77_spill] sm:$0xff]  ;;  %v4389_v61 = vsub.f32 1.0, %v9130_v24 }
 0x2d5   :  { %v4989_v34 = vsub.f32 1.0, %v4925_v39  ;;  %v4893_v45 = vsub.f32 %v8246_v26, %v4808_v3  ;;  %5368 = vperm.xlu1 %6846, %v3909_v6   ;;  %v4314_v30 = vsub.f32 %v8183_v53, %v4233_v9  ;;  %v4501_v6 = vmax.f32 %v4437_v48, 0.0 }
 0x2d6   :  { %5453 = vperm.xlu0 %6845, %v3926_v21   ;;  %v4410_v16 = vsub.f32 1.0, %v4346_v25  ;;  %v4890_v3 = vsub.f32 %v8246_v26, %v9884_v14 }
 0x2d7   :  { %v5053_v46 = vmax.f32 %v4989_v34, 0.0  ;;  %v4957_v50 = vand.u32 2147483647, %v4893_v45  ;;  %v4378_v23 = vand.u32 2147483647, %v4314_v30  ;;  %v9136_v34 = vmax.f32 %v4406_v37, 0.0 }
 0x2d8   :  { %v3988_v62 = vpop.permute.xlu1 %3987  ;;  %v4653_v47 = vpop.permute.xlu0 %4652  ;;  %v9138_v45 = vmax.f32 %v4438_v20, 0.0  ;;  %v4954_v54 = vand.u32 2147483647, %v4890_v3  ;;  %v9886_v37 = vld [vmem:[#allocation83_spill] sm:$0xff]  ;;  %v9888_v3 = vld [vmem:[#allocation86_spill] sm:$0xff] }
 0x2d9   :  { %v9120_v13 = vmul.f32 %v5053_v46, %v4473_v8  ;;  %v5021_v38 = vsub.f32 1.0, %v4957_v50  ;;  %5298 = vperm.xlu1 %6846, %v3895_v28   ;;  %v4862_v27 = vsub.f32 %v8246_v26, %v4653_v47  ;;  %v4265_v63 = vsub.f32 %v8183_v53, %v3988_v62  ;;  %v3896_v46 = vld [vmem:[%s9539_s8 + $0xe8] sm:$0xff] }
 0x2da   :  { %5213 = vperm.xlu0 %6845, %v3878_v35   ;;  %v5050_v28 = vmax.f32 %v4986_v7, 0.0  ;;  %v4474_v50 = vmax.f32 %v4410_v16, 0.0  ;;  %v4442_v35 = vsub.f32 1.0, %v4378_v23  ;;  %v9150_v62 = vmul.f32 %v5081_v4, %v4501_v6  ;;  %v9887_v7 = vld [vmem:[#allocation80_spill] sm:$0xff] }
 0x2db   :  { %v5085_v41 = vmax.f32 %v5021_v38, 0.0  ;;  %v4926_v39 = vand.u32 2147483647, %v4862_v27  ;;  %v4329_v8 = vand.u32 2147483647, %v4265_v63  ;;  %v9885_v38 = vld [vmem:[#allocation82_spill] sm:$0xff]  ;;  %v4841_v19 = vsub.f32 %v8246_v26, %v9886_v37 }
 0x2dc   :  { %v4148_v21 = vpop.permute.xlu1 %4147  ;;  %v4813_v0 = vpop.permute.xlu0 %4812  ;;  %v4262_v47 = vsub.f32 %v8183_v53, %v9885_v38  ;;  %v3928_v6 = vld [vmem:[%s9539_s8 + $0x1e8] sm:$0xff]  ;;  %v4506_v16 = vmax.f32 %v4442_v35, 0.0  ;;  %v5018_v14 = vsub.f32 1.0, %v4954_v54  ;;  %v9890_v38 = vld [vmem:[#allocation85_spill] sm:$0xff] }
 0x2dd   :  { %v9134_v60 = vmul.f32 %v5085_v41, %v4505_v17  ;;  %5458 = vperm.xlu1 %6846, %v3927_v5   ;;  %v4990_v9 = vsub.f32 1.0, %v4926_v39  ;;  %v4894_v43 = vsub.f32 %v8246_v26, %v4813_v0  ;;  %v4297_v29 = vsub.f32 %v8183_v53, %v4148_v21  ;;  %v3911_v5 = vld [vmem:[%s9539_s8 + $0x160] sm:$0xff] }
 0x2de   :  { %5373 = vperm.xlu0 %6845, %v3910_v52   ;;  %v4293_v17 = vsub.f32 %v8183_v53, %v9887_v7  ;;  %v4393_v41 = vsub.f32 1.0, %v4329_v8  ;;  %v4842_v0 = vsub.f32 %v8246_v26, %v9888_v3  ;;  %v4326_v8 = vand.u32 2147483647, %v4262_v47 }
 0x2df   :  { %v5054_v48 = vmax.f32 %v4990_v9, 0.0  ;;  %v4958_v25 = vand.u32 2147483647, %v4894_v43  ;;  %v4361_v63 = vand.u32 2147483647, %v4297_v29  ;;  %v4873_v47 = vsub.f32 %v8246_v26, %v9890_v38 }
 0x2e0   :  { %v4568_v30 = vpop.permute.xlu1 %4567  ;;  %v3993_v59 = vpop.permute.xlu0 %3992  ;;  %v4905_v29 = vand.u32 2147483647, %v4841_v19  ;;  %v4906_v7 = vand.u32 2147483647, %v4842_v0  ;;  %v4357_v3 = vand.u32 2147483647, %v4293_v17 }
 0x2e1   :  { %v4845_v58 = vsub.f32 %v8246_v26, %v4568_v30  ;;  %5218 = vperm.xlu1 %6846, %v3879_v31   ;;  %v9158_v20 = vmul.f32 %v5054_v48, %v4474_v50  ;;  %v5022_v27 = vsub.f32 1.0, %v4958_v25  ;;  %v4266_v21 = vsub.f32 %v8183_v53, %v3993_v59  ;;  %v3897_v48 = vld [vmem:[%s9539_s8 + $0xf0] sm:$0xff]  ;;  %v3880_v59 = vld [vmem:[%s9539_s8 + $0x68] sm:$0xff] }
 0x2e2   :  { %5303 = vperm.xlu0 %6845, %v3896_v46   ;;  %v9889_v46 = vld [vmem:[#allocation84_spill] sm:$0xff]  ;;  %v4457_v25 = vmax.f32 %v4393_v41, 0.0  ;;  %v4425_v30 = vsub.f32 1.0, %v4361_v63  ;;  %v4390_v0 = vsub.f32 1.0, %v4326_v8 }
 0x2e3   :  { %v4909_v52 = vand.u32 2147483647, %v4845_v58  ;;  %v6653_v23 = vpack.c.bf16 %v9158_v20, %v9120_v13  ;;  %v5086_v39 = vmax.f32 %v5022_v27, 0.0  ;;  %v4294_v50 = vsub.f32 %v8183_v53, %v9889_v46 }
 0x2e4   :  { %v4728_v4 = vpop.permute.xlu1 %4727  ;;  %v4153_v31 = vpop.permute.xlu0 %4152  ;;  %v4330_v19 = vand.u32 2147483647, %v4266_v21  ;;  %v3929_v21 = vld [vmem:[%s9539_s8 + $0x1f0] sm:$0xff] }
 0x2e5   :  { %v4973_v9 = vsub.f32 1.0, %v4909_v52  ;;  %v4877_v43 = vsub.f32 %v8246_v26, %v4728_v4  ;;  %5378 = vperm.xlu1 %6846, %v3911_v5   ;;  %v9176_v35 = vmul.f32 %v5086_v39, %v4506_v16  ;;  %v4298_v27 = vsub.f32 %v8183_v53, %v4153_v31  ;;  %v9891_v52 = vld [vmem:[#allocation88_spill] sm:$0xff] }
 0x2e6   :  { %5463 = vperm.xlu0 %6845, %v3928_v6   ;;  %v4874_v41 = vsub.f32 %v8246_v26, %v9891_v52  ;;  %v5114_v39 = vmul.f32 %v5050_v28, %v9136_v34  ;;  %v5082_v4 = vmax.f32 %v5018_v14, 0.0  ;;  %v4489_v31 = vmax.f32 %v4425_v30, 0.0 }
 0x2e7   :  { %v5037_v54 = vmax.f32 %v4973_v9, 0.0  ;;  %v4941_v58 = vand.u32 2147483647, %v4877_v43  ;;  %v6701_v37 = vpack.c.bf16 %v9176_v35, %v9134_v60  ;;  %v4358_v43 = vand.u32 2147483647, %v4294_v50 }
 0x2e8   :  { %v5269_v5 = vpop.permute.xlu1 %5268  ;;  %v4573_v16 = vpop.permute.xlu0 %4572  ;;  %v4362_v34 = vand.u32 2147483647, %v4298_v27  ;;  %v4937_v14 = vand.u32 2147483647, %v4873_v47  ;;  %v6641_v8 = vpack.c.bf16 %v5114_v39, %v9144_v44  ;;  %v4453_v50 = vmax.f32 %v4389_v61, 0.0  ;;  %v3898_v44 = vld [vmem:[%s9539_s8 + $0xf8] sm:$0xff] }
 0x2e9   :  { %v9191_v63 = vmul.f32 %v5037_v54, %v4457_v25  ;;  %v5005_v6 = vsub.f32 1.0, %v4941_v58  ;;  %5308 = vperm.xlu1 %6846, %v3897_v48   ;;  %v4846_v9 = vsub.f32 %v8246_v26, %v4573_v16  ;;  %v3912_v25 = vld [vmem:[%s9539_s8 + $0x168] sm:$0xff]  ;;  %v4969_v48 = vsub.f32 1.0, %v4905_v29  ;;  %v3702_v29 = vld [vmem:[%s9545_s5] sm:$0xff] }
 0x2ea   :  { %5223 = vperm.xlu0 %6845, %v3880_v59   ;;  %v4394_v54 = vsub.f32 1.0, %v4330_v19  ;;  %v4970_v58 = vsub.f32 1.0, %v4906_v7  ;;  %v4938_v59 = vand.u32 2147483647, %v4874_v41  ;;  %v5146_v47 = vmul.f32 %v5082_v4, %v9138_v45 }
 0x2eb   :  { %v5069_v46 = vmax.f32 %v5005_v6, 0.0  ;;  %v4910_v28 = vand.u32 2147483647, %v4846_v9  ;;  %v4421_v19 = vsub.f32 1.0, %v4357_v3  ;;  %v4454_v27 = vmax.f32 %v4390_v0, 0.0  ;;  %v3882_v3 = vld [vmem:[%s9539_s8 + $0x78] sm:$0xff] }
 0x2ec   :  { %v5429_v17 = vpop.permute.xlu1 %5428  ;;  %v4733_v52 = vpop.permute.xlu0 %4732  ;;  %v4422_v7 = vsub.f32 1.0, %v4358_v43  ;;  %v4458_v41 = vmax.f32 %v4394_v54, 0.0  ;;  %v4426_v24 = vsub.f32 1.0, %v4362_v34  ;;  %v5033_v9 = vmax.f32 %v4969_v48, 0.0  ;;  %v3930_v43 = vld [vmem:[%s9539_s8 + $0x1f8] sm:$0xff] }
 0x2ed   :  { %v9201_v38 = vmul.f32 %v5069_v46, %v4489_v31  ;;  %5468 = vperm.xlu1 %6846, %v3929_v21   ;;  %v4974_v30 = vsub.f32 1.0, %v4910_v28  ;;  %v4878_v6 = vsub.f32 %v8246_v26, %v4733_v52  ;;  %v5001_v21 = vsub.f32 1.0, %v4937_v14 }
 0x2ee   :  { %5383 = vperm.xlu0 %6845, %v3912_v25   ;;  %v5034_v31 = vmax.f32 %v4970_v58, 0.0  ;;  %v5002_v46 = vsub.f32 1.0, %v4938_v59  ;;  %vm5504_vm0 = vcmp.eq.f32.partialorder %v5269_v5, %v8806_v2  ;;  %v4485_v0 = vmax.f32 %v4421_v19, 0.0 }
 0x2ef   :  { %v5038_v61 = vmax.f32 %v4974_v30, 0.0  ;;  %v4942_v16 = vand.u32 2147483647, %v4878_v6  ;;  %v6689_v48 = vpack.c.bf16 %v5146_v47, %v9150_v62  ;;  %v4490_v54 = vmax.f32 %v4426_v24, 0.0  ;;  %v3914_v62 = vld [vmem:[%s9539_s8 + $0x178] sm:$0xff]  ;;  %v3913_v24 = vld [vmem:[%s9539_s8 + $0x170] sm:$0xff] }
 0x2f0   :  { %v5189_v39 = vpop.permute.xlu1 %5188  ;;  %v5274_v25 = vpop.permute.xlu0 %5273  ;;  %v5097_v14 = vmul.f32 %v5033_v9, %v4453_v50  ;;  %v4486_v58 = vmax.f32 %v4422_v7, 0.0  ;;  %v5065_v59 = vmax.f32 %v5001_v21, 0.0  ;;  %v5098_v52 = vmul.f32 %v5034_v31, %v4454_v27 }
 0x2f1   :  { %3705 = vperm.xlu1 %6846, %v3702_v29   ;;  %v9215_v45 = vmul.f32 %v5038_v61, %v4458_v41  ;;  %v5006_v4 = vsub.f32 1.0, %v4942_v16  ;;  %vm5505_vm1 = vcmp.eq.f32.partialorder %v5274_v25, %v8806_v2  ;;  %v5066_v6 = vmax.f32 %v5002_v46, 0.0  ;;  %v5954_v46 = vld [vmem:[%s9546_s15] sm:$0xff] }
 0x2f2   :  { %5313 = vperm.xlu0 %6845, %v3898_v44   ;;  %vm6642_vm2 = vmpackc.low %vm5505_vm1, %vm5504_vm0  ;;  %vm5536_vm10 = vcmp.eq.f32.partialorder %v5429_v17, %v8806_v2  ;;  %v5129_v17 = vmul.f32 %v5065_v59, %v4485_v0  ;;  %v6644_v27 = vpack.c.bf16 %v5098_v52, %v5097_v14  ;;  %vm5488_vm5 = vcmp.eq.f32.partialorder %v5189_v39, %v8806_v2  ;;  %v5955_v44 = vld [vmem:[%s9546_s15 + $0x8] sm:$0xff]  ;;  %v5957_v39 = vld [vmem:[%s9546_s15 + $0x18] sm:$0xff] }
 0x2f3   :  { %v6656_v5 = vpack.c.bf16 %v9215_v45, %v9191_v63  ;;  %v5070_v34 = vmax.f32 %v5006_v4, 0.0  ;;  %6643 = vmatprep.subr.msk.bf16.mxu0 %vm6642_vm2, %v6641_v8  ;;  %v3881_v8 = vld [vmem:[%s9539_s8 + $0x70] sm:$0xff]  ;;  %v5130_v7 = vmul.f32 %v5066_v6, %v4486_v58  ;;  %v9892_v25 = vld [vmem:[#allocation95_spill] sm:$0xff]  ;;  %v4859_v0 = vsub.f32 %v8246_v26, %v8800_v18 }
 0x2f4   :  { %v5349_v28 = vpop.permute.xlu1 %5348  ;;  %v4279_v4 = vsub.f32 %v8183_v53, %v9892_v25  ;;  %v5956_v58 = vld [vmem:[%s9546_s15 + $0x10] sm:$0xff] }
 0x2f5   :  { %v5434_v30 = vpop.permute.xlu0 %5433  ;;  %5233 = vperm.xlu1 %6846, %v3882_v3   ;;  %v9228_v29 = vmul.f32 %v5070_v34, %v4490_v54  ;;  %v6692_v9 = vpack.c.bf16 %v5130_v7, %v5129_v17  ;;  %vm5520_vm8 = vcmp.eq.f32.partialorder %v5349_v28, %v8806_v2  ;;  %v4280_v3 = vsub.f32 %v8183_v53, %v8526_v56  ;;  %v5991_v34 = vld [vmem:[%s9547_s17 + $0x8] sm:$0xff] }
 0x2f6   :  { %vm5537_vm3 = vcmp.eq.f32.partialorder %v5434_v30, %v8806_v2  ;;  %5473 = vperm.xlu0 %6845, %v3930_v43   ;;  %v4312_v54 = vsub.f32 %v8183_v53, %v8555_v51  ;;  %v4343_v18 = vand.u32 2147483647, %v4279_v4  ;;  %v4311_v51 = vsub.f32 %v8183_v53, %v8765_v55  ;;  %v5990_v55 = vld [vmem:[%s9547_s17] sm:$0xff] }
 0x2f7   :  { %vm6690_vm4 = vmpackc.low %vm5537_vm3, %vm5536_vm10  ;;  %v6704_v50 = vpack.c.bf16 %v9228_v29, %v9201_v38  ;;  %v4344_v59 = vand.u32 2147483647, %v4280_v3  ;;  %v4923_v6 = vand.u32 2147483647, %v4859_v0 }
 0x2f8   :  { %6691 = vmatprep.subr.msk.bf16.mxu1 %vm6690_vm4, %v6689_v48  ;;  %v4078_v47 = vpop.permute.xlu1 %4077  ;;  %v4376_v17 = vand.u32 2147483647, %v4312_v54 }
 0x2f9   :  { %v5194_v19 = vpop.permute.xlu0 %5193  ;;  %5393 = vperm.xlu1 %6846, %v3914_v62   ;;  %v4283_v41 = vsub.f32 %v8183_v53, %v4078_v47 }
 0x2fa   :  { %vm5489_vm6 = vcmp.eq.f32.partialorder %v5194_v19, %v8806_v2  ;;  %5228 = vperm.xlu0 %6845, %v3881_v8   ;;  %v4891_v19 = vsub.f32 %v8246_v26, %v8843_v32  ;;  %v4375_v32 = vand.u32 2147483647, %v4311_v51  ;;  %v4440_v3 = vsub.f32 1.0, %v4376_v17 }
 0x2fb   :  { %vm6645_vm7 = vmpackc.low %vm5489_vm6, %vm5488_vm5  ;;  %v4347_v21 = vand.u32 2147483647, %v4283_v41 }
 0x2fc   :  { %6646 = vmatpush3.bf16.msk.msra.mxu0 %vm6645_vm7, %v6644_v27  ;;  %v4238_v61 = vpop.permute.xlu1 %4237  ;;  %v5993_v27 = vld [vmem:[%s9547_s17 + $0x18] sm:$0xff] }
 0x2fd   :  { %v5354_v16 = vpop.permute.xlu0 %5353  ;;  %5965 = vperm.xlu1 %6846, %v5955_v44   ;;  %v4315_v31 = vsub.f32 %v8183_v53, %v4238_v61  ;;  %v4411_v28 = vsub.f32 1.0, %v4347_v21  ;;  %v4407_v61 = vsub.f32 1.0, %v4343_v18 }
 0x2fe   :  { %vm5521_vm9 = vcmp.eq.f32.partialorder %v5354_v16, %v8806_v2  ;;  %5388 = vperm.xlu0 %6845, %v3913_v24   ;;  %v4408_v16 = vsub.f32 1.0, %v4344_v59 }
 0x2ff   :  { %vm6693_vm11 = vmpackc.low %vm5521_vm9, %vm5520_vm8  ;;  %v4379_v14 = vand.u32 2147483647, %v4315_v31  ;;  %v4475_v7 = vmax.f32 %v4411_v28, 0.0  ;;  %v4987_v31 = vsub.f32 1.0, %v4923_v6  ;;  %v5992_v28 = vld [vmem:[%s9547_s17 + $0x10] sm:$0xff] }
 0x300   :  { %6694 = vmatpush3.bf16.msk.msra.mxu1 %vm6693_vm11, %v6692_v9  ;;  %v4658_v2 = vpop.permute.xlu1 %4657 }
 0x301   :  { %v4863_v43 = vsub.f32 %v8246_v26, %v4658_v2  ;;  %v4083_v48 = vpop.permute.xlu0 %4082  ;;  %5975 = vperm.xlu1 %6846, %v5957_v39   ;;  %v4443_v44 = vsub.f32 1.0, %v4379_v14  ;;  %v4860_v2 = vsub.f32 %v8246_v26, %v8886_v40  ;;  %v4471_v14 = vmax.f32 %v4407_v61, 0.0 }
 0x302   :  { %5960 = vperm.xlu0 %6845, %v5954_v46   ;;  %v4284_v52 = vsub.f32 %v8183_v53, %v4083_v48  ;;  %v4439_v40 = vsub.f32 1.0, %v4375_v32 }
 0x303   :  { %v4927_v56 = vand.u32 2147483647, %v4863_v43  ;;  %v4955_v43 = vand.u32 2147483647, %v4891_v19  ;;  %v4507_v48 = vmax.f32 %v4443_v44, 0.0  ;;  %v9301_v19 = vmax.f32 %v4440_v3, 0.0 }
 0x304   :  { %v4818_v30 = vpop.permute.xlu1 %4817  ;;  %v4348_v9 = vand.u32 2147483647, %v4284_v52  ;;  %v9294_v52 = vmax.f32 %v4408_v16, 0.0 }
 0x305   :  { %v4991_v62 = vsub.f32 1.0, %v4927_v56  ;;  %v4895_v8 = vsub.f32 %v8246_v26, %v4818_v30  ;;  %v4243_v47 = vpop.permute.xlu0 %4242  ;;  %6001 = vperm.xlu1 %6846, %v5991_v34   ;;  %v5051_v30 = vmax.f32 %v4987_v31, 0.0 }
 0x306   :  { %5970 = vperm.xlu0 %6845, %v5956_v58   ;;  %v4316_v39 = vsub.f32 %v8183_v53, %v4243_v47  ;;  %v4412_v56 = vsub.f32 1.0, %v4348_v9 }
 0x307   :  { %v5055_v41 = vmax.f32 %v4991_v62, 0.0  ;;  %v4959_v24 = vand.u32 2147483647, %v4895_v8  ;;  %v4924_v62 = vand.u32 2147483647, %v4860_v2  ;;  %v4892_v8 = vsub.f32 %v8246_v26, %v8946_v49 }
 0x308   :  { %v3998_v21 = vpop.permute.xlu1 %3997  ;;  %v4380_v58 = vand.u32 2147483647, %v4316_v39  ;;  %v9304_v39 = vmax.f32 %v4439_v40, 0.0  ;;  %v4263_v49 = vsub.f32 %v8183_v53, %v8881_v33 }
 0x309   :  { %v9285_v46 = vmul.f32 %v5055_v41, %v4475_v7  ;;  %v5023_v25 = vsub.f32 1.0, %v4959_v24  ;;  %v4663_v4 = vpop.permute.xlu0 %4662  ;;  %6011 = vperm.xlu1 %6846, %v5993_v27   ;;  %v4267_v34 = vsub.f32 %v8183_v53, %v3998_v21  ;;  %v5019_v27 = vsub.f32 1.0, %v4955_v43  ;;  %v6117_v41 = vld [vmem:[#allocation2] sm:$0x1] }
 0x30a   :  { %v4864_v0 = vsub.f32 %v8246_v26, %v4663_v4  ;;  %5996 = vperm.xlu0 %6845, %v5990_v55   ;;  %v4476_v24 = vmax.f32 %v4412_v56, 0.0  ;;  %v4444_v55 = vsub.f32 1.0, %v4380_v58  ;;  %v9306_v21 = vmul.f32 %v5051_v30, %v4471_v14 }
 0x30b   :  { %v5087_v54 = vmax.f32 %v5023_v25, 0.0  ;;  %v4331_v7 = vand.u32 2147483647, %v4267_v34  ;;  %v4988_v25 = vsub.f32 1.0, %v4924_v62  ;;  %v4956_v4 = vand.u32 2147483647, %v4892_v8 }
 0x30c   :  { %v4928_v18 = vand.u32 2147483647, %v4864_v0  ;;  %v4158_v59 = vpop.permute.xlu1 %4157  ;;  %v9313_v0 = vmax.f32 %v5019_v27, 0.0  ;;  %v4508_v34 = vmax.f32 %v4444_v55, 0.0  ;;  %v9318_v58 = vand.u32 2147483647, %v4263_v49 }
 0x30d   :  { %v9296_v51 = vmul.f32 %v5087_v54, %v4507_v48  ;;  %v4823_v6 = vpop.permute.xlu0 %4822  ;;  %v4299_v44 = vsub.f32 %v8183_v53, %v4158_v59  ;;  %v4395_v43 = vsub.f32 1.0, %v4331_v7  ;;  %v4843_v62 = vsub.f32 %v8246_v26, %v8996_v12 }
 0x30e   :  { %v4992_v47 = vsub.f32 1.0, %v4928_v18  ;;  %v4896_v17 = vsub.f32 %v8246_v26, %v4823_v6  ;;  %6006 = vperm.xlu0 %6845, %v5992_v28   ;;  %v4844_v18 = vsub.f32 %v8246_v26, %v9036_v11  ;;  %v5052_v6 = vmax.f32 %v4988_v25, 0.0 }
 0x30f   :  { %v4363_v48 = vand.u32 2147483647, %v4299_v44  ;;  %v4264_v8 = vsub.f32 %v8183_v53, %v8998_v10  ;;  %v4876_v12 = vsub.f32 %v8246_v26, %v9046_v42 }
 0x310   :  { %v5056_v61 = vmax.f32 %v4992_v47, 0.0  ;;  %v4960_v16 = vand.u32 2147483647, %v4896_v17  ;;  %v4578_v9 = vpop.permute.xlu1 %4577  ;;  %v4459_v17 = vmax.f32 %v4395_v43, 0.0  ;;  %v4296_v43 = vsub.f32 %v8183_v53, %v9020_v15 }
 0x311   :  { %v4847_v32 = vsub.f32 %v8246_v26, %v4578_v9  ;;  %v4003_v31 = vpop.permute.xlu0 %4002  ;;  %v4427_v27 = vsub.f32 1.0, %v4363_v48  ;;  %v4328_v25 = vand.u32 2147483647, %v4264_v8  ;;  %v5116_v42 = vmul.f32 %v5052_v6, %v9294_v52 }
 0x312   :  { %v9311_v3 = vmul.f32 %v5056_v61, %v4476_v24  ;;  %v5024_v2 = vsub.f32 1.0, %v4960_v16  ;;  %6120 = vperm.xlu0 %6845, %v6117_v41   ;;  %v4268_v33 = vsub.f32 %v8183_v53, %v4003_v31  ;;  %v5020_v41 = vsub.f32 1.0, %v4956_v4 }
 0x313   :  { %v4911_v54 = vand.u32 2147483647, %v4847_v32  ;;  %v4908_v16 = vand.u32 2147483647, %v4844_v18  ;;  %v4295_v32 = vsub.f32 %v8183_v53, %v8941_v57  ;;  %v4907_v31 = vand.u32 2147483647, %v4843_v62 }
 0x314   :  { %v6659_v28 = vpack.c.bf16 %v9311_v3, %v9285_v46  ;;  %v5088_v14 = vmax.f32 %v5024_v2, 0.0  ;;  %v4738_v56 = vpop.permute.xlu1 %4737  ;;  %v4332_v24 = vand.u32 2147483647, %v4268_v33  ;;  %v4875_v2 = vsub.f32 %v8246_v26, %v9018_v1 }
 0x315   :  { %v4975_v59 = vsub.f32 1.0, %v4911_v54  ;;  %v4879_v40 = vsub.f32 %v8246_v26, %v4738_v56  ;;  %v4163_v30 = vpop.permute.xlu0 %4162  ;;  %v4491_v48 = vmax.f32 %v4427_v27, 0.0  ;;  %v5084_v18 = vmax.f32 %v5020_v41, 0.0 }
 0x316   :  { %v9327_v47 = vmul.f32 %v5088_v14, %v4508_v34  ;;  %v4300_v55 = vsub.f32 %v8183_v53, %v4163_v30  ;;  %v4396_v34 = vsub.f32 1.0, %v4332_v24  ;;  %v4972_v57 = vsub.f32 1.0, %v4908_v16 }
 0x317   :  { %v5039_v7 = vmax.f32 %v4975_v59, 0.0  ;;  %v4943_v44 = vand.u32 2147483647, %v4879_v40  ;;  %v4940_v59 = vand.u32 2147483647, %v4876_v12  ;;  %v4391_v62 = vsub.f32 1.0, %v9318_v58 }
 0x318   :  { %v6707_v11 = vpack.c.bf16 %v9327_v47, %v9296_v51  ;;  %v5279_v61 = vpop.permute.xlu1 %5278  ;;  %v4364_v14 = vand.u32 2147483647, %v4300_v55  ;;  %v4359_v1 = vand.u32 2147483647, %v4295_v32  ;;  %v4392_v27 = vsub.f32 1.0, %v4328_v25 }
 0x319   :  { %v9334_v9 = vmul.f32 %v5039_v7, %v4459_v17  ;;  %v5007_v10 = vsub.f32 1.0, %v4943_v44  ;;  %v4583_v49 = vpop.permute.xlu0 %4582  ;;  %v4971_v17 = vsub.f32 1.0, %v4907_v31  ;;  %v4939_v7 = vand.u32 2147483647, %v4875_v2  ;;  %v9353_v32 = vld [vmem:[%s9544_s11] ss:$0 sm:$0xff] }
 0x31a   :  { %v4848_v4 = vsub.f32 %v8246_v26, %v4583_v49  ;;  %v4360_v52 = vand.u32 2147483647, %v4296_v43  ;;  %v4460_v6 = vmax.f32 %v4396_v34, 0.0  ;;  %v4428_v44 = vsub.f32 1.0, %v4364_v14 }
 0x31b   :  { %v5071_v54 = vmax.f32 %v5007_v10, 0.0  ;;  %v6647_v16 = vpack.c.bf16 %v5116_v42, %v9306_v21  ;;  %v5148_v12 = vmul.f32 %v5084_v18, %v9301_v19  ;;  %v5036_v10 = vmax.f32 %v4972_v57, 0.0 }
 0x31c   :  { %v4912_v33 = vand.u32 2147483647, %v4848_v4  ;;  %v5439_v56 = vpop.permute.xlu1 %5438  ;;  %v5004_v49 = vsub.f32 1.0, %v4940_v59  ;;  %vm5506_vm12 = vcmp.eq.f32.partialorder %v5279_v61, %v9353_v32  ;;  %v5147_v21 = vmul.f32 %v9313_v0, %v9304_v39 }
 0x31d   :  { %v9344_v40 = vmul.f32 %v5071_v54, %v4491_v48  ;;  %v4743_v30 = vpop.permute.xlu0 %4742  ;;  %v5035_v4 = vmax.f32 %v4971_v17, 0.0  ;;  %v4456_v19 = vmax.f32 %v4392_v27, 0.0  ;;  %v5003_v2 = vsub.f32 1.0, %v4939_v7 }
 0x31e   :  { %v4976_v8 = vsub.f32 1.0, %v4912_v33  ;;  %v4880_v15 = vsub.f32 %v8246_v26, %v4743_v30  ;;  %v4424_v43 = vsub.f32 1.0, %v4360_v52  ;;  %v4492_v48 = vmax.f32 %v4428_v44, 0.0 }
 0x31f   :  { %v4455_v34 = vmax.f32 %v4391_v62, 0.0  ;;  %v4423_v14 = vsub.f32 1.0, %v4359_v1  ;;  %v6695_v33 = vpack.c.bf16 %v5148_v12, %v5147_v21  ;;  %v5100_v18 = vmul.f32 %v5036_v10, %v4456_v19 }
 0x320   :  { %v5040_v24 = vmax.f32 %v4976_v8, 0.0  ;;  %v4944_v55 = vand.u32 2147483647, %v4880_v15  ;;  %v5199_v41 = vpop.permute.xlu1 %5198  ;;  %v5068_v59 = vmax.f32 %v5004_v49, 0.0  ;;  %vm5538_vm15 = vcmp.eq.f32.partialorder %v5439_v56, %v9353_v32 }
 0x321   :  { %v5284_v58 = vpop.permute.xlu0 %5283  ;;  %v5099_v0 = vmul.f32 %v5035_v4, %v4455_v34  ;;  %v5067_v30 = vmax.f32 %v5003_v2, 0.0  ;;  %v4488_v8 = vmax.f32 %v4424_v43, 0.0  ;;  %v4487_v1 = vmax.f32 %v4423_v14, 0.0 }
 0x322   :  { %v9356_v31 = vmul.f32 %v5040_v24, %v4460_v6  ;;  %v5008_v25 = vsub.f32 1.0, %v4944_v55  ;;  %vm5507_vm13 = vcmp.eq.f32.partialorder %v5284_v58, %v9353_v32  ;;  %vm5490_vm2 = vcmp.eq.f32.partialorder %v5199_v41, %v9353_v32 }
 0x323   :  { %vm6648_vm14 = vmpackc.low %vm5507_vm13, %vm5506_vm12  ;;  %v6650_v27 = vpack.c.bf16 %v5100_v18, %v5099_v0  ;;  %v5132_v7 = vmul.f32 %v5068_v59, %v4488_v8  ;;  %v5131_v56 = vmul.f32 %v5067_v30, %v4487_v1 }
 0x324   :  { %v6662_v54 = vpack.c.bf16 %v9356_v31, %v9334_v9  ;;  %v5072_v42 = vmax.f32 %v5008_v25, 0.0  ;;  %6649 = vmatprep.subr.msk.bf16.mxu0 %vm6648_vm14, %v6647_v16  ;;  %v5359_v61 = vpop.permute.xlu1 %5358 }
 0x325   :  { %v5444_v57 = vpop.permute.xlu0 %5443  ;;  %v6698_v44 = vpack.c.bf16 %v5132_v7, %v5131_v56  ;;  %vm5522_vm4 = vcmp.eq.f32.partialorder %v5359_v61, %v9353_v32 }
 0x326   :  { %v9364_v39 = vmul.f32 %v5072_v42, %v4492_v48  ;;  %vm5539_vm0 = vcmp.eq.f32.partialorder %v5444_v57, %v9353_v32 }
 0x327   :  { %vm6696_vm1 = vmpackc.low %vm5539_vm0, %vm5538_vm15 }
 0x328   :  { %v6710_v15 = vpack.c.bf16 %v9364_v39, %v9344_v40  ;;  %6697 = vmatprep.subr.msk.bf16.mxu1 %vm6696_vm1, %v6695_v33  ;;  %v4088_v62 = vpop.permute.xlu1 %4087 }
 0x329   :  { %v5204_v17 = vpop.permute.xlu0 %5203  ;;  %v4285_v13 = vsub.f32 %v8183_v53, %v4088_v62 }
 0x32a   :  { %vm5491_vm10 = vcmp.eq.f32.partialorder %v5204_v17, %v9353_v32 }
 0x32b   :  { %vm6651_vm3 = vmpackc.low %vm5491_vm10, %vm5490_vm2 }
 0x32c   :  { %6652 = vmatpush3.bf16.msk.msra.mxu0 %vm6651_vm3, %v6650_v27  ;;  %v9371_v52 = vpop.permute.xlu1 %4247 }
 0x32d   :  { %v5364_v6 = vpop.permute.xlu0 %5363  ;;  %v4317_v45 = vsub.f32 %v8183_v53, %v9371_v52 }
 0x32e   :  { %vm5523_vm5 = vcmp.eq.f32.partialorder %v5364_v6, %v9353_v32 }
 0x32f   :  { %vm6699_vm6 = vmpackc.low %vm5523_vm5, %vm5522_vm4  ;;  %v4381_v17 = vand.u32 2147483647, %v4317_v45 }
 0x330   :  { %6700 = vmatpush3.bf16.msk.msra.mxu1 %vm6699_vm6, %v6698_v44  ;;  %v4668_v24 = vpop.permute.xlu1 %4667 }
 0x331   :  { %v4093_v55 = vpop.permute.xlu0 %4092  ;;  %v4865_v60 = vsub.f32 %v8246_v26, %v4668_v24 }
 0x332   :  { %v4286_v35 = vsub.f32 %v8183_v53, %v4093_v55 }
 0x333   :  { %v4929_v8 = vand.u32 2147483647, %v4865_v60 }
 0x334   :  { %v9375_v16 = vpop.permute.xlu1 %4827  ;;  %v4350_v62 = vand.u32 2147483647, %v4286_v35 }
 0x335   :  { %v9377_v41 = vpop.permute.xlu0 %4252  ;;  %v4897_v1 = vsub.f32 %v8246_v26, %v9375_v16  ;;  %v4993_v6 = vsub.f32 1.0, %v4929_v8 }
 0x336   :  { %v4318_v38 = vsub.f32 %v8183_v53, %v9377_v41  ;;  %v4414_v44 = vsub.f32 1.0, %v4350_v62  ;;  %v4445_v41 = vsub.f32 1.0, %v4381_v17 }
 0x337   :  { %v4961_v24 = vand.u32 2147483647, %v4897_v1 }
 0x338   :  { %v9379_v12 = vpop.permute.xlu1 %4007  ;;  %v4382_v55 = vand.u32 2147483647, %v4318_v38 }
 0x339   :  { %v4673_v10 = vpop.permute.xlu0 %4672  ;;  %v5025_v51 = vsub.f32 1.0, %v4961_v24 }
 0x33a   :  { %v4446_v47 = vsub.f32 1.0, %v4382_v55 }
 0x33c   :  { %v9381_v49 = vpop.permute.xlu1 %4167  ;;  %v4510_v60 = vmax.f32 %v4446_v47, 0.0 }
 0x33d   :  { %v4833_v58 = vpop.permute.xlu0 %4832 }
 0x33e   :  { %v4898_v0 = vsub.f32 %v8246_v26, %v4833_v58 }
 0x340   :  { %v9383_v25 = vpop.permute.xlu1 %4587  ;;  %v4962_v7 = vand.u32 2147483647, %v4898_v0 }
 0x341   :  { %v9385_v21 = vpop.permute.xlu0 %4012  ;;  %v4849_v46 = vsub.f32 %v8246_v26, %v9383_v25  ;;  %v5057_v25 = vmax.f32 %v4993_v6, 0.0 }
 0x342   :  { %v4270_v3 = vsub.f32 %v8183_v53, %v9385_v21  ;;  %v4478_v21 = vmax.f32 %v4414_v44, 0.0 }
 0x344   :  { %v9387_v4 = vpop.permute.xlu1 %4747 }
 0x345   :  { %v9389_v19 = vpop.permute.xlu0 %4172 }
 0x348   :  { %v5289_v2 = vpop.permute.xlu1 %5288 }
 0x349   :  { %v9391_v43 = vpop.permute.xlu0 %4592  ;;  %vm5508_vm7 = vcmp.eq.f32.partialorder %v5289_v2, %v9353_v32  ;;  %v5026_v2 = vsub.f32 1.0, %v4962_v7 }
 0x34a   :  { %v4850_v52 = vsub.f32 %v8246_v26, %v9391_v43 }
 0x34c   :  { %v5449_v48 = vpop.permute.xlu1 %5448 }
 0x34d   :  { %v9393_v42 = vpop.permute.xlu0 %4752  ;;  %vm5540_vm11 = vcmp.eq.f32.partialorder %v5449_v48, %v9353_v32  ;;  %v4914_v48 = vand.u32 2147483647, %v4850_v52 }
 0x350   :  { %v5209_v61 = vpop.permute.xlu1 %5208 }
 0x351   :  { %v5294_v34 = vpop.permute.xlu0 %5293  ;;  %vm5492_vm14 = vcmp.eq.f32.partialorder %v5209_v61, %v9353_v32  ;;  %v4882_v61 = vsub.f32 %v8246_v26, %v9393_v42 }
 0x352   :  { %vm5509_vm8 = vcmp.eq.f32.partialorder %v5294_v34, %v9353_v32  ;;  %v4334_v34 = vand.u32 2147483647, %v4270_v3 }
 0x353   :  { %vm6654_vm9 = vmpackc.low %vm5509_vm8, %vm5508_vm7 }
 0x354   :  { %6655 = vmatprep.subr.msk.bf16.mxu0 %vm6654_vm9, %v6653_v23  ;;  %v5369_v14 = vpop.permute.xlu1 %5368  ;;  %v4866_v23 = vsub.f32 %v8246_v26, %v4673_v10  ;;  %v4269_v10 = vsub.f32 %v8183_v53, %v9379_v12  ;;  %v4881_v12 = vsub.f32 %v8246_v26, %v9387_v4  ;;  %v4509_v26 = vmax.f32 %v4445_v41, 0.0 }
 0x355   :  { %v5454_v33 = vpop.permute.xlu0 %5453  ;;  %vm5524_vm1 = vcmp.eq.f32.partialorder %v5369_v14, %v9353_v32  ;;  %v4302_v14 = vsub.f32 %v8183_v53, %v9389_v19  ;;  %v5089_v19 = vmax.f32 %v5025_v51, 0.0  ;;  %v4398_v31 = vsub.f32 1.0, %v4334_v34 }
 0x356   :  { %vm5541_vm12 = vcmp.eq.f32.partialorder %v5454_v33, %v9353_v32  ;;  %v4333_v33 = vand.u32 2147483647, %v4269_v10 }
 0x357   :  { %vm6702_vm13 = vmpackc.low %vm5541_vm12, %vm5540_vm11  ;;  %v4366_v35 = vand.u32 2147483647, %v4302_v14  ;;  %v5153_v8 = vmul.f32 %v5089_v19, %v4509_v26  ;;  %v4462_v1 = vmax.f32 %v4398_v31, 0.0  ;;  %v5755_v14 = vld [vmem:[%s9549_s14 + $0x8] sm:$0xff]  ;;  %v5986_v31 = vld [vmem:[%s9552_s16] sm:$0xff] }
 0x358   :  { %6703 = vmatprep.subr.msk.bf16.mxu1 %vm6702_vm13, %v6701_v37  ;;  %v5299_v18 = vpop.permute.xlu1 %5298  ;;  %v4349_v37 = vand.u32 2147483647, %v4285_v13  ;;  %v5090_v13 = vmax.f32 %v5026_v2, 0.0  ;;  %v5751_v19 = vld [vmem:[%s9550_s13 + $0x8] sm:$0xff] }
 0x359   :  { %v5214_v57 = vpop.permute.xlu0 %5213  ;;  %vm5510_vm3 = vcmp.eq.f32.partialorder %v5299_v18, %v9353_v32 }
 0x35a   :  { %vm5493_vm15 = vcmp.eq.f32.partialorder %v5214_v57, %v9353_v32  ;;  %v4413_v29 = vsub.f32 1.0, %v4349_v37  ;;  %v4301_v57 = vsub.f32 %v8183_v53, %v9381_v49  ;;  %v4397_v49 = vsub.f32 1.0, %v4333_v33  ;;  %v5757_v33 = vld [vmem:[%s9549_s14 + $0x18] sm:$0xff] }
 0x35b   :  { %vm6657_vm0 = vmpackc.low %vm5493_vm15, %vm5492_vm14  ;;  %v5154_v45 = vmul.f32 %v5090_v13, %v4510_v60  ;;  %v5752_v60 = vld [vmem:[%s9550_s13 + $0x10] sm:$0xff] }
 0x35c   :  { %6658 = vmatpush3.bf16.msk.msra.mxu0 %vm6657_vm0, %v6656_v5  ;;  %v5459_v20 = vpop.permute.xlu1 %5458  ;;  %v4930_v5 = vand.u32 2147483647, %v4866_v23  ;;  %v4477_v16 = vmax.f32 %v4413_v29, 0.0  ;;  %v4978_v23 = vsub.f32 1.0, %v4914_v48  ;;  %v4430_v29 = vsub.f32 1.0, %v4366_v35 }
 0x35d   :  { %v5374_v59 = vpop.permute.xlu0 %5373  ;;  %vm5542_vm6 = vcmp.eq.f32.partialorder %v5459_v20, %v9353_v32  ;;  %v4461_v40 = vmax.f32 %v4397_v49, 0.0 }
 0x35e   :  { %vm5525_vm2 = vcmp.eq.f32.partialorder %v5374_v59, %v9353_v32  ;;  %v4994_v27 = vsub.f32 1.0, %v4930_v5  ;;  %v4946_v59 = vand.u32 2147483647, %v4882_v61  ;;  %v5121_v4 = vmul.f32 %v5057_v25, %v4477_v16 }
 0x35f   :  { %vm6705_vm10 = vmpackc.low %vm5525_vm2, %vm5524_vm1  ;;  %v5042_v0 = vmax.f32 %v4978_v23, 0.0  ;;  %v4494_v6 = vmax.f32 %v4430_v29, 0.0 }
 0x360   :  { %6706 = vmatpush3.bf16.msk.msra.mxu1 %vm6705_vm10, %v6704_v50  ;;  %v5219_v63 = vpop.permute.xlu1 %5218  ;;  %v5058_v58 = vmax.f32 %v4994_v27, 0.0 }
 0x361   :  { %v5304_v30 = vpop.permute.xlu0 %5303  ;;  %vm5494_vm9 = vcmp.eq.f32.partialorder %v5219_v63, %v9353_v32  ;;  %v4365_v63 = vand.u32 2147483647, %v4301_v57  ;;  %v5106_v27 = vmul.f32 %v5042_v0, %v4462_v1 }
 0x362   :  { %vm5511_vm4 = vcmp.eq.f32.partialorder %v5304_v30, %v9353_v32  ;;  %v5122_v18 = vmul.f32 %v5058_v58, %v4478_v21  ;;  %v5010_v30 = vsub.f32 1.0, %v4946_v59 }
 0x363   :  { %vm6660_vm5 = vmpackc.low %vm5511_vm4, %vm5510_vm3  ;;  %v4429_v39 = vsub.f32 1.0, %v4365_v63 }
 0x364   :  { %6661 = vmatprep.subr.msk.bf16.mxu0 %vm6660_vm5, %v6659_v28  ;;  %v5379_v50 = vpop.permute.xlu1 %5378  ;;  %v6665_v37 = vpack.c.bf16 %v5122_v18, %v5121_v4  ;;  %v5074_v7 = vmax.f32 %v5010_v30, 0.0  ;;  %v5750_v18 = vld [vmem:[%s9550_s13] sm:$0xff] }
 0x365   :  { %v5464_v56 = vpop.permute.xlu0 %5463  ;;  %vm5526_vm13 = vcmp.eq.f32.partialorder %v5379_v50, %v9353_v32  ;;  %v4493_v44 = vmax.f32 %v4429_v39, 0.0 }
 0x366   :  { %vm5543_vm7 = vcmp.eq.f32.partialorder %v5464_v56, %v9353_v32  ;;  %v5138_v16 = vmul.f32 %v5074_v7, %v4494_v6  ;;  %v6866_v7 = vmov 0.0|0.0  }
 0x367   :  { %vm6708_vm8 = vmpackc.low %vm5543_vm7, %vm5542_vm6 }
 0x368   :  { %6709 = vmatprep.subr.msk.bf16.mxu1 %vm6708_vm8, %v6707_v11  ;;  %v5309_v28 = vpop.permute.xlu1 %5308  ;;  %v4913_v11 = vand.u32 2147483647, %v4849_v46 }
 0x369   :  { %v5224_v43 = vpop.permute.xlu0 %5223  ;;  %vm5512_vm0 = vcmp.eq.f32.partialorder %v5309_v28, %v9353_v32 }
 0x36a   :  { %vm5495_vm11 = vcmp.eq.f32.partialorder %v5224_v43, %v9353_v32  ;;  %v4977_v9 = vsub.f32 1.0, %v4913_v11 }
 0x36b   :  { %vm6663_vm12 = vmpackc.low %vm5495_vm11, %vm5494_vm9 }
 0x36c   :  { %6664 = vmatpush3.bf16.msk.msra.mxu0 %vm6663_vm12, %v6662_v54  ;;  %v5469_v42 = vpop.permute.xlu1 %5468  ;;  %v4945_v54 = vand.u32 2147483647, %v4881_v12  ;;  %v5041_v62 = vmax.f32 %v4977_v9, 0.0  ;;  %vm5759_vm12 = vcmask 64512   ;;  %v5754_v12 = vld [vmem:[%s9549_s14] sm:$0xff]  ;;  %v5753_v9 = vld [vmem:[%s9550_s13 + $0x18] sm:$0xff] }
 0x36d   :  { %v5384_v20 = vpop.permute.xlu0 %5383  ;;  %vm5544_vm10 = vcmp.eq.f32.partialorder %v5469_v42, %v9353_v32  ;;  %v5756_v42 = vld [vmem:[%s9549_s14 + $0x10] sm:$0xff] }
 0x36e   :  { %vm5527_vm14 = vcmp.eq.f32.partialorder %v5384_v20, %v9353_v32  ;;  %v5009_v38 = vsub.f32 1.0, %v4945_v54  ;;  %v5105_v56 = vmul.f32 %v5041_v62, %v4461_v40 }
 0x36f   :  { %vm6711_vm15 = vmpackc.low %vm5527_vm14, %vm5526_vm13  ;;  %vm6014_vm13 = vcmask 261120   ;;  %vm6867_vm14 = vmmov 0  }
 0x370   :  { %6712 = vmatpush3.bf16.msk.msra.mxu1 %vm6711_vm15, %v6710_v15  ;;  %v3706_v53 = vpop.permute.xlu1 %3705  ;;  %v6713_v15 = vpack.c.bf16 %v5154_v45, %v5153_v8  ;;  %v5073_v52 = vmax.f32 %v5009_v38, 0.0  ;;  %v6668_v55 = vpack.c.bf16 %v5106_v27, %v5105_v56  ;;  %v5989_v27 = vld [vmem:[%s9552_s16 + $0x18] sm:$0xff] }
 0x371   :  { %v5314_v5 = vpop.permute.xlu0 %5313 }
 0x372   :  { %vm5513_vm1 = vcmp.eq.f32.partialorder %v5314_v5, %v9353_v32  ;;  %v5137_v3 = vmul.f32 %v5073_v52, %v4493_v44 }
 0x373   :  { %vm6666_vm2 = vmpackc.low %vm5513_vm1, %vm5512_vm0 }
 0x374   :  { %6667 = vmatprep.subr.msk.bf16.mxu0 %vm6666_vm2, %v6665_v37  ;;  %v5234_v50 = vpop.permute.xlu1 %5233  ;;  %v6716_v10 = vpack.c.bf16 %v5138_v16, %v5137_v3 }
 0x375   :  { %v5474_v17 = vpop.permute.xlu0 %5473  ;;  %vm5497_vm5 = vcmp.eq.f32.partialorder %v5234_v50, %v9353_v32  ;;  %v5987_v50 = vld [vmem:[%s9552_s16 + $0x8] sm:$0xff] }
 0x376   :  { %vm5545_vm3 = vcmp.eq.f32.partialorder %v5474_v17, %v9353_v32  ;;  %v5988_v17 = vld [vmem:[%s9552_s16 + $0x10] sm:$0xff] }
 0x377   :  { %vm6714_vm4 = vmpackc.low %vm5545_vm3, %vm5544_vm10 }
 0x378   :  { %6715 = vmatprep.subr.msk.bf16.mxu1 %vm6714_vm4, %v6713_v15  ;;  %v5394_v46 = vpop.permute.xlu1 %5393 }
 0x379   :  { %v5229_v24 = vpop.permute.xlu0 %5228  ;;  %vm5529_vm8 = vcmp.eq.f32.partialorder %v5394_v46, %v9353_v32 }
 0x37a   :  { %vm5496_vm6 = vcmp.eq.f32.partialorder %v5229_v24, %v9353_v32 }
 0x37b   :  { %vm6669_vm7 = vmpackc.low %vm5497_vm5, %vm5496_vm6 }
 0x37c   :  { %6670 = vmatpush3.bf16.msk.msra.mxu0 %vm6669_vm7, %v6668_v55  ;;  %v5966_v54 = vpop.permute.xlu1 %5965 }
 0x37d   :  { %v5389_v28 = vpop.permute.xlu0 %5388  ;;  %v3622_v41 = vpop.f32.mrb[4].mxu0 }
 0x37e   :  { %vm5528_vm9 = vcmp.eq.f32.partialorder %v5389_v28, %v9353_v32  ;;  %v3708_v58 = vadd.f32 %v3706_v53, %v3622_v41  ;;  %v3624_v2 = vpop.f32.mrb[5].mxu0  ;;  %v5758_v32 = vld [vmem:[%s9548_s12] sm:$0xff] }
 0x37f   :  { %vm6717_vm11 = vmpackc.low %vm5529_vm8, %vm5528_vm9  ;;  %v3709_v43 = vadd.f32 %v3706_v53, %v3624_v2  ;;  %6510 = vmatprep.subr.mxu0 %v5758_v32 }
 0x380   :  { %6718 = vmatpush3.bf16.msk.msra.mxu1 %vm6717_vm11, %v6716_v10  ;;  %v3712_v61 = vmax.f32 %v3708_v58, 0.0  ;;  %v5976_v5 = vpop.permute.xlu1 %5975 }
 0x381   :  { %v3713_v48 = vmax.f32 %v3709_v43, 0.0  ;;  %v5961_v35 = vpop.permute.xlu0 %5960 }
 0x382   :  { %v3693_v25 = vpop.f32.mrb[4].mxu1 }
 0x383   :  { %v3710_v21 = vadd.f32 %v3706_v53, %v3693_v25  ;;  %v3695_v51 = vpop.f32.mrb[5].mxu1  ;;  %5674 = vmatprep.mubr.f32.mxu0 %v3713_v48  ;;  %v6116_v25 = vld [vmem:[%s9553_s18] sm:$0x1] }
 0x384   :  { %v3711_v47 = vadd.f32 %v3706_v53, %v3695_v51  ;;  %5675 = vmatmul.mubr.f32.vlgmr.msra.gmra.mrb[6].mxu0 %v3712_v61  ;;  %v6002_v56 = vpop.permute.xlu1 %6001 }
 0x385   :  { %v3714_v34 = vmax.f32 %v3710_v21, 0.0  ;;  %6512 = vmatprep.mubr.msk.f32.mxu0 %vm5759_vm12, %v5754_v12  ;;  %6511 = vmatpush3.msra.mxu0 %v5758_v32  ;;  %v5971_v8 = vpop.permute.xlu0 %5970 }
 0x386   :  { %v3715_v11 = vmax.f32 %v3711_v47, 0.0 }
 0x388   :  { %5744 = vmatprep.mubr.f32.mxu1 %v3715_v11  ;;  %6513 = vmatmul.mubr.msk.f32.vlgmr.msra.gmra.mrb[8].mxu0 %vm5759_vm12, %v5755_v14  ;;  %v6012_v46 = vpop.permute.xlu1 %6011 }
 0x389   :  { %5745 = vmatmul.mubr.f32.vlgmr.msra.gmra.mrb[6].mxu1 %v3714_v34  ;;  %6515 = vmatprep.mubr.msk.f32.mxu0 %vm5759_vm12, %v5756_v42  ;;  %v5997_v52 = vpop.permute.xlu0 %5996 }
 0x38a   :  { %6534 = vmatprep.mubr.msk.f32.mxu1 %vm6014_vm13, %v5986_v31 }
 0x38c   :  { %6516 = vmatmul.mubr.msk.f32.gmra.mrb[10].mxu0 %vm5759_vm12, %v5757_v33 }
 0x38d   :  { %6520 = vmatprep.mubr.msk.f32.mxu0 %vm5759_vm12, %v5750_v18  ;;  %v6007_v41 = vpop.permute.xlu0 %6006 }
 0x391   :  { %v6121_v21 = vpop.permute.xlu0 %6120 }
 0x392   :  { %v6126_v51 = vrot.slane %v6121_v21, %v7124_v36 }
 0x457   :  { %v6449_v57 = vpop.f32.mrb[6].mxu0 }
 0x458   :  { %v6450_v13 = vpop.f32.mrb[7].mxu0 }
 0x459   :  { %v6451_v20 = vadd.f32 %v6450_v13, %v6449_v57 }
 0x45c   :  { %v6484_v23 = vpop.f32.mrb[6].mxu1 }
 0x45d   :  { %v6485_v59 = vpop.f32.mrb[7].mxu1 }
 0x45e   :  { %v6486_v26 = vadd.f32 %v6485_v59, %v6484_v23 }
 0x460   :  { %v5747_v4 = vadd.f32 %v6486_v26, %v6451_v20 }
 0x462   :  { %6207 = vst [vmem:[%s9551_s21] sm:$0xff] %v5747_v4  ;;  %6518 = vmatprep.subr.mxu0 %v5747_v4 }
 0x463   :  { %6519 = vmatpush3.msra.mxu0 %v5747_v4 }
 0x464   :  { %6521 = vmatmul.mubr.msk.f32.vlgmr.msra.gmra.mrb[8].mxu0 %vm5759_vm12, %v5751_v19 }
 0x465   :  { %6523 = vmatprep.mubr.msk.f32.mxu0 %vm5759_vm12, %v5752_v60 }
 0x468   :  { %6524 = vmatmul.mubr.msk.f32.gmra.mrb[10].mxu0 %vm5759_vm12, %v5753_v9 }
 0x537   :  { %v6522_v53 = vpop.f32.mrb[8].mxu0 }
 0x538   :  { %v5979_v49 = vadd.f32 %v6522_v53, %v5966_v54  ;;  %v5935_v37 = vpop.f32.mrb[9].mxu0 }
 0x539   :  { %v5978_v63 = vadd.f32 %v5961_v35, %v5935_v37 }
 0x53a   :  { %v5983_v45 = vmax.f32 %v5979_v49, 0.0 }
 0x53b   :  { %v5982_v0 = vmax.f32 %v5978_v63, 0.0  ;;  %v6525_v30 = vpop.f32.mrb[10].mxu0 }
 0x53c   :  { %v5981_v62 = vadd.f32 %v6525_v30, %v5976_v5  ;;  %v5945_v1 = vpop.f32.mrb[11].mxu0 }
 0x53d   :  { %v6719_v38 = vpack.c.bf16 %v5983_v45, %v5982_v0  ;;  %v5980_v29 = vadd.f32 %v5971_v8, %v5945_v1 }
 0x53e   :  { %v5985_v40 = vmax.f32 %v5981_v62, 0.0 }
 0x53f   :  { %v5984_v39 = vmax.f32 %v5980_v29, 0.0  ;;  %6720 = vmatprep.subr.bf16.mxu1 %v6719_v38 }
 0x540   :  { %6722 = vmatpush3.bf16.msra.mxu1 %v6719_v38 }
 0x541   :  { %v6723_v15 = vpack.c.bf16 %v5985_v40, %v5984_v39 }
 0x543   :  { %6724 = vmatprep.subr.bf16.mxu1 %v6723_v15 }
 0x544   :  { %6726 = vmatpush3.bf16.msra.mxu1 %v6723_v15 }
 0x545   :  { %6727 = vmatprep.subr.bf16.mxu1 %v6866_v7 }
 0x547   :  { %6535 = vmatmul.mubr.msk.f32.vlgmr.msra.gmra.mrb[8].mxu1 %vm6014_vm13, %v5987_v50 }
 0x548   :  { %6537 = vmatprep.mubr.msk.f32.mxu1 %vm6014_vm13, %v5988_v17 }
 0x54b   :  { %6538 = vmatmul.mubr.msk.f32.gmra.mrb[10].mxu1 %vm6014_vm13, %v5989_v27 }
 0x54c   :  { %6548 = vmatprep.mubr.msk.f32.mxu1 %vm6867_vm14, %v9780_v22 }
 0x61a   :  { %v6536_v6 = vpop.f32.mrb[8].mxu1 }
 0x61b   :  { %v6099_v44 = vadd.f32 %v6536_v6, %v6002_v56  ;;  %v6093_v24 = vpop.f32.mrb[9].mxu1 }
 0x61c   :  { %v6094_v55 = vadd.f32 %v6093_v24, %v5997_v52 }
 0x61d   :  { %v6113_v16 = vmax.f32 %v6099_v44, 0.0 }
 0x61e   :  { %v6112_v3 = vmax.f32 %v6094_v55, 0.0  ;;  %v6539_v28 = vpop.f32.mrb[10].mxu1 }
 0x61f   :  { %v6109_v10 = vadd.f32 %v6539_v28, %v6012_v46  ;;  %v6103_v58 = vpop.f32.mrb[11].mxu1 }
 0x620   :  { %v6728_v2 = vpack.c.bf16 %v6113_v16, %v6112_v3  ;;  %v6104_v43 = vadd.f32 %v6103_v58, %v6007_v41 }
 0x621   :  { %v6115_v48 = vmax.f32 %v6109_v10, 0.0 }
 0x622   :  { %v6114_v61 = vmax.f32 %v6104_v43, 0.0  ;;  %6729 = vmatpush3.bf16.msra.mxu1 %v6728_v2 }
 0x623   :  { %6730 = vmatprep.subr.bf16.mxu1 %v6866_v7 }
 0x624   :  { %v6731_v22 = vpack.c.bf16 %v6115_v48, %v6114_v61 }
 0x626   :  { %6732 = vmatpush3.bf16.msra.mxu1 %v6731_v22 }
 0x629   :  { %6549 = vmatmul.mubr.msk.f32.vlgmr.msra.gmra.mrb[12].mxu1 %vm6014_vm13, %v6116_v25 }
 0x6fc   :  { %v6196_v47 = vpop.f32.mrb[12].mxu1 }
 0x6fd   :  { %v6197_v11 = vadd.f32 %v6196_v47, %v6126_v51  ;;  %v6550_v34 = vpop.f32.mrb[13].mxu1 }
 0x6ff   :  { %v6416_v32 = vmul.f32 -1.442695, %v6197_v11 }
 0x701   :  { %6851 = vpow2.f32 %v6416_v32 }
 0x70b   :  { %v6852_v12 = vpop.eup %6851 }
 0x70c   :  { %v6203_v14 = vadd.f32 1.0, %v6852_v12 }
 0x70e   :  { %6853 = vrcp.f32 %v6203_v14 }
 0x718   :  { %v6854_v42 = vpop.eup %6853 }
 0x719   :  { %6206 = vst [vmem:[%s9554_s20] sm:$0x1] %v6854_v42 }

</bundles_post_ra>
